<compile_context>
chip_gen: v7x
topology: tpu7x:2x2x1
jax: 0.10.0
libtpu: 0.0.40
codegen_flags: <defaults>
</compile_context>

<pallas_src>
import functools

import jax
import jax.numpy as jnp
import numpy as np
from jax import lax
from jax.experimental import pallas as pl
from jax.experimental.pallas import tpu as pltpu


# --------------------------------------------------------------------------- kernels


def _conv1d_shift_mean_kernel(x_ref, w_ref, out_ref):
    """Single-stream Conv_1D branch (requires C % T == 0).

    x_ref:   (Bblk, T, C)   block of x in its native layout (C lane-dense).
    w_ref:   (T, C, C//T)   per-time-row 0/+-1 matrices folding the depthwise 3-tap
                            shift conv, its zero padding and the time-sum.
    out_ref: (Bblk, C)      mean over time of (conv permuted back + residual).
    """
    t = x_ref.shape[1]
    inv_t = 1.0 / t

    # Residual term: sum over time in the native (T, C) layout (sublane reduce).
    res_sum = jnp.sum(x_ref[...].astype(jnp.float32), axis=1)               # (Bblk, C)

    # Conv term: original time row a holds view channels [a*C/T, (a+1)*C/T); one small
    # MXU matmul per row produces that contiguous channel chunk, lane-concat restores
    # full channel order.
    chunks = []
    for a in range(t):
        row = x_ref[:, a, :].astype(jnp.float32)                             # (Bblk, C)
        chunks.append(
            jnp.dot(row, w_ref[a],
                    preferred_element_type=jnp.float32,
                    precision=lax.Precision.HIGHEST))                        # (Bblk, C//T)
    conv_sum = jnp.concatenate(chunks, axis=-1)                              # (Bblk, C)

    out_ref[...] = ((conv_sum + res_sum) * inv_t).astype(out_ref.dtype)


def _conv1d_shift_mean_dual_kernel(xview_ref, xorig_ref, out_ref):
    """Fallback Conv_1D branch for C % T != 0 (reads x twice, as before)."""
    xv = xview_ref[...].astype(jnp.float32)          # (Bblk, C, T)
    xo = xorig_ref[...].astype(jnp.float32)          # (Bblk, T, C)
    _, c, t = xv.shape
    inv_t = 1.0 / t

    s_all = jnp.sum(xv, axis=-1)                     # (Bblk, C)
    first = xv[:, :, 0]
    last = xv[:, :, t - 1]

    ch = lax.broadcasted_iota(jnp.int32, s_all.shape, 1)
    c4 = c // 4                                      # band 0: [0, C//4)
    mid_end = c4 + c // 2                            # band 1: [C//4, C//4 + C//2)
    last_start = c + (-c // 4)                       # band 2: [C - ceil(C/4), C)
    conv_sum = (jnp.where(ch < c4, s_all - last, 0.0)
                + jnp.where((ch >= c4) & (ch < mid_end), s_all, 0.0)
                + jnp.where(ch >= last_start, s_all - first, 0.0))

    res_sum = jnp.sum(xo, axis=1)
    out_ref[...] = ((conv_sum + res_sum) * inv_t).astype(out_ref.dtype)


def _mean_pool_kernel(x_ref, out_ref):
    # 'meanP' branch: mean over the time axis, lane-dense (Bblk, C) output.
    x = x_ref[...].astype(jnp.float32)               # (Bblk, T, C)
    t = x.shape[1]
    out_ref[...] = (jnp.sum(x, axis=1) * (1.0 / t)).astype(out_ref.dtype)


# --------------------------------------------------------------------------- weights


@functools.lru_cache(maxsize=None)
def _shift_weights_per_row(c, t):
    """(T, C, C//T) float32.  W[a, j, b] = contribution of x[time=a, channel=j] to the
    time-summed depthwise shift-conv of view channel ch = a*(C//T) + b:
        sum_t conv[ch] = w0*(S - last) + w1*S + w2*(S - first)
    where S/first/last are taken over the view row (a contiguous run of T flat elements
    inside original time row a, valid because C % T == 0)."""
    g = c // t
    band0_end = c // 4
    band1_end = c // 4 + c // 2
    band2_start = c + (-c // 4)          # first channel of the last ceil(C/4) block
    w = np.zeros((t, c, g), np.float32)
    for ch in range(c):
        a, b = divmod(ch, g)
        w0 = 1.0 if ch < band0_end else 0.0
        w1 = 1.0 if band0_end <= ch < band1_end else 0.0
        w2 = 1.0 if ch >= band2_start else 0.0
        base = b * t
        w[a, base:base + t, b] += w0 + w1 + w2        # S term
        w[a, base + t - 1, b] -= w0                   # left tap (t-1) misses the last step
        w[a, base, b] -= w2                           # right tap (t+1) misses the first step
    return w


# --------------------------------------------------------------------------- planning


def _round_up(v, m):
    return ((v + m - 1) // m) * m


def _vmem_capacity_bytes():
    try:
        info = pltpu.get_tpu_info()
        for name in ("vmem_capacity_bytes", "vmem_bytes", "vmem_size_bytes"):
            v = getattr(info, name, None)
            if isinstance(v, int) and v > 0:
                return v
    except Exception:
        pass
    return 64 << 20                                   # conservative default (v7x per-core)


def _pipeline_budget_bytes(vmem_cap):
    # <= 3/8 of physical VMEM for pipeline buffers (v7x ~24 MiB, v5e/v6e capped at 48 MiB).
    return min((vmem_cap * 3) // 8, 48 << 20)


def _tile_bytes(rows, cols):
    # f32 VMEM tile padded to the (8, 128) vreg grid (conservative for narrower dtypes).
    return _round_up(max(rows, 1), 8) * _round_up(max(cols, 1), 128) * 4


def _choose_bblk(b, per_row_bytes, resident_bytes, budget_bytes):
    """Largest batch block: multiple of 8, >= 2 grid steps (megacore/pipelining), in budget."""
    if b <= 8:
        return int(b)                                  # tiny batch: single full block
    avail = max(budget_bytes - resident_bytes, 8 * per_row_bytes)
    cap = max(8, avail // per_row_bytes)
    bblk = min(cap, -(-b // 2))                        # ensure grid >= 2
    bblk = max(8, (bblk // 8) * 8)                     # sublane-aligned output blocks
    return int(min(bblk, b))


def _vmem_limit_bytes(bblk, per_row_bytes, resident_bytes, vmem_cap):
    est = bblk * per_row_bytes + resident_bytes + (4 << 20)
    return int(min((vmem_cap * 3) // 4, max(32 << 20, est)))


# --------------------------------------------------------------------------- module


class Aggregator:
    """JAX/Pallas port of Aggregator (modes 'meanP' and 'Conv_1D', aggr_reduce=True)."""

    def __init__(self, embed_dim, mode="Conv_1D", aggr_reduce=True):
        assert mode in ("meanP", "Conv_1D")
        # TODO(synk): 'Transf', 'LSTM', 'Transf_cls' branches need the CLIP
        # ResidualAttentionBlock / nn.LSTM / TAggregate stacks; not implemented here.
        self.mode = mode
        self.aggr_reduce = aggr_reduce
        self.embed_dim = embed_dim

    def __call__(self, x):
        b, t, c = x.shape
        assert c == self.embed_dim
        if not self.aggr_reduce:
            # TODO(synk): aggr_reduce=False (per-frame output / squeeze(0)) not implemented.
            raise NotImplementedError("only the aggr_reduce=True (mean over time) path is implemented")

        vmem_cap = _vmem_capacity_bytes()
        budget = _pipeline_budget_bytes(vmem_cap)

        if self.mode == "meanP":
            per_row = 4 * _tile_bytes(t, c)            # 2x double-buffer + f32 working copy
            bblk = _choose_bblk(b, per_row, 0, budget)
            params = pltpu.CompilerParams(
                dimension_semantics=("parallel",),
                vmem_limit_bytes=_vmem_limit_bytes(bblk, per_row, 0, vmem_cap))
            return pl.pallas_call(
                _mean_pool_kernel,
                out_shape=jax.ShapeDtypeStruct((b, c), x.dtype),
                grid=(pl.cdiv(b, bblk),),
                in_specs=[pl.BlockSpec((bblk, t, c), lambda i: (i, 0, 0))],
                out_specs=pl.BlockSpec((bblk, c), lambda i: (i, 0)),
                compiler_params=params,
            )(x)

        # ----- Conv_1D -----
        if c % t == 0:
            # Main path: single HBM stream + per-time-row shift-weight matmuls.
            g = c // t
            w = jnp.asarray(_shift_weights_per_row(c, t))             # (T, C, C//T), 0/+-1
            w_resident = 2 * t * _tile_bytes(c, g)                     # resident (maybe 2-buffered)
            per_row = 4 * _tile_bytes(t, c)
            bblk = _choose_bblk(b, per_row, w_resident, budget)
            params = pltpu.CompilerParams(
                dimension_semantics=("parallel",),
                vmem_limit_bytes=_vmem_limit_bytes(bblk, per_row, w_resident, vmem_cap))
            return pl.pallas_call(
                _conv1d_shift_mean_kernel,
                out_shape=jax.ShapeDtypeStruct((b, c), x.dtype),
                grid=(pl.cdiv(b, bblk),),
                in_specs=[
                    pl.BlockSpec((bblk, t, c), lambda i: (i, 0, 0)),   # x: the only HBM stream
                    pl.BlockSpec((t, c, g), lambda i: (0, 0, 0)),      # W: resident constant
                ],
                out_specs=pl.BlockSpec((bblk, c), lambda i: (i, 0)),
                compiler_params=params,
            )(x, w)

        # Fallback (C % T != 0): dual-stream kernel; x.reshape is a free row-major view.
        x_view = x.reshape(b, c, t)
        per_row = 2 * (_tile_bytes(t, c) + _tile_bytes(c, t)) + 2 * _tile_bytes(t, c)
        bblk = _choose_bblk(b, per_row, 0, budget)
        params = pltpu.CompilerParams(
            dimension_semantics=("parallel",),
            vmem_limit_bytes=_vmem_limit_bytes(bblk, per_row, 0, vmem_cap))
        return pl.pallas_call(
            _conv1d_shift_mean_dual_kernel,
            out_shape=jax.ShapeDtypeStruct((b, c), x.dtype),
            grid=(pl.cdiv(b, bblk),),
            in_specs=[
                pl.BlockSpec((bblk, c, t), lambda i: (i, 0, 0)),
                pl.BlockSpec((bblk, t, c), lambda i: (i, 0, 0)),
            ],
            out_specs=pl.BlockSpec((bblk, c), lambda i: (i, 0)),
            compiler_params=params,
        )(x_view, x)


# --------------------------------------------------------------------------- references


def _shift_weight_c3(c):
    """The fixed torch.zeros(C,1,3) shift weights, as (C, 3) -- reference only."""
    w = np.zeros((c, 3), np.float32)
    w[: c // 4, 0] = 1.0
    w[c // 4: c // 4 + c // 2, 1] = 1.0
    w[-c // 4:, 2] = 1.0                              # exactly  -embed_dim // 4
    return jnp.asarray(w)


def _reference_conv1d(x):
    """Pure-JAX reference of the Conv_1D branch (for the correctness check)."""
    b, t, c = x.shape
    w = _shift_weight_c3(c)
    xv = x.reshape(b, c, t).astype(jnp.float32)       # torch .view semantics
    pad = jnp.pad(xv, ((0, 0), (0, 0), (1, 1)))
    conv = (w[None, :, 0:1] * pad[:, :, 0:t]
            + w[None, :, 1:2] * pad[:, :, 1:t + 1]
            + w[None, :, 2:3] * pad[:, :, 2:t + 2])   # (B, C, T)
    y = jnp.transpose(conv, (0, 2, 1)).astype(x.dtype) + x   # permute back + residual
    return jnp.mean(y, axis=1).astype(x.dtype)        # (B, C)


# --------------------------------------------------------------------------- self-test


if __name__ == "__main__":
    key = jax.random.PRNGKey(0)
    k_main, k_fb = jax.random.split(key)

    # Conv_1D main (single-stream) path: C % T == 0, multi-block "parallel" grid.
    B, T, C = 16, 8, 128
    x = jax.random.normal(k_main, (B, T, C), dtype=jnp.float32)
    agg = Aggregator(embed_dim=C, mode="Conv_1D", aggr_reduce=True)
    out = jax.block_until_ready(agg(x))
    ref = _reference_conv1d(x)
    assert out.shape == (B, C)
    assert jnp.allclose(out, ref, atol=1e-3, rtol=1e-3), float(jnp.max(jnp.abs(out - ref)))

    # meanP path.
    agg_mean = Aggregator(embed_dim=C, mode="meanP", aggr_reduce=True)
    out_mean = jax.block_until_ready(agg_mean(x))
    assert jnp.allclose(out_mean, jnp.mean(x, axis=1), atol=1e-4, rtol=1e-4)

    # Conv_1D fallback (dual-stream) path: C % T != 0.
    B2, T2, C2 = 4, 8, 100
    x2 = jax.random.normal(k_fb, (B2, T2, C2), dtype=jnp.float32)
    agg2 = Aggregator(embed_dim=C2, mode="Conv_1D", aggr_reduce=True)
    out2 = jax.block_until_ready(agg2(x2))
    assert jnp.allclose(out2, _reference_conv1d(x2), atol=1e-3, rtol=1e-3)

    print("KERNEL_OK")
</pallas_src>

<mosaic_0001>
module attributes {stable_mosaic.version = 11 : i64} {
  func.func @_conv1d_shift_mean_kernel(%arg0: i32, %arg1: memref<8x8x128xf32, #tpu.memory_space<vmem>>, %arg2: memref<8x128x16xf32, #tpu.memory_space<vmem>>, %arg3: memref<8x128xf32, #tpu.memory_space<vmem>>) attributes {dimension_semantics = [#tpu.dimension_semantics<parallel>], iteration_bounds = array<i64: 2>, scalar_prefetch = 0 : i64, scratch_operands = 0 : i64, tpu.core_type = #tpu.core_type<tc>, window_params = [{transform_indices = @transform_0, window_bounds = array<i64: 8, 8, 128>}, {pipeline_mode = #tpu.pipeline_mode<synchronous>, transform_indices = @transform_1, window_bounds = array<i64: 8, 128, 16>}, {transform_indices = @transform_2, window_bounds = array<i64: 8, 128>}]} {
    %c0 = arith.constant 0 : index
    %c0_0 = arith.constant 0 : index
    %c0_1 = arith.constant 0 : index
    %0 = vector.load %arg1[%c0, %c0_0, %c0_1] : memref<8x8x128xf32, #tpu.memory_space<vmem>>, vector<8x8x128xf32>
    %cst = arith.constant dense<0.000000e+00> : vector<8x128xf32>
    %1 = vector.multi_reduction <add>, %0, %cst [1] : vector<8x8x128xf32> to vector<8x128xf32>
    %c0_2 = arith.constant 0 : index
    %c0_3 = arith.constant 0 : index
    %c0_4 = arith.constant 0 : index
    %2 = vector.load %arg1[%c0_2, %c0_3, %c0_4] : memref<8x8x128xf32, #tpu.memory_space<vmem>>, vector<8x1x128xf32>
    %3 = vector.shape_cast %2 : vector<8x1x128xf32> to vector<8x128xf32>
    %c0_5 = arith.constant 0 : index
    %c0_6 = arith.constant 0 : index
    %c0_7 = arith.constant 0 : index
    %4 = vector.load %arg2[%c0_5, %c0_6, %c0_7] : memref<8x128x16xf32, #tpu.memory_space<vmem>>, vector<1x128x16xf32>
    %5 = vector.shape_cast %4 : vector<1x128x16xf32> to vector<128x16xf32>
    %cst_8 = arith.constant dense<0.000000e+00> : vector<8x16xf32>
    %6 = tpu.matmul %3, %5, %cst_8 {dimension_numbers = #tpu.dot_dimension_numbers<[1], [0], [0], [1], [0, 0, 1, 1], [], []>, precision = #tpu.contract_precision<fp32>} : vector<8x128xf32>, vector<128x16xf32>, vector<8x16xf32> -> vector<8x16xf32>
    %c0_9 = arith.constant 0 : index
    %c1 = arith.constant 1 : index
    %c0_10 = arith.constant 0 : index
    %7 = vector.load %arg1[%c0_9, %c1, %c0_10] : memref<8x8x128xf32, #tpu.memory_space<vmem>>, vector<8x1x128xf32>
    %8 = vector.shape_cast %7 : vector<8x1x128xf32> to vector<8x128xf32>
    %c1_11 = arith.constant 1 : index
    %c0_12 = arith.constant 0 : index
    %c0_13 = arith.constant 0 : index
    %9 = vector.load %arg2[%c1_11, %c0_12, %c0_13] : memref<8x128x16xf32, #tpu.memory_space<vmem>>, vector<1x128x16xf32>
    %10 = vector.shape_cast %9 : vector<1x128x16xf32> to vector<128x16xf32>
    %cst_14 = arith.constant dense<0.000000e+00> : vector<8x16xf32>
    %11 = tpu.matmul %8, %10, %cst_14 {dimension_numbers = #tpu.dot_dimension_numbers<[1], [0], [0], [1], [0, 0, 1, 1], [], []>, precision = #tpu.contract_precision<fp32>} : vector<8x128xf32>, vector<128x16xf32>, vector<8x16xf32> -> vector<8x16xf32>
    %c0_15 = arith.constant 0 : index
    %c2 = arith.constant 2 : index
    %c0_16 = arith.constant 0 : index
    %12 = vector.load %arg1[%c0_15, %c2, %c0_16] : memref<8x8x128xf32, #tpu.memory_space<vmem>>, vector<8x1x128xf32>
    %13 = vector.shape_cast %12 : vector<8x1x128xf32> to vector<8x128xf32>
    %c2_17 = arith.constant 2 : index
    %c0_18 = arith.constant 0 : index
    %c0_19 = arith.constant 0 : index
    %14 = vector.load %arg2[%c2_17, %c0_18, %c0_19] : memref<8x128x16xf32, #tpu.memory_space<vmem>>, vector<1x128x16xf32>
    %15 = vector.shape_cast %14 : vector<1x128x16xf32> to vector<128x16xf32>
    %cst_20 = arith.constant dense<0.000000e+00> : vector<8x16xf32>
    %16 = tpu.matmul %13, %15, %cst_20 {dimension_numbers = #tpu.dot_dimension_numbers<[1], [0], [0], [1], [0, 0, 1, 1], [], []>, precision = #tpu.contract_precision<fp32>} : vector<8x128xf32>, vector<128x16xf32>, vector<8x16xf32> -> vector<8x16xf32>
    %c0_21 = arith.constant 0 : index
    %c3 = arith.constant 3 : index
    %c0_22 = arith.constant 0 : index
    %17 = vector.load %arg1[%c0_21, %c3, %c0_22] : memref<8x8x128xf32, #tpu.memory_space<vmem>>, vector<8x1x128xf32>
    %18 = vector.shape_cast %17 : vector<8x1x128xf32> to vector<8x128xf32>
    %c3_23 = arith.constant 3 : index
    %c0_24 = arith.constant 0 : index
    %c0_25 = arith.constant 0 : index
    %19 = vector.load %arg2[%c3_23, %c0_24, %c0_25] : memref<8x128x16xf32, #tpu.memory_space<vmem>>, vector<1x128x16xf32>
    %20 = vector.shape_cast %19 : vector<1x128x16xf32> to vector<128x16xf32>
    %cst_26 = arith.constant dense<0.000000e+00> : vector<8x16xf32>
    %21 = tpu.matmul %18, %20, %cst_26 {dimension_numbers = #tpu.dot_dimension_numbers<[1], [0], [0], [1], [0, 0, 1, 1], [], []>, precision = #tpu.contract_precision<fp32>} : vector<8x128xf32>, vector<128x16xf32>, vector<8x16xf32> -> vector<8x16xf32>
    %c0_27 = arith.constant 0 : index
    %c4 = arith.constant 4 : index
    %c0_28 = arith.constant 0 : index
    %22 = vector.load %arg1[%c0_27, %c4, %c0_28] : memref<8x8x128xf32, #tpu.memory_space<vmem>>, vector<8x1x128xf32>
    %23 = vector.shape_cast %22 : vector<8x1x128xf32> to vector<8x128xf32>
    %c4_29 = arith.constant 4 : index
    %c0_30 = arith.constant 0 : index
    %c0_31 = arith.constant 0 : index
    %24 = vector.load %arg2[%c4_29, %c0_30, %c0_31] : memref<8x128x16xf32, #tpu.memory_space<vmem>>, vector<1x128x16xf32>
    %25 = vector.shape_cast %24 : vector<1x128x16xf32> to vector<128x16xf32>
    %cst_32 = arith.constant dense<0.000000e+00> : vector<8x16xf32>
    %26 = tpu.matmul %23, %25, %cst_32 {dimension_numbers = #tpu.dot_dimension_numbers<[1], [0], [0], [1], [0, 0, 1, 1], [], []>, precision = #tpu.contract_precision<fp32>} : vector<8x128xf32>, vector<128x16xf32>, vector<8x16xf32> -> vector<8x16xf32>
    %c0_33 = arith.constant 0 : index
    %c5 = arith.constant 5 : index
    %c0_34 = arith.constant 0 : index
    %27 = vector.load %arg1[%c0_33, %c5, %c0_34] : memref<8x8x128xf32, #tpu.memory_space<vmem>>, vector<8x1x128xf32>
    %28 = vector.shape_cast %27 : vector<8x1x128xf32> to vector<8x128xf32>
    %c5_35 = arith.constant 5 : index
    %c0_36 = arith.constant 0 : index
    %c0_37 = arith.constant 0 : index
    %29 = vector.load %arg2[%c5_35, %c0_36, %c0_37] : memref<8x128x16xf32, #tpu.memory_space<vmem>>, vector<1x128x16xf32>
    %30 = vector.shape_cast %29 : vector<1x128x16xf32> to vector<128x16xf32>
    %cst_38 = arith.constant dense<0.000000e+00> : vector<8x16xf32>
    %31 = tpu.matmul %28, %30, %cst_38 {dimension_numbers = #tpu.dot_dimension_numbers<[1], [0], [0], [1], [0, 0, 1, 1], [], []>, precision = #tpu.contract_precision<fp32>} : vector<8x128xf32>, vector<128x16xf32>, vector<8x16xf32> -> vector<8x16xf32>
    %c0_39 = arith.constant 0 : index
    %c6 = arith.constant 6 : index
    %c0_40 = arith.constant 0 : index
    %32 = vector.load %arg1[%c0_39, %c6, %c0_40] : memref<8x8x128xf32, #tpu.memory_space<vmem>>, vector<8x1x128xf32>
    %33 = vector.shape_cast %32 : vector<8x1x128xf32> to vector<8x128xf32>
    %c6_41 = arith.constant 6 : index
    %c0_42 = arith.constant 0 : index
    %c0_43 = arith.constant 0 : index
    %34 = vector.load %arg2[%c6_41, %c0_42, %c0_43] : memref<8x128x16xf32, #tpu.memory_space<vmem>>, vector<1x128x16xf32>
    %35 = vector.shape_cast %34 : vector<1x128x16xf32> to vector<128x16xf32>
    %cst_44 = arith.constant dense<0.000000e+00> : vector<8x16xf32>
    %36 = tpu.matmul %33, %35, %cst_44 {dimension_numbers = #tpu.dot_dimension_numbers<[1], [0], [0], [1], [0, 0, 1, 1], [], []>, precision = #tpu.contract_precision<fp32>} : vector<8x128xf32>, vector<128x16xf32>, vector<8x16xf32> -> vector<8x16xf32>
    %c0_45 = arith.constant 0 : index
    %c7 = arith.constant 7 : index
    %c0_46 = arith.constant 0 : index
    %37 = vector.load %arg1[%c0_45, %c7, %c0_46] : memref<8x8x128xf32, #tpu.memory_space<vmem>>, vector<8x1x128xf32>
    %38 = vector.shape_cast %37 : vector<8x1x128xf32> to vector<8x128xf32>
    %c7_47 = arith.constant 7 : index
    %c0_48 = arith.constant 0 : index
    %c0_49 = arith.constant 0 : index
    %39 = vector.load %arg2[%c7_47, %c0_48, %c0_49] : memref<8x128x16xf32, #tpu.memory_space<vmem>>, vector<1x128x16xf32>
    %40 = vector.shape_cast %39 : vector<1x128x16xf32> to vector<128x16xf32>
    %cst_50 = arith.constant dense<0.000000e+00> : vector<8x16xf32>
    %41 = tpu.matmul %38, %40, %cst_50 {dimension_numbers = #tpu.dot_dimension_numbers<[1], [0], [0], [1], [0, 0, 1, 1], [], []>, precision = #tpu.contract_precision<fp32>} : vector<8x128xf32>, vector<128x16xf32>, vector<8x16xf32> -> vector<8x16xf32>
    %42 = tpu.concatenate %6, %11, %16, %21, %26, %31, %36, %41 in 1 : vector<8x16xf32>, vector<8x16xf32>, vector<8x16xf32>, vector<8x16xf32>, vector<8x16xf32>, vector<8x16xf32>, vector<8x16xf32>, vector<8x16xf32> -> vector<8x128xf32>
    %43 = arith.addf %42, %1 : vector<8x128xf32>
    %cst_51 = arith.constant 1.250000e-01 : f32
    %44 = vector.broadcast %cst_51 : f32 to vector<8x128xf32>
    %45 = arith.mulf %43, %44 : vector<8x128xf32>
    %c0_52 = arith.constant 0 : index
    %c0_53 = arith.constant 0 : index
    %46 = vector.load %arg3[%c0_52, %c0_53] : memref<8x128xf32, #tpu.memory_space<vmem>>, vector<8x128xf32>
    tpu.vector_store %arg3[%c0_52, %c0_53], %45 {strides = array<i32>} : memref<8x128xf32, #tpu.memory_space<vmem>>, vector<8x128xf32>,
    return
  }
  func.func @transform_0(%arg0: i32) -> (i32, i32, i32) {
    %c0_i32 = arith.constant 0 : i32
    %c0_i32_0 = arith.constant 0 : i32
    %c0_i32_1 = arith.constant 0 : i32
    return %arg0, %c0_i32, %c0_i32_0 : i32, i32, i32
  }
  func.func @transform_1(%arg0: i32) -> (i32, i32, i32) {
    %c0_i32 = arith.constant 0 : i32
    %c0_i32_0 = arith.constant 0 : i32
    %c0_i32_1 = arith.constant 0 : i32
    %c0_i32_2 = arith.constant 0 : i32
    return %c0_i32, %c0_i32_0, %c0_i32_1 : i32, i32, i32
  }
  func.func @transform_2(%arg0: i32) -> (i32, i32) {
    %c0_i32 = arith.constant 0 : i32
    %c0_i32_0 = arith.constant 0 : i32
    return %arg0, %c0_i32 : i32, i32
  }
}

</mosaic_0001>

<bundles_post_ra>
// kernel: tpu_custom_call.1
= control target key start
LH: loop header
LB: loop body
LE: loop exit
PB: predicated region body
PF: predicated region fallthrough
CT: control target
= control target key end

     0   :  { %7 = vsyncpa [#allocation3], 0  ;;  %s12974_s0 = inlined_call_operand.vmem [shape: f32[16,8,128], index: 0, kind: input, shape index: {}]   ;;  %s12975_s1 = inlined_call_operand.vmem [shape: f32[8,128,16], index: 1, kind: input, shape index: {}]   ;;  %s12976_s2 = inlined_call_operand.hbm [shape: f32[16,128], index: 2, kind: output, shape index: {}]  }
   0x1   :  { %9 = vsyncpa [#allocation3 + $0x1], 0  ;;  %s9842_s9 = smov 0   ;;  %s9844_s10 = smov 0  }
   0x2   :  { %s9846_s11 = smov 0   ;;  %s9848_s12 = smov 0  }
   0x3 LB: > { %s9863_s13 = sadd.s32 4294967295, %s9814_s12   ;;  %s5852_s14 = sadd.s32 4294967294, %s9814_s12   ;;  %s9814_s12 = sphi %s9848_s12, %s13517_s12   ;;  %s9810_s11 = sphi %s9846_s11, %s13516_s11   ;;  %s9806_s10 = sphi %s9844_s10, %s13515_s10   ;;  %s9802_s9 = sphi %s9842_s9, %s13514_s9  }
   0x4   : > { %s9867_s15 = sadd.s32 1, %s9814_s12   ;;  %s69_s16 = sadd.s32 1, %s9810_s11 }
   0x5   : > { %s66_s17 = ssub.s32 %s9814_s12, %s9867_s15  ;;  %p79_p0 = scmp.ne.s32.totalorder %s9810_s11, %s9806_s10 }
   0x6   : > { %p67_p1 = scmp.eq.s32.totalorder %s66_s17, 0  ;;  %p80_p2 = scmp.eq.s32.totalorder %s9863_s13, 1 }
   0x7   : > { %p85_p3 = scmp.ne.s32.totalorder %s9806_s10, %s9802_s9  ;;  %p86_p4 = scmp.eq.s32.totalorder %s5852_s14, 1 }
   0x8   : > { %s9878_s18 = scalar_select %p67_p1, %s9810_s11, %s69_s16  }
   0x9   : > { %p9880_p5 = por %p80_p2, %p79_p0  ;;  %p9884_p6 = por %p86_p4, %p85_p3 }
   0xa   : > { %p5855_p7 = scmp.ge.s32.totalorder %s9814_s12, 1  ;;  %p116_p8 = scmp.lt.s32.totalorder %s9814_s12, 3 }
   0xc   : > { %p117_p9 = pnand %p5855_p7, %p116_p8 }
   0xe   : > { %120 = sbr.rel (%p117_p9) target bundleno = 1148 (0x47c), region = 28 }
  0x15   : > { %v208_v0 = vld [vmem:[%s12975_s1] sm:$0xff]  ;;  %v209_v1 = vld [vmem:[%s12975_s1 + $0x8] sm:$0xff]  ;;  %v12992_v3 = vmov 0.0|0.0   ;;  %v210_v8 = vld [vmem:[%s12975_s1 + $0x10] sm:$0xff]  ;;  %vm9817_vm0 = vmmov 0   ;;  %v12977_v16 = vmov 0.0  }
  0x16   : > { %v5859_v2 = vld [vmem:[%s12975_s1 + $0x80] sm:$0xff]  ;;  %8471 = vmatprep.subr.bf16.mxu0 %v12992_v3  ;;  %8615 = vmatprep.subr.bf16.mxu1 %v12992_v3  ;;  %v255_v4 = vand.u32 4294901760, %v208_v0  ;;  %v258_v5 = vand.u32 4294901760, %v209_v1  ;;  %v5860_v6 = vld [vmem:[%s12975_s1 + $0x88] sm:$0xff]  ;;  %v211_v9 = vld [vmem:[%s12975_s1 + $0x18] sm:$0xff]  ;;  %v261_v11 = vand.u32 4294901760, %v210_v8 }
  0x17   : > { %v944_v7 = vand.u32 4294901760, %v5859_v2  ;;  %v947_v10 = vand.u32 4294901760, %v5860_v6  ;;  %v264_v12 = vand.u32 4294901760, %v211_v9  ;;  %v5861_v13 = vld [vmem:[%s12975_s1 + $0x90] sm:$0xff]  ;;  %v5862_v14 = vld [vmem:[%s12975_s1 + $0x98] sm:$0xff]  ;;  %v212_v15 = vld [vmem:[%s12975_s1 + $0x20] sm:$0xff]  ;;  %6823 = vmatprep.mubr.msk.f32.mxu0 %vm9817_vm0, %v12977_v16  ;;  %7033 = vmatprep.mubr.msk.f32.mxu1 %vm9817_vm0, %v12977_v16 }
  0x18   : > { %v9923_v17 = vpack.c.bf16 %v258_v5, %v255_v4  ;;  %v213_v18 = vld [vmem:[%s12975_s1 + $0x28] sm:$0xff]  ;;  %v5863_v19 = vld [vmem:[%s12975_s1 + $0xa0] sm:$0xff]  ;;  %s5857_s26 = sshll.u32 %s9863_s13, 3  ;;  %v9935_v21 = vsub.f32 %v208_v0, %v255_v4  ;;  %v9937_v22 = vsub.f32 %v209_v1, %v258_v5  ;;  %v214_v25 = vld [vmem:[%s12975_s1 + $0x30] sm:$0xff]  ;;  %v950_v27 = vand.u32 4294901760, %v5861_v13  ;;  %s9819_s14 = smov 16  }
  0x19   : > { %v5864_v20 = vld [vmem:[%s12975_s1 + $0xa8] sm:$0xff]  ;;  %v9939_v23 = vpack.c.bf16 %v947_v10, %v944_v7  ;;  %v9941_v24 = vsub.f32 %v5859_v2, %v944_v7  ;;  %p9946_p10 = scmp.lt.s32.totalorder %s5857_s26, 15  ;;  %v9951_v26 = vpack.c.bf16 %v264_v12, %v261_v11  ;;  %v953_v28 = vand.u32 4294901760, %v5862_v14  ;;  %v215_v34 = vld [vmem:[%s12975_s1 + $0x38] sm:$0xff]  ;;  %v5865_v35 = vld [vmem:[%s12975_s1 + $0xb0] sm:$0xff]  ;;  %s9820_s22 = smov 32  }
  0x1a   : > { %13160 = vst [vmem:[#allocation5_spill] sm:$0xff] %v9923_v17  ;;  %8473 = vmatpush3.bf16.msra.mxu0 %v9923_v17  ;;  %v267_v29 = vand.u32 4294901760, %v212_v15  ;;  %v9954_v30 = vsub.f32 %v5860_v6, %v947_v10  ;;  %v270_v31 = vand.u32 4294901760, %v213_v18  ;;  %v956_v32 = vand.u32 4294901760, %v5863_v19  ;;  %v5866_v40 = vld [vmem:[%s12975_s1 + $0xb8] sm:$0xff]  ;;  %v216_v41 = vld [vmem:[%s12975_s1 + $0x40] sm:$0xff] }
  0x1b   : > { %13161 = vst [vmem:[#allocation6_spill] sm:$0xff] %v9939_v23  ;;  %13163 = vst [vmem:[#allocation7_spill] sm:$0xff] %v9951_v26  ;;  %8617 = vmatpush3.bf16.msra.mxu1 %v9939_v23  ;;  %8474 = vmatprep.subr.bf16.mxu0 %v12992_v3  ;;  %v959_v33 = vand.u32 4294901760, %v5864_v20  ;;  %v9964_v36 = vsub.f32 %v210_v8, %v261_v11  ;;  %v9966_v37 = vsub.f32 %v211_v9, %v264_v12  ;;  %v217_v42 = vld [vmem:[%s12975_s1 + $0x48] sm:$0xff]  ;;  %s13519_s26 = smov (!%p9946_p10, %s5857_s26), 15  ;;  %v5867_v47 = vld [vmem:[%s12975_s1 + $0xc0] sm:$0xff] }
  0x1c   : > { %8618 = vmatprep.subr.bf16.mxu1 %v12992_v3  ;;  %v9968_v38 = vpack.c.bf16 %v953_v28, %v950_v27  ;;  %v273_v39 = vand.u32 4294901760, %v214_v25  ;;  %v9983_v43 = vsub.f32 %v5861_v13, %v950_v27  ;;  %v9985_v44 = vsub.f32 %v5862_v14, %v953_v28  ;;  %v5868_v48 = vld [vmem:[%s12975_s1 + $0xc8] sm:$0xff]  ;;  %v218_v57 = vld [vmem:[%s12975_s1 + $0x50] sm:$0xff]  ;;  %v219_v62 = vld [vmem:[%s12975_s1 + $0x58] sm:$0xff]  ;;  %s5858_s6 = sshll.u32 %s13519_s26, 3  ;;  %s9821_s3 = smov 48  }
  0x1d   : > { %v9987_v45 = vpack.c.bf16 %v270_v31, %v267_v29  ;;  %v9989_v46 = vsub.f32 %v212_v15, %v267_v29  ;;  %v9998_v49 = vsub.f32 %v213_v18, %v270_v31  ;;  %v10000_v50 = vpack.c.bf16 %v959_v33, %v956_v32  ;;  %v5869_v63 = vld [vmem:[%s12975_s1 + $0xd0] sm:$0xff]  ;;  %v5870_v0 = vld [vmem:[%s12975_s1 + $0xd8] sm:$0xff]  ;;  %v220_v6 = vld [vmem:[%s12975_s1 + $0x60] sm:$0xff]  ;;  %s10058_s25 = scalar_lea.vmem %s12974_s0, %s5858_s6  ;;  %s9822_s4 = smov 64  }
  0x1e   : > { %13164 = vst [vmem:[#allocation8_spill] sm:$0xff] %v9968_v38  ;;  %8476 = vmatpush3.bf16.msra.mxu0 %v9951_v26  ;;  %v276_v51 = vand.u32 4294901760, %v215_v34  ;;  %v962_v52 = vand.u32 4294901760, %v5865_v35  ;;  %v10004_v53 = vsub.f32 %v5863_v19, %v956_v32  ;;  %v965_v54 = vand.u32 4294901760, %v5866_v40  ;;  %v221_v7 = vld [vmem:[%s12975_s1 + $0x68] sm:$0xff]  ;;  %v5871_v12 = vld [vmem:[%s12975_s1 + $0xe0] sm:$0xff] }
  0x1f   : > { %13165 = vst [vmem:[#allocation9_spill] sm:$0xff] %v9987_v45  ;;  %13166 = vst [vmem:[#allocation10_spill] sm:$0xff] %v10000_v50  ;;  %8620 = vmatpush3.bf16.msra.mxu1 %v9968_v38  ;;  %8477 = vmatprep.subr.bf16.mxu0 %v12992_v3  ;;  %v279_v55 = vand.u32 4294901760, %v216_v41  ;;  %v282_v56 = vand.u32 4294901760, %v217_v42  ;;  %v10010_v58 = vsub.f32 %v5864_v20, %v959_v33  ;;  %v968_v60 = vand.u32 4294901760, %v5867_v47  ;;  %v5872_v13 = vld [vmem:[%s12975_s1 + $0xe8] sm:$0xff] }
  0x20   : > { %8621 = vmatprep.subr.bf16.mxu1 %v12992_v3  ;;  %v10012_v59 = vsub.f32 %v214_v25, %v273_v39  ;;  %v971_v61 = vand.u32 4294901760, %v5868_v48  ;;  %v10024_v1 = vpack.c.bf16 %v276_v51, %v273_v39  ;;  %v10026_v2 = vsub.f32 %v215_v34, %v276_v51  ;;  %v222_v29 = vld [vmem:[%s12975_s1 + $0x70] sm:$0xff]  ;;  %v201_v51 = vld [vmem:[%s10058_s25 + $0x8] sm:$0x1]  ;;  %s9823_s5 = smov 80   ;;  %s9824_s6 = smov 96  }
  0x21   : > { %v10028_v4 = vpack.c.bf16 %v965_v54, %v962_v52  ;;  %v10030_v5 = vsub.f32 %v5865_v35, %v962_v52  ;;  %v10039_v8 = vsub.f32 %v5866_v40, %v965_v54  ;;  %v10041_v9 = vpack.c.bf16 %v282_v56, %v279_v55  ;;  %v10075_v35 = vld [vmem:[%s12975_s1 + $0x78] sm:$0xff]  ;;  %v10080_v39 = vld [vmem:[%s12975_s1 + $0xf0] sm:$0xff]  ;;  %s9825_s7 = smov 112  }
  0x22   : > { %13167 = vst [vmem:[#allocation11_spill] sm:$0xff] %v10024_v1  ;;  %8479 = vmatpush3.bf16.msra.mxu0 %v9987_v45  ;;  %v10043_v10 = vsub.f32 %v216_v41, %v279_v55  ;;  %v10045_v11 = vsub.f32 %v217_v42, %v282_v56  ;;  %v285_v14 = vand.u32 4294901760, %v218_v57  ;;  %v288_v15 = vand.u32 4294901760, %v219_v62  ;;  %v10085_v40 = vld [vmem:[%s12975_s1 + $0xf8] sm:$0xff]  ;;  %v202_v52 = vld [vmem:[%s10058_s25 + $0x10] sm:$0x1] }
  0x23   : > { %13168 = vst [vmem:[#allocation12_spill] sm:$0xff] %v10028_v4  ;;  %13169 = vst [vmem:[#allocation13_spill] sm:$0xff] %v10041_v9  ;;  %8623 = vmatpush3.bf16.msra.mxu1 %v10000_v50  ;;  %8480 = vmatprep.subr.bf16.mxu0 %v12992_v3  ;;  %v974_v18 = vand.u32 4294901760, %v5869_v63  ;;  %v977_v19 = vand.u32 4294901760, %v5870_v0  ;;  %v10061_v20 = vpack.c.bf16 %v971_v61, %v968_v60  ;;  %v291_v27 = vand.u32 4294901760, %v220_v6 }
  0x24   : > { %8624 = vmatprep.subr.bf16.mxu1 %v12992_v3  ;;  %v10063_v25 = vsub.f32 %v5867_v47, %v968_v60  ;;  %v294_v28 = vand.u32 4294901760, %v221_v7  ;;  %v10068_v31 = vsub.f32 %v5868_v48, %v971_v61  ;;  %v10070_v32 = vpack.c.bf16 %v288_v15, %v285_v14  ;;  %v200_v60 = vld [vmem:[%s10058_s25] sm:$0x1] }
  0x25   : > { %13170 = vst [vmem:[#allocation14_spill] sm:$0xff] %v10061_v20  ;;  %v980_v33 = vand.u32 4294901760, %v5871_v12  ;;  %v983_v34 = vand.u32 4294901760, %v5872_v13  ;;  %v10088_v41 = vsub.f32 %v218_v57, %v285_v14  ;;  %v10090_v42 = vsub.f32 %v219_v62, %v288_v15  ;;  %v203_v14 = vld [vmem:[%s10058_s25 + $0x18] sm:$0x1] }
  0x26   : > { %13171 = vst [vmem:[#allocation15_spill] sm:$0xff] %v10070_v32  ;;  %8482 = vmatpush3.bf16.msra.mxu0 %v10024_v1  ;;  %v10092_v47 = vpack.c.bf16 %v977_v19, %v974_v18  ;;  %v10094_v48 = vsub.f32 %v5869_v63, %v974_v18  ;;  %v10100_v54 = vsub.f32 %v5870_v0, %v977_v19  ;;  %v297_v57 = vand.u32 4294901760, %v222_v29  ;;  %v205_v0 = vld [vmem:[%s10058_s25 + $0x28] sm:$0x1]  ;;  %v206_v63 = vld [vmem:[%s10058_s25 + $0x30] sm:$0x1] }
  0x27   : > { %8626 = vmatpush3.bf16.msra.mxu1 %v10028_v4  ;;  %8483 = vmatprep.subr.bf16.mxu0 %v12992_v3  ;;  %v10102_v55 = vpack.c.bf16 %v294_v28, %v291_v27  ;;  %v10104_v56 = vsub.f32 %v220_v6, %v291_v27  ;;  %v10108_v61 = vsub.f32 %v221_v7, %v294_v28  ;;  %v12979_v62 = vand.u32 4294901760, %v10075_v35  ;;  %v204_v6 = vld [vmem:[%s10058_s25 + $0x20] sm:$0x1]  ;;  %v895_v4 = vld [vmem:[%s10058_s25 + $0x1] sm:$0x1] }
  0x28   : > { %13172 = vst [vmem:[#allocation16_spill] sm:$0xff] %v10092_v47  ;;  %8627 = vmatprep.subr.bf16.mxu1 %v12992_v3  ;;  %v10114_v15 = vpack.c.bf16 %v983_v34, %v980_v33  ;;  %v232_v18 = vrot.slane %v201_v51, 7  ;;  %vm233_vm1 = vcmask 1041409   ;;  %v235_v19 = vrot.slane %v202_v52, 6  ;;  %v207_v51 = vld [vmem:[%s10058_s25 + $0x38] sm:$0x1] }
  0x29   : > { %13173 = vst [vmem:[#allocation17_spill] sm:$0xff] %v10102_v55  ;;  %v10118_v7 = vsub.f32 %v5871_v12, %v980_v33  ;;  %v10120_v27 = vsub.f32 %v5872_v13, %v983_v34  ;;  %v10124_v28 = vpack.c.bf16 %v12979_v62, %v297_v57  ;;  %v10126_v16 = vsub.f32 %v222_v29, %v297_v57  ;;  %v896_v52 = vld [vmem:[%s10058_s25 + $0x9] sm:$0x1]  ;;  %v897_v57 = vld [vmem:[%s10058_s25 + $0x11] sm:$0x1] }
  0x2a   : > { %13174 = vst [vmem:[#allocation18_spill] sm:$0xff] %v10114_v15  ;;  %8485 = vmatpush3.bf16.msra.mxu0 %v10041_v9  ;;  %v13178_v12 = vand.u32 4294901760, %v10080_v39  ;;  %v13179_v13 = vand.u32 4294901760, %v10085_v40  ;;  %v234_v34 = vsel %vm233_vm1, %v232_v18, %v200_v60  ;;  %vm236_vm2 = vcmask 1042434   ;;  %v898_v9 = vld [vmem:[%s10058_s25 + $0x19] sm:$0x1] }
  0x2b   : > { %13175 = vst [vmem:[#allocation19_spill] sm:$0xff] %v10118_v7  ;;  %13176 = vst [vmem:[#allocation20_spill] sm:$0xff] %v10120_v27  ;;  %8629 = vmatpush3.bf16.msra.mxu1 %v10061_v20  ;;  %8486 = vmatprep.subr.bf16.mxu0 %v12992_v3  ;;  %v238_v29 = vrot.slane %v203_v14, 5  ;;  %v237_v62 = vsel %vm236_vm2, %v235_v19, %v234_v34  ;;  %vm239_vm3 = vcmask 1043459   ;;  %v241_v20 = vrot.slane %v204_v6, 4 }
  0x2c   : > { %13177 = vst [vmem:[#allocation21_spill] sm:$0xff] %v10124_v28  ;;  %v10137_v33 = vpack.c.bf16 %v13179_v13, %v13178_v12  ;;  %8630 = vmatprep.subr.bf16.mxu1 %v12992_v3  ;;  %vm242_vm4 = vcmask 1044484   ;;  %v244_v13 = vrot.slane %v205_v0, 3  ;;  %vm245_vm5 = vcmask 1045509   ;;  %v899_v18 = vld [vmem:[%s10058_s25 + $0x21] sm:$0x1] }
  0x2d   : > { %v240_v12 = vsel %vm239_vm3, %v238_v29, %v237_v62  ;;  %v247_v60 = vrot.slane %v206_v63, 2  ;;  %vm248_vm6 = vcmask 1046534   ;;  %v250_v19 = vrot.slane %v207_v51, 1  ;;  %v900_v34 = vld [vmem:[%s10058_s25 + $0x29] sm:$0x1] }
  0x2e   : > { %13180 = vst [vmem:[#allocation22_spill] sm:$0xff] %v10137_v33  ;;  %8488 = vmatpush3.bf16.msra.mxu0 %v10070_v32  ;;  %v243_v14 = vsel %vm242_vm4, %v241_v20, %v240_v12  ;;  %vm251_vm7 = vcmask 1047559   ;;  %v12994_v0 = vand.u32 4294901760, %v9935_v21  ;;  %v12999_v63 = vand.u32 4294901760, %v9937_v22  ;;  %v901_v6 = vld [vmem:[%s10058_s25 + $0x31] sm:$0x1] }
  0x2f   : > { %8632 = vmatpush3.bf16.msra.mxu1 %v10092_v47  ;;  %8489 = vmatprep.subr.bf16.mxu0 %v12992_v3  ;;  %v246_v62 = vsel %vm245_vm5, %v244_v13, %v243_v14  ;;  %v928_v29 = vrot.slane %v896_v52, 7  ;;  %v902_v12 = vld [vmem:[%s10058_s25 + $0x39] sm:$0x1]  ;;  %v930_v51 = vrot.slane %v897_v57, 6  ;;  %v932_v32 = vrot.slane %v898_v9, 5 }
  0x30   : > { %8633 = vmatprep.subr.bf16.mxu1 %v12992_v3  ;;  %v249_v20 = vsel %vm248_vm6, %v247_v60, %v246_v62  ;;  %v934_v50 = vrot.slane %v899_v18, 4  ;;  %v349_v13 = vsub.f32 %v9935_v21, %v12994_v0  ;;  %v356_v14 = vsub.f32 %v9937_v22, %v12999_v63 }
  0x31   : > { %v252_v47 = vsel %vm251_vm7, %v250_v19, %v249_v20  ;;  %v929_v52 = vsel %vm233_vm1, %v928_v29, %v895_v4  ;;  %v936_v9 = vrot.slane %v900_v34, 3  ;;  %v938_v60 = vrot.slane %v901_v6, 2 }
  0x32   : > { %8491 = vmatpush3.bf16.msra.mxu0 %v10102_v55  ;;  %v10169_v3 = vand.u32 4294901760, %v252_v47  ;;  %v931_v57 = vsel %vm236_vm2, %v930_v51, %v929_v52  ;;  %v13181_v18 = vmov 0.0|0.0   ;;  %v350_v19 = vand.u32 4294901760, %v349_v13 }
  0x33   : > { %8635 = vmatpush3.bf16.msra.mxu1 %v10114_v15  ;;  %8492 = vmatprep.subr.bf16.mxu0 %v13181_v18  ;;  %v357_v62 = vand.u32 4294901760, %v356_v14  ;;  %v933_v20 = vsel %vm239_vm3, %v932_v32, %v931_v57  ;;  %v940_v0 = vrot.slane %v902_v12, 1  ;;  %v12998_v51 = vand.u32 4294901760, %v9941_v24 }
  0x34   : > { %8636 = vmatprep.subr.bf16.mxu1 %v13181_v18  ;;  %v10177_v4 = vsub.f32 %v252_v47, %v10169_v3  ;;  %v935_v29 = vsel %vm242_vm4, %v934_v50, %v933_v20  ;;  %v12995_v34 = vand.u32 4294901760, %v9954_v30  ;;  %v13183_v6 = vand.u32 4294901760, %v10075_v35 }
  0x35   : > { %v937_v13 = vsel %vm245_vm5, %v936_v9, %v935_v29  ;;  %v12996_v32 = vand.u32 4294901760, %v9964_v36  ;;  %v12997_v12 = vand.u32 4294901760, %v9966_v37  ;;  %v1038_v14 = vsub.f32 %v9941_v24, %v12998_v51 }
  0x36   : > { %13182 = vst [vmem:[#allocation23_spill] sm:$0xff] %v10177_v4  ;;  %v10185_v52 = vsub.f32 %v10075_v35, %v13183_v6  ;;  %8494 = vmatpush3.bf16.msra.mxu0 %v10124_v28  ;;  %v13004_v47 = vand.u32 4294901760, %v10177_v4  ;;  %v939_v50 = vsel %vm248_vm6, %v938_v60, %v937_v13  ;;  %v1045_v35 = vsub.f32 %v9954_v30, %v12995_v34 }
  0x37   : > { %8638 = vmatpush3.bf16.msra.mxu1 %v10137_v33  ;;  %8495 = vmatprep.subr.bf16.mxu0 %v13181_v18  ;;  %v941_v57 = vsel %vm251_vm7, %v940_v0, %v939_v50  ;;  %v363_v9 = vsub.f32 %v9964_v36, %v12996_v32  ;;  %v370_v60 = vsub.f32 %v9966_v37, %v12997_v12  ;;  %v13008_v20 = vand.u32 4294901760, %v9983_v43 }
  0x38   : > { %8639 = vmatprep.subr.bf16.mxu1 %v13181_v18  ;;  %v338_v29 = vsub.f32 %v10177_v4, %v13004_v47  ;;  %v8496_v6 = vpack.c.bf16 %v357_v62, %v350_v19  ;;  %v10213_v13 = vand.u32 4294901760, %v941_v57  ;;  %v1039_v0 = vand.u32 4294901760, %v1038_v14 }
  0x39   : > { %v364_v50 = vand.u32 4294901760, %v363_v9  ;;  %v371_v34 = vand.u32 4294901760, %v370_v60  ;;  %v1052_v32 = vsub.f32 %v9983_v43, %v13008_v20  ;;  %v13006_v12 = vand.u32 4294901760, %v9985_v44 }
  0x3a   : > { %v339_v51 = vand.u32 4294901760, %v338_v29  ;;  %v10220_v63 = vsub.f32 %v941_v57, %v10213_v13  ;;  %v1046_v33 = vand.u32 4294901760, %v1045_v35  ;;  %v13005_v15 = vand.u32 4294901760, %v9989_v46 }
  0x3b   : > { %v8499_v47 = vpack.c.bf16 %v371_v34, %v364_v50  ;;  %v1053_v19 = vand.u32 4294901760, %v1052_v32  ;;  %v1059_v62 = vsub.f32 %v9985_v44, %v13006_v12  ;;  %v13007_v14 = vand.u32 4294901760, %v9998_v49 }
  0x3c   : > { %13184 = vst [vmem:[#allocation24_spill] sm:$0xff] %v10220_v63  ;;  %6824 = vmatmul.mubr.f32.vlgmr.msra.gmra.mrb[0].mxu0 %v339_v51  ;;  %v13011_v9 = vand.u32 4294901760, %v10220_v63  ;;  %v377_v60 = vsub.f32 %v9989_v46, %v13005_v15  ;;  %v13018_v57 = vand.u32 4294901760, %v10004_v53  ;;  %v13031_v35 = vand.u32 4294901760, %v10010_v58 }
  0x3d   : > { %8497 = vmatpush3.bf16.msra.mxu0 %v8496_v6  ;;  %v1060_v34 = vand.u32 4294901760, %v1059_v62  ;;  %v384_v32 = vsub.f32 %v9998_v49, %v13007_v14  ;;  %v13030_v29 = vand.u32 4294901760, %v10012_v59  ;;  %v13185_v50 = vmov 0.0  }
  0x3e   : > { %6858 = vmatprep.mubr.msk.f32.mxu0 %vm9817_vm0, %v13185_v50  ;;  %v1027_v15 = vsub.f32 %v10220_v63, %v13011_v9  ;;  %8498 = vmatprep.subr.bf16.mxu0 %v13181_v18  ;;  %v378_v12 = vand.u32 4294901760, %v377_v60  ;;  %v1066_v6 = vsub.f32 %v10004_v53, %v13018_v57  ;;  %v1073_v62 = vsub.f32 %v10010_v58, %v13031_v35 }
  0x3f   : > { %v8640_v14 = vpack.c.bf16 %v1046_v33, %v1039_v0  ;;  %v385_v20 = vand.u32 4294901760, %v384_v32  ;;  %v391_v51 = vsub.f32 %v10012_v59, %v13030_v29  ;;  %v13186_v28 = vand.u32 4294901760, %v10026_v2 }
  0x40   : > { %v1028_v55 = vand.u32 4294901760, %v1027_v15  ;;  %v8643_v60 = vpack.c.bf16 %v1060_v34, %v1053_v19  ;;  %v1067_v1 = vand.u32 4294901760, %v1066_v6  ;;  %v13029_v38 = vand.u32 4294901760, %v10030_v5 }
  0x41   : > { %v398_v9 = vsub.f32 %v10026_v2, %v13186_v28  ;;  %8500 = vmatpush3.bf16.msra.mxu0 %v8499_v47  ;;  %v8502_v57 = vpack.c.bf16 %v385_v20, %v378_v12  ;;  %v392_v45 = vand.u32 4294901760, %v391_v51  ;;  %v13027_v33 = vand.u32 4294901760, %v10039_v8 }
  0x42   : > { %7034 = vmatmul.mubr.f32.vlgmr.msra.gmra.mrb[0].mxu1 %v1028_v55  ;;  %8501 = vmatprep.subr.bf16.mxu0 %v13181_v18  ;;  %v1074_v0 = vand.u32 4294901760, %v1073_v62  ;;  %v1080_v32 = vsub.f32 %v10030_v5, %v13029_v38  ;;  %v13025_v15 = vand.u32 4294901760, %v10043_v10  ;;  %v13023_v28 = vand.u32 4294901760, %v10045_v11 }
  0x43   : > { %v399_v23 = vand.u32 4294901760, %v398_v9  ;;  %8641 = vmatpush3.bf16.msra.mxu1 %v8640_v14  ;;  %v1087_v12 = vsub.f32 %v10039_v8, %v13027_v33  ;;  %v13024_v47 = vand.u32 4294901760, %v10063_v25  ;;  %v13026_v55 = vand.u32 4294901760, %v10068_v31  ;;  %7068 = vmatprep.mubr.msk.f32.mxu1 %vm9817_vm0, %v13185_v50 }
  0x44   : > { %8642 = vmatprep.subr.bf16.mxu1 %v13181_v18  ;;  %v1081_v20 = vand.u32 4294901760, %v1080_v32  ;;  %v405_v9 = vsub.f32 %v10043_v10, %v13025_v15  ;;  %v13034_v6 = vand.u32 4294901760, %v10090_v42  ;;  %v13188_v15 = vand.u32 4294901760, %v10085_v40 }
  0x45   : > { %v8505_v19 = vpack.c.bf16 %v399_v23, %v392_v45  ;;  %v412_v23 = vsub.f32 %v10045_v11, %v13023_v28  ;;  %v13028_v45 = vand.u32 4294901760, %v10088_v41  ;;  %8503 = vmatpush3.bf16.msra.mxu0 %v8502_v57  ;;  %v1088_v14 = vand.u32 4294901760, %v1087_v12 }
  0x46   : > { %v1094_v34 = vsub.f32 %v10063_v25, %v13024_v47  ;;  %v1101_v51 = vsub.f32 %v10068_v31, %v13026_v55  ;;  %8504 = vmatprep.subr.bf16.mxu0 %v13181_v18  ;;  %v406_v62 = vand.u32 4294901760, %v405_v9  ;;  %v13033_v57 = vand.u32 4294901760, %v10094_v48 }
  0x47   : > { %v413_v32 = vand.u32 4294901760, %v412_v23  ;;  %v419_v28 = vsub.f32 %v10088_v41, %v13028_v45  ;;  %v13187_v12 = vand.u32 4294901760, %v10080_v39  ;;  %v10299_v55 = vsub.f32 %v10085_v40, %v13188_v15  ;;  %8644 = vmatpush3.bf16.msra.mxu1 %v8643_v60 }
  0x48   : > { %v8646_v33 = vpack.c.bf16 %v1074_v0, %v1067_v1  ;;  %v426_v9 = vsub.f32 %v10090_v42, %v13034_v6  ;;  %8645 = vmatprep.subr.bf16.mxu1 %v13181_v18  ;;  %v8649_v23 = vpack.c.bf16 %v1088_v14, %v1081_v20  ;;  %v1095_v45 = vand.u32 4294901760, %v1094_v34 }
  0x49   : > { %v10294_v47 = vsub.f32 %v10080_v39, %v13187_v12  ;;  %v420_v38 = vand.u32 4294901760, %v419_v28  ;;  %v13032_v29 = vand.u32 4294901760, %v10100_v54  ;;  %8506 = vmatpush3.bf16.msra.mxu0 %v8505_v19  ;;  %v8508_v39 = vpack.c.bf16 %v413_v32, %v406_v62 }
  0x4a   : > { %v427_v12 = vand.u32 4294901760, %v426_v9  ;;  %v432_v35 = vand.u32 4294901760, %v10104_v56  ;;  %v439_v40 = vand.u32 4294901760, %v10108_v61  ;;  %8507 = vmatprep.subr.bf16.mxu0 %v13181_v18  ;;  %v1102_v1 = vand.u32 4294901760, %v1101_v51 }
  0x4b   : > { %v1108_v60 = vsub.f32 %v10094_v48, %v13033_v57  ;;  %v1121_v0 = vand.u32 4294901760, %v10118_v7  ;;  %v1128_v15 = vand.u32 4294901760, %v10120_v27  ;;  %8647 = vmatpush3.bf16.msra.mxu1 %v8646_v33  ;;  %v1115_v28 = vsub.f32 %v10100_v54, %v13032_v29 }
  0x4c   : > { %v433_v19 = vsub.f32 %v10104_v56, %v432_v35  ;;  %v440_v20 = vsub.f32 %v10108_v61, %v439_v40  ;;  %v446_v14 = vand.u32 4294901760, %v10126_v16  ;;  %8648 = vmatprep.subr.bf16.mxu1 %v13181_v18  ;;  %v8511_v34 = vpack.c.bf16 %v427_v12, %v420_v38 }
  0x4d   : > { %v1122_v51 = vsub.f32 %v10118_v7, %v1121_v0  ;;  %v1129_v62 = vsub.f32 %v10120_v27, %v1128_v15  ;;  %v453_v32 = vand.u32 4294901760, %v10185_v52  ;;  %8509 = vmatpush3.bf16.msra.mxu0 %v8508_v39  ;;  %v1135_v57 = vand.u32 4294901760, %v10294_v47 }
  0x4e   : > { %v434_v33 = vand.u32 4294901760, %v433_v19  ;;  %v441_v9 = vand.u32 4294901760, %v440_v20  ;;  %v447_v29 = vsub.f32 %v10126_v16, %v446_v14  ;;  %8510 = vmatprep.subr.bf16.mxu0 %v13181_v18  ;;  %v8652_v63 = vpack.c.bf16 %v1102_v1, %v1095_v45 }
  0x4f   : > { %v454_v6 = vsub.f32 %v10185_v52, %v453_v32  ;;  %8650 = vmatpush3.bf16.msra.mxu1 %v8649_v23  ;;  %v1109_v38 = vand.u32 4294901760, %v1108_v60  ;;  %v1116_v12 = vand.u32 4294901760, %v1115_v28  ;;  %v1142_v26 = vand.u32 4294901760, %v10299_v55 }
  0x50   : > { %8651 = vmatprep.subr.bf16.mxu1 %v13181_v18  ;;  %v8514_v17 = vpack.c.bf16 %v441_v9, %v434_v33  ;;  %v1123_v39 = vand.u32 4294901760, %v1122_v51  ;;  %v1130_v19 = vand.u32 4294901760, %v1129_v62  ;;  %v448_v20 = vand.u32 4294901760, %v447_v29 }
  0x51   : > { %8512 = vmatpush3.bf16.msra.mxu0 %v8511_v34  ;;  %v455_v4 = vand.u32 4294901760, %v454_v6  ;;  %v1136_v27 = vsub.f32 %v10294_v47, %v1135_v57  ;;  %v1143_v7 = vsub.f32 %v10299_v55, %v1142_v26  ;;  %v8655_v45 = vpack.c.bf16 %v1116_v12, %v1109_v38 }
  0x52   : > { %8513 = vmatprep.subr.bf16.mxu0 %v13181_v18  ;;  %v8658_v23 = vpack.c.bf16 %v1130_v19, %v1123_v39  ;;  %v13189_v51 = vand.u32 4294901760, %v9935_v21  ;;  %v13190_v29 = vand.u32 4294901760, %v9937_v22  ;;  %v13191_v34 = vand.u32 4294901760, %v9941_v24 }
  0x53   : > { %8653 = vmatpush3.bf16.msra.mxu1 %v8652_v63  ;;  %v8517_v1 = vpack.c.bf16 %v455_v4, %v448_v20  ;;  %v1137_v60 = vand.u32 4294901760, %v1136_v27  ;;  %v1144_v28 = vand.u32 4294901760, %v1143_v7  ;;  %v13192_v63 = vand.u32 4294901760, %v9954_v30 }
  0x54   : > { %8654 = vmatprep.subr.bf16.mxu1 %v13181_v18  ;;  %v10338_v6 = vpack.c.bf16 %v13190_v29, %v13189_v51  ;;  %v13193_v33 = vand.u32 4294901760, %v9964_v36  ;;  %v13195_v7 = vand.u32 4294901760, %v9983_v43  ;;  %v13196_v4 = vand.u32 4294901760, %v9985_v44 }
  0x55   : > { %8515 = vmatpush3.bf16.msra.mxu0 %v8514_v17  ;;  %v10345_v62 = vpack.c.bf16 %v13192_v63, %v13191_v34  ;;  %v13194_v17 = vand.u32 4294901760, %v9966_v37  ;;  %v13197_v38 = vand.u32 4294901760, %v9989_v46  ;;  %v13198_v12 = vand.u32 4294901760, %v9998_v49 }
  0x56   : > { %8516 = vmatprep.subr.bf16.mxu0 %v13181_v18  ;;  %v10357_v9 = vpack.c.bf16 %v13196_v4, %v13195_v7  ;;  %v13199_v19 = vand.u32 4294901760, %v10004_v53  ;;  %v13200_v20 = vand.u32 4294901760, %v10010_v58  ;;  %v13201_v29 = vand.u32 4294901760, %v10012_v59 }
  0x57   : > { %v10351_v27 = vpack.c.bf16 %v13194_v17, %v13193_v33  ;;  %v10363_v39 = vpack.c.bf16 %v13198_v12, %v13197_v38  ;;  %8656 = vmatpush3.bf16.msra.mxu1 %v8655_v45  ;;  %v13202_v34 = vand.u32 4294901760, %v10026_v2  ;;  %v13203_v33 = vand.u32 4294901760, %v10030_v5 }
  0x58   : > { %v10369_v51 = vpack.c.bf16 %v13200_v20, %v13199_v19  ;;  %v13204_v17 = vand.u32 4294901760, %v10039_v8  ;;  %v13206_v45 = vand.u32 4294901760, %v10043_v10  ;;  %v13207_v4 = vand.u32 4294901760, %v10045_v11  ;;  %8657 = vmatprep.subr.bf16.mxu1 %v13181_v18 }
  0x59   : > { %v10375_v63 = vpack.c.bf16 %v13202_v34, %v13201_v29  ;;  %v13209_v12 = vand.u32 4294901760, %v10063_v25  ;;  %v13210_v19 = vand.u32 4294901760, %v10068_v31  ;;  %v13212_v29 = vand.u32 4294901760, %v10088_v41  ;;  %8518 = vmatpush3.bf16.msra.mxu0 %v8517_v1 }
  0x5a   : > { %v10381_v7 = vpack.c.bf16 %v13204_v17, %v13203_v33  ;;  %v10387_v38 = vpack.c.bf16 %v13207_v4, %v13206_v45  ;;  %v13213_v34 = vand.u32 4294901760, %v10090_v42  ;;  %v13214_v17 = vand.u32 4294901760, %v10094_v48  ;;  %8519 = vmatprep.subr.bf16.mxu0 %v13181_v18 }
  0x5b   : > { %v10394_v20 = vpack.c.bf16 %v13210_v19, %v13209_v12  ;;  %v10408_v4 = vpack.c.bf16 %v439_v40, %v432_v35  ;;  %v10412_v12 = vpack.c.bf16 %v1128_v15, %v1121_v0  ;;  %v10414_v19 = vpack.c.bf16 %v453_v32, %v446_v14  ;;  %8659 = vmatpush3.bf16.msra.mxu1 %v8658_v23  ;;  %v13234_v40 = vld [vmem:[#allocation18_spill] sm:$0xff] }
  0x5c   : > { %13205 = vst [vmem:[#allocation25_spill] sm:$0xff] %v10381_v7  ;;  %13208 = vst [vmem:[#allocation26_spill] sm:$0xff] %v10387_v38  ;;  %v10400_v33 = vpack.c.bf16 %v13213_v34, %v13212_v29  ;;  %v13215_v7 = vand.u32 4294901760, %v10100_v54  ;;  %v8520_v38 = vpack.c.bf16 %v9937_v22, %v9935_v21  ;;  %v8661_v29 = vpack.c.bf16 %v1144_v28, %v1137_v60  ;;  %v13236_v15 = vld [vmem:[#allocation22_spill] sm:$0xff]  ;;  %v1585_v60 = vld [vmem:[%s10058_s25 + $0xa] sm:$0x1] }
  0x5d   : > { %13211 = vst [vmem:[#allocation27_spill] sm:$0xff] %v10394_v20  ;;  %v10416_v20 = vpack.c.bf16 %v1142_v26, %v1135_v57  ;;  %8660 = vmatprep.subr.bf16.mxu1 %v13181_v18  ;;  %6859 = vmatmul.mubr.f32.vlgmr.msra.gmra.mrb[0].mxu0 %v10169_v3  ;;  %v8523_v35 = vpack.c.bf16 %v9966_v37, %v9964_v36  ;;  %v13233_v57 = vld [vmem:[#allocation21_spill] sm:$0xff]  ;;  %v1588_v34 = vld [vmem:[%s10058_s25 + $0x22] sm:$0x1]  ;;  %vm5746_vm8 = vcmask 130048   ;;  %vm5748_vm9 = vcmask 261120  }
  0x5e   : > { %v10406_v45 = vpack.c.bf16 %v13215_v7, %v13214_v17  ;;  %8521 = vmatpush3.bf16.msra.mxu0 %v8520_v38  ;;  %6893 = vmatprep.mubr.msk.f32.mxu0 %vm9817_vm0, %v13185_v50  ;;  %v8664_v21 = vpack.c.bf16 %v9954_v30, %v9941_v24  ;;  %v8526_v22 = vpack.c.bf16 %v9998_v49, %v9989_v46  ;;  %v1586_v28 = vld [vmem:[%s10058_s25 + $0x12] sm:$0x1]  ;;  %v2275_v17 = vld [vmem:[%s10058_s25 + $0x13] sm:$0x1]  ;;  %vm5750_vm10 = vcmask 392192  }
  0x5f   : > { %8522 = vmatprep.subr.bf16.mxu0 %v13181_v18  ;;  %8662 = vmatpush3.bf16.msra.mxu1 %v8661_v29  ;;  %v8667_v26 = vpack.c.bf16 %v9985_v44, %v9983_v43  ;;  %v8529_v24 = vpack.c.bf16 %v10026_v2, %v10012_v59  ;;  %v8670_v30 = vpack.c.bf16 %v10010_v58, %v10004_v53  ;;  %v13216_v58 = vld [vmem:[#allocation19_spill] sm:$0xff]  ;;  %v13217_v59 = vld [vmem:[#allocation20_spill] sm:$0xff]  ;;  %vm5752_vm11 = vcmask 523264  }
  0x60   : > { %8663 = vmatprep.subr.bf16.mxu1 %v13181_v18  ;;  %v8532_v36 = vpack.c.bf16 %v10045_v11, %v10043_v10  ;;  %v8673_v37 = vpack.c.bf16 %v10039_v8, %v10030_v5  ;;  %v8535_v43 = vpack.c.bf16 %v10090_v42, %v10088_v41  ;;  %v8676_v44 = vpack.c.bf16 %v10068_v31, %v10063_v25  ;;  %v13218_v8 = vld [vmem:[#allocation23_spill] sm:$0xff]  ;;  %v13221_v11 = vld [vmem:[#allocation24_spill] sm:$0xff]  ;;  %v13222_v25 = vld [vmem:[#allocation6_spill] sm:$0xff] }
  0x61   : > { %v8538_v46 = vpack.c.bf16 %v10108_v61, %v10104_v56  ;;  %v8679_v49 = vpack.c.bf16 %v10100_v54, %v10094_v48  ;;  %v8541_v53 = vpack.c.bf16 %v10185_v52, %v10126_v16  ;;  %v8682_v2 = vpack.c.bf16 %v13217_v59, %v13216_v58  ;;  %v13219_v16 = vld [vmem:[#allocation5_spill] sm:$0xff]  ;;  %v13220_v10 = vld [vmem:[#allocation7_spill] sm:$0xff]  ;;  %v13224_v41 = vld [vmem:[#allocation8_spill] sm:$0xff] }
  0x62   : > { %8524 = vmatpush3.bf16.msra.mxu0 %v8523_v35  ;;  %7069 = vmatmul.mubr.f32.vlgmr.msra.gmra.mrb[0].mxu1 %v10213_v13  ;;  %v8685_v5 = vpack.c.bf16 %v10299_v55, %v10294_v47  ;;  %v13223_v31 = vld [vmem:[#allocation9_spill] sm:$0xff]  ;;  %v13225_v42 = vld [vmem:[#allocation11_spill] sm:$0xff]  ;;  %v13226_v48 = vld [vmem:[#allocation10_spill] sm:$0xff]  ;;  %v13235_v0 = vand.u32 4294901760, %v13218_v8  ;;  %v13237_v14 = vand.u32 4294901760, %v13221_v11  ;;  %vm5754_vm12 = vcmask 654336  }
  0x63   : > { %8525 = vmatprep.subr.bf16.mxu0 %v13181_v18  ;;  %8665 = vmatpush3.bf16.msra.mxu1 %v8664_v21  ;;  %v13227_v54 = vld [vmem:[#allocation13_spill] sm:$0xff]  ;;  %v13228_v56 = vld [vmem:[#allocation12_spill] sm:$0xff]  ;;  %v13229_v61 = vld [vmem:[#allocation15_spill] sm:$0xff]  ;;  %vm5756_vm13 = vcmask 785408   ;;  %vm5758_vm14 = vcmask 916480  }
  0x64   : > { %7103 = vmatprep.mubr.msk.f32.mxu1 %vm9817_vm0, %v13185_v50  ;;  %8666 = vmatprep.subr.bf16.mxu1 %v13181_v18  ;;  %v13230_v52 = vld [vmem:[#allocation14_spill] sm:$0xff]  ;;  %v13231_v47 = vld [vmem:[#allocation17_spill] sm:$0xff]  ;;  %v13232_v55 = vld [vmem:[#allocation16_spill] sm:$0xff] }
  0x65   : > { %v13238_v32 = vld [vmem:[#allocation26_spill] sm:$0xff]  ;;  %v13239_v23 = vld [vmem:[#allocation25_spill] sm:$0xff]  ;;  %v13240_v1 = vld [vmem:[#allocation27_spill] sm:$0xff] }
  0x66   : > { %8527 = vmatpush3.bf16.msra.mxu0 %v8526_v22  ;;  %v2273_v29 = vld [vmem:[%s10058_s25 + $0x3] sm:$0x1]  ;;  %v10620_v21 = vld [vmem:[%s12975_s1 + $0x188] sm:$0xff] }
  0x67   : > { %8528 = vmatprep.subr.bf16.mxu0 %v13181_v18  ;;  %8668 = vmatpush3.bf16.msra.mxu1 %v8667_v26  ;;  %v5891_v35 = vld [vmem:[%s12975_s1 + $0x180] sm:$0xff]  ;;  %v1589_v26 = vld [vmem:[%s10058_s25 + $0x2a] sm:$0x1] }
  0x68   : > { %8669 = vmatprep.subr.bf16.mxu1 %v13181_v18  ;;  %v10639_v58 = vld [vmem:[%s12975_s1 + $0x120] sm:$0xff]  ;;  %v10644_v59 = vld [vmem:[%s12975_s1 + $0x128] sm:$0xff] }
  0x6a   : > { %8530 = vmatpush3.bf16.msra.mxu0 %v8529_v24  ;;  %v1623_v24 = vrot.slane %v1588_v34, 4 }
  0x6b   : > { %8531 = vmatprep.subr.bf16.mxu0 %v13181_v18  ;;  %8671 = vmatpush3.bf16.msra.mxu1 %v8670_v30  ;;  %v2276_v30 = vld [vmem:[%s10058_s25 + $0x1b] sm:$0x1] }
  0x6c   : > { %8672 = vmatprep.subr.bf16.mxu1 %v13181_v18 }
  0x6e   : > { %8533 = vmatpush3.bf16.msra.mxu0 %v8532_v36  ;;  %v2308_v36 = vrot.slane %v2275_v17, 6  ;;  %v5897_v17 = vld [vmem:[%s12975_s1 + $0x1b0] sm:$0xff] }
  0x6f   : > { %8534 = vmatprep.subr.bf16.mxu0 %v13181_v18  ;;  %8674 = vmatpush3.bf16.msra.mxu1 %v8673_v37 }
  0x70   : > { %8675 = vmatprep.subr.bf16.mxu1 %v13181_v18 }
  0x72   : > { %8536 = vmatpush3.bf16.msra.mxu0 %v8535_v43 }
  0x73   : > { %8537 = vmatprep.subr.bf16.mxu0 %v13181_v18  ;;  %8677 = vmatpush3.bf16.msra.mxu1 %v8676_v44 }
  0x74   : > { %8678 = vmatprep.subr.bf16.mxu1 %v13181_v18 }
  0x76   : > { %8539 = vmatpush3.bf16.msra.mxu0 %v8538_v46 }
  0x77   : > { %8540 = vmatprep.subr.bf16.mxu0 %v13181_v18  ;;  %8680 = vmatpush3.bf16.msra.mxu1 %v8679_v49  ;;  %v2322_v49 = vand.u32 4294901760, %v5891_v35 }
  0x78   : > { %8681 = vmatprep.subr.bf16.mxu1 %v13181_v18 }
  0x7a   : > { %8542 = vmatpush3.bf16.msra.mxu0 %v8541_v53  ;;  %v2325_v53 = vand.u32 4294901760, %v10620_v21 }
  0x7b   : > { %8543 = vmatprep.subr.bf16.mxu0 %v13181_v18  ;;  %8683 = vmatpush3.bf16.msra.mxu1 %v8682_v2  ;;  %v1590_v2 = vld [vmem:[%s10058_s25 + $0x32] sm:$0x1] }
  0x7c   : > { %8684 = vmatprep.subr.bf16.mxu1 %v13181_v18 }
  0x7d   : > { %6894 = vmatmul.mubr.f32.vlgmr.msra.gmra.mrb[0].mxu0 %v13218_v8  ;;  %v2277_v8 = vld [vmem:[%s10058_s25 + $0x23] sm:$0x1] }
  0x7e   : > { %8545 = vmatpush3.bf16.msra.mxu0 %v13219_v16  ;;  %6928 = vmatprep.mubr.msk.f32.mxu0 %vm9817_vm0, %v13185_v50 }
  0x7f   : > { %8546 = vmatprep.subr.bf16.mxu0 %v13181_v18  ;;  %8686 = vmatpush3.bf16.msra.mxu1 %v8685_v5  ;;  %v1625_v5 = vrot.slane %v1589_v26, 3 }
  0x80   : > { %8687 = vmatprep.subr.bf16.mxu1 %v13181_v18 }
  0x82   : > { %8548 = vmatpush3.bf16.msra.mxu0 %v13220_v10  ;;  %7104 = vmatmul.mubr.f32.vlgmr.msra.gmra.mrb[0].mxu1 %v13221_v11  ;;  %v5894_v11 = vld [vmem:[%s12975_s1 + $0x198] sm:$0xff] }
  0x83   : > { %8549 = vmatprep.subr.bf16.mxu0 %v13181_v18  ;;  %8689 = vmatpush3.bf16.msra.mxu1 %v13222_v25 }
  0x84   : > { %7138 = vmatprep.mubr.msk.f32.mxu1 %vm9817_vm0, %v13185_v50  ;;  %8690 = vmatprep.subr.bf16.mxu1 %v13181_v18 }
  0x86   : > { %8551 = vmatpush3.bf16.msra.mxu0 %v13223_v31 }
  0x87   : > { %8552 = vmatprep.subr.bf16.mxu0 %v13181_v18  ;;  %8692 = vmatpush3.bf16.msra.mxu1 %v13224_v41 }
  0x88   : > { %8693 = vmatprep.subr.bf16.mxu1 %v13181_v18 }
  0x8a   : > { %8554 = vmatpush3.bf16.msra.mxu0 %v13225_v42 }
  0x8b   : > { %8555 = vmatprep.subr.bf16.mxu0 %v13181_v18  ;;  %8695 = vmatpush3.bf16.msra.mxu1 %v13226_v48 }
  0x8c   : > { %8696 = vmatprep.subr.bf16.mxu1 %v13181_v18 }
  0x8e   : > { %8557 = vmatpush3.bf16.msra.mxu0 %v13227_v54 }
  0x8f   : > { %8558 = vmatprep.subr.bf16.mxu0 %v13181_v18  ;;  %8698 = vmatpush3.bf16.msra.mxu1 %v13228_v56 }
  0x90   : > { %8699 = vmatprep.subr.bf16.mxu1 %v13181_v18 }
  0x92   : > { %8560 = vmatpush3.bf16.msra.mxu0 %v13229_v61 }
  0x93   : > { %8561 = vmatprep.subr.bf16.mxu0 %v13181_v18  ;;  %8701 = vmatpush3.bf16.msra.mxu1 %v13230_v52 }
  0x94   : > { %8702 = vmatprep.subr.bf16.mxu1 %v13181_v18 }
  0x96   : > { %8563 = vmatpush3.bf16.msra.mxu0 %v13231_v47 }
  0x97   : > { %8564 = vmatprep.subr.bf16.mxu0 %v13181_v18  ;;  %8704 = vmatpush3.bf16.msra.mxu1 %v13232_v55 }
  0x98   : > { %8705 = vmatprep.subr.bf16.mxu1 %v13181_v18 }
  0x9a   : > { %8566 = vmatpush3.bf16.msra.mxu0 %v13233_v57 }
  0x9b   : > { %8567 = vmatprep.subr.bf16.mxu0 %v13181_v18  ;;  %8707 = vmatpush3.bf16.msra.mxu1 %v13234_v40 }
  0x9c   : > { %8708 = vmatprep.subr.bf16.mxu1 %v13181_v18 }
  0x9d   : > { %6929 = vmatmul.mubr.f32.vlgmr.msra.gmra.mrb[0].mxu0 %v13235_v0 }
  0x9e   : > { %8569 = vmatpush3.bf16.msra.mxu0 %v10338_v6  ;;  %6963 = vmatprep.mubr.msk.f32.mxu0 %vm9817_vm0, %v13185_v50  ;;  %v1617_v6 = vrot.slane %v1585_v60, 7 }
  0x9f   : > { %8570 = vmatprep.subr.bf16.mxu0 %v13181_v18  ;;  %8710 = vmatpush3.bf16.msra.mxu1 %v13236_v15 }
  0xa0   : > { %8711 = vmatprep.subr.bf16.mxu1 %v13181_v18 }
  0xa2   : > { %8572 = vmatpush3.bf16.msra.mxu0 %v10351_v27  ;;  %7139 = vmatmul.mubr.f32.vlgmr.msra.gmra.mrb[0].mxu1 %v13237_v14  ;;  %v10582_v27 = vld [vmem:[%s12975_s1 + $0x100] sm:$0xff] }
  0xa3   : > { %8573 = vmatprep.subr.bf16.mxu0 %v13181_v18  ;;  %8713 = vmatpush3.bf16.msra.mxu1 %v10345_v62  ;;  %v1584_v62 = vld [vmem:[%s10058_s25 + $0x2] sm:$0x1]  ;;  %v1633_v38 = vand.u32 4294901760, %v10582_v27 }
  0xa4   : > { %7173 = vmatprep.mubr.msk.f32.mxu1 %vm9817_vm0, %v13185_v50  ;;  %8714 = vmatprep.subr.bf16.mxu1 %v13181_v18  ;;  %v1618_v7 = vsel %vm233_vm1, %v1617_v6, %v1584_v62 }
  0xa6   : > { %8575 = vmatpush3.bf16.msra.mxu0 %v10363_v39  ;;  %v1587_v39 = vld [vmem:[%s10058_s25 + $0x1a] sm:$0x1] }
  0xa7   : > { %8576 = vmatprep.subr.bf16.mxu0 %v13181_v18  ;;  %8716 = vmatpush3.bf16.msra.mxu1 %v10357_v9  ;;  %v10587_v9 = vld [vmem:[%s12975_s1 + $0x108] sm:$0xff] }
  0xa8   : > { %8717 = vmatprep.subr.bf16.mxu1 %v13181_v18 }
  0xaa   : > { %8578 = vmatpush3.bf16.msra.mxu0 %v10375_v63  ;;  %v2274_v63 = vld [vmem:[%s10058_s25 + $0xb] sm:$0x1] }
  0xab   : > { %8579 = vmatprep.subr.bf16.mxu0 %v13181_v18  ;;  %8719 = vmatpush3.bf16.msra.mxu1 %v10369_v51  ;;  %v1619_v51 = vrot.slane %v1586_v28, 6 }
  0xac   : > { %8720 = vmatprep.subr.bf16.mxu1 %v13181_v18 }
  0xae   : > { %8581 = vmatpush3.bf16.msra.mxu0 %v13238_v32  ;;  %v10690_v32 = vsub.f32 %v10582_v27, %v1633_v38  ;;  %v2279_v27 = vld [vmem:[%s10058_s25 + $0x33] sm:$0x1] }
  0xaf   : > { %8582 = vmatprep.subr.bf16.mxu0 %v13181_v18  ;;  %8722 = vmatpush3.bf16.msra.mxu1 %v13239_v23  ;;  %v5895_v23 = vld [vmem:[%s12975_s1 + $0x1a0] sm:$0xff]  ;;  %v2316_v26 = vrot.slane %v2279_v27, 2 }
  0xb0   : > { %8723 = vmatprep.subr.bf16.mxu1 %v13181_v18  ;;  %v2334_v34 = vand.u32 4294901760, %v5895_v23 }
  0xb2   : > { %8584 = vmatpush3.bf16.msra.mxu0 %v10400_v33  ;;  %v1621_v33 = vrot.slane %v1587_v39, 5 }
  0xb3   : > { %8585 = vmatprep.subr.bf16.mxu0 %v13181_v18  ;;  %8725 = vmatpush3.bf16.msra.mxu1 %v13240_v1  ;;  %v5896_v1 = vld [vmem:[%s12975_s1 + $0x1a8] sm:$0xff] }
  0xb4   : > { %8726 = vmatprep.subr.bf16.mxu1 %v13181_v18 }
  0xb6   : > { %8587 = vmatpush3.bf16.msra.mxu0 %v10408_v4  ;;  %v10604_v4 = vld [vmem:[%s12975_s1 + $0x110] sm:$0xff] }
  0xb7   : > { %8588 = vmatprep.subr.bf16.mxu0 %v13181_v18  ;;  %8728 = vmatpush3.bf16.msra.mxu1 %v10406_v45  ;;  %v2306_v45 = vrot.slane %v2274_v63, 7  ;;  %v1639_v37 = vand.u32 4294901760, %v10604_v4  ;;  %v10725_v63 = vld [vmem:[%s12975_s1 + $0x148] sm:$0xff] }
  0xb8   : > { %8729 = vmatprep.subr.bf16.mxu1 %v13181_v18 }
  0xb9   : > { %v2307_v46 = vsel %vm233_vm1, %v2306_v45, %v2273_v29  ;;  %v5898_v45 = vld [vmem:[%s12975_s1 + $0x1b8] sm:$0xff] }
  0xba   : > { %8590 = vmatpush3.bf16.msra.mxu0 %v10414_v19  ;;  %v1620_v19 = vsel %vm236_vm2, %v1619_v51, %v1618_v7  ;;  %v10714_v51 = vsub.f32 %v5891_v35, %v2322_v49 }
  0xbb   : > { %8591 = vmatprep.subr.bf16.mxu0 %v13181_v18  ;;  %8731 = vmatpush3.bf16.msra.mxu1 %v10412_v12  ;;  %v10609_v12 = vld [vmem:[%s12975_s1 + $0x118] sm:$0xff]  ;;  %v1622_v44 = vsel %vm239_vm3, %v1621_v33, %v1620_v19  ;;  %v2337_v33 = vand.u32 4294901760, %v5896_v1  ;;  %v10747_v19 = vsub.f32 %v10604_v4, %v1639_v37  ;;  %v5899_v4 = vld [vmem:[%s12975_s1 + $0x1c0] sm:$0xff] }
  0xbc   : > { %8732 = vmatprep.subr.bf16.mxu1 %v13181_v18  ;;  %v1642_v43 = vand.u32 4294901760, %v10609_v12 }
  0xbd   : > { %6964 = vmatmul.mubr.f32.vlgmr.msra.gmra.mrb[0].mxu0 %v10169_v3 }
  0xbe   : > { %8593 = vmatpush3.bf16.msra.mxu0 %v13219_v16  ;;  %6998 = vmatprep.mubr.msk.f32.mxu0 %vm9817_vm0, %v13185_v50  ;;  %v2310_v16 = vrot.slane %v2276_v30, 5  ;;  %v10752_v29 = vsub.f32 %v10609_v12, %v1642_v43  ;;  %v1660_v30 = vand.u32 4294901760, %v10725_v63 }
  0xbf   : > { %8594 = vmatprep.subr.bf16.mxu0 %v13181_v18  ;;  %8734 = vmatpush3.bf16.msra.mxu1 %v10416_v20  ;;  %v1636_v20 = vand.u32 4294901760, %v10587_v9 }
  0xc0   : > { %8735 = vmatprep.subr.bf16.mxu1 %v13181_v18  ;;  %v10841_v27 = vsub.f32 %v10725_v63, %v1660_v30 }
  0xc1   : > { %v10625_v22 = vpack.c.bf16 %v1636_v20, %v1633_v38  ;;  %v10703_v28 = vsub.f32 %v10587_v9, %v1636_v20  ;;  %v10720_v9 = vld [vmem:[%s12975_s1 + $0x140] sm:$0xff] }
  0xc2   : > { %8596 = vmatpush3.bf16.msra.mxu0 %v13220_v10  ;;  %7174 = vmatmul.mubr.f32.vlgmr.msra.gmra.mrb[0].mxu1 %v10213_v13  ;;  %v5893_v10 = vld [vmem:[%s12975_s1 + $0x190] sm:$0xff] }
  0xc3   : > { %8597 = vmatprep.subr.bf16.mxu0 %v13181_v18  ;;  %8737 = vmatpush3.bf16.msra.mxu1 %v13222_v25  ;;  %v1624_v25 = vsel %vm242_vm4, %v1623_v24, %v1622_v44  ;;  %v1657_v24 = vand.u32 4294901760, %v10720_v9  ;;  %v2340_v44 = vand.u32 4294901760, %v5897_v17 }
  0xc4   : > { %7208 = vmatprep.mubr.msk.f32.mxu1 %vm9817_vm0, %v13185_v50  ;;  %8738 = vmatprep.subr.bf16.mxu1 %v13181_v18  ;;  %v1626_v0 = vsel %vm245_vm5, %v1625_v5, %v1624_v25  ;;  %v2346_v25 = vand.u32 4294901760, %v5899_v4 }
  0xc6   : > { %8599 = vmatpush3.bf16.msra.mxu0 %v13223_v31  ;;  %v2309_v31 = vsel %vm236_vm2, %v2308_v36, %v2307_v46  ;;  %v2343_v46 = vand.u32 4294901760, %v5898_v45 }
  0xc7   : > { %8600 = vmatprep.subr.bf16.mxu0 %v13181_v18  ;;  %8740 = vmatpush3.bf16.msra.mxu1 %v13224_v41  ;;  %v1645_v41 = vand.u32 4294901760, %v10639_v58  ;;  %v2311_v14 = vsel %vm239_vm3, %v2310_v16, %v2309_v31  ;;  %v10790_v16 = vpack.c.bf16 %v2337_v33, %v2334_v34 }
  0xc8   : > { %8741 = vmatprep.subr.bf16.mxu1 %v13181_v18 }
  0xc9   : > { %v10783_v5 = vsub.f32 %v10639_v58, %v1645_v41  ;;  %13244 = vst [vmem:[#allocation5_spill] sm:$0xff] %v10790_v16  ;;  %v10799_v58 = vpack.c.bf16 %v1660_v30, %v1657_v24 }
  0xca   : > { %8602 = vmatpush3.bf16.msra.mxu0 %v13225_v42  ;;  %v1648_v42 = vand.u32 4294901760, %v10644_v59 }
  0xcb   : > { %8603 = vmatprep.subr.bf16.mxu0 %v13181_v18  ;;  %8743 = vmatpush3.bf16.msra.mxu1 %v13226_v48  ;;  %v10671_v48 = vld [vmem:[%s12975_s1 + $0x130] sm:$0xff]  ;;  %13245 = vst [vmem:[#allocation7_spill] sm:$0xff] %v10799_v58 }
  0xcc   : > { %8744 = vmatprep.subr.bf16.mxu1 %v13181_v18  ;;  %v10710_v6 = vpack.c.bf16 %v1648_v42, %v1645_v41 }
  0xce   : > { %8605 = vmatpush3.bf16.msra.mxu0 %v13227_v54  ;;  %v10676_v54 = vld [vmem:[%s12975_s1 + $0x138] sm:$0xff]  ;;  %13241 = vst [vmem:[#allocation19_spill] sm:$0xff] %v10710_v6 }
  0xcf   : > { %8606 = vmatprep.subr.bf16.mxu0 %v13181_v18  ;;  %8746 = vmatpush3.bf16.msra.mxu1 %v13228_v56  ;;  %v10680_v56 = vpack.c.bf16 %v2325_v53, %v2322_v49  ;;  %v1654_v60 = vand.u32 4294901760, %v10676_v54  ;;  %v5900_v49 = vld [vmem:[%s12975_s1 + $0x1c8] sm:$0xff] }
  0xd0   : > { %8747 = vmatprep.subr.bf16.mxu1 %v13181_v18  ;;  %v2349_v41 = vand.u32 4294901760, %v5900_v49 }
  0xd2   : > { %8608 = vmatpush3.bf16.msra.mxu0 %v13229_v61  ;;  %v1591_v61 = vld [vmem:[%s10058_s25 + $0x3a] sm:$0x1] }
  0xd3   : > { %8609 = vmatprep.subr.bf16.mxu0 %v13181_v18  ;;  %8749 = vmatpush3.bf16.msra.mxu1 %v13230_v52  ;;  %v1627_v52 = vrot.slane %v1590_v2, 2  ;;  %v1629_v62 = vrot.slane %v1591_v61, 1  ;;  %v5886_v2 = vld [vmem:[%s12975_s1 + $0x158] sm:$0xff] }
  0xd4   : > { %8750 = vmatprep.subr.bf16.mxu1 %v13181_v18 }
  0xd5   : > { %v1628_v7 = vsel %vm248_vm6, %v1627_v52, %v1626_v0  ;;  %v10820_v0 = vld [vmem:[%s12975_s1 + $0x168] sm:$0xff] }
  0xd6   : > { %8611 = vmatpush3.bf16.msra.mxu0 %v13231_v47  ;;  %v2278_v47 = vld [vmem:[%s10058_s25 + $0x2b] sm:$0x1]  ;;  %v1630_v36 = vsel %vm251_vm7, %v1629_v62, %v1628_v7  ;;  %v10838_v62 = vsub.f32 %v10720_v9, %v1657_v24  ;;  %v10847_v7 = vpack.c.bf16 %v2349_v41, %v2346_v25  ;;  %v10869_v24 = vsub.f32 %v5900_v49, %v2349_v41 }
  0xd7   : > { %8612 = vmatprep.subr.bf16.mxu0 %v13181_v18  ;;  %8752 = vmatpush3.bf16.msra.mxu1 %v13232_v55  ;;  %v2312_v55 = vrot.slane %v2277_v8, 4  ;;  %v2314_v39 = vrot.slane %v2278_v47, 3  ;;  %v10788_v8 = vsub.f32 %v10644_v59, %v1648_v42  ;;  %v10795_v31 = vand.u32 4294901760, %v1630_v36 }
  0xd8   : > { %8753 = vmatprep.subr.bf16.mxu1 %v13181_v18  ;;  %v1666_v59 = vand.u32 4294901760, %v5886_v2  ;;  %v10801_v42 = vsub.f32 %v5896_v1, %v2337_v33  ;;  %v13045_v1 = vand.u32 4294901760, %v10703_v28  ;;  %13247 = vst [vmem:[#allocation6_spill] sm:$0xff] %v10847_v7  ;;  %v13047_v33 = vand.u32 4294901760, %v10820_v0 }
  0xd9   : > { %v2313_v38 = vsel %vm242_vm4, %v2312_v55, %v2311_v14  ;;  %v10807_v55 = vsub.f32 %v10676_v54, %v1654_v60  ;;  %v5901_v54 = vld [vmem:[%s12975_s1 + $0x1d0] sm:$0xff]  ;;  %v5902_v14 = vld [vmem:[%s12975_s1 + $0x1d8] sm:$0xff]  ;;  %v13052_v49 = vand.u32 4294901760, %v10714_v51 }
  0xda   : > { %8614 = vmatpush3.bf16.msra.mxu0 %v13233_v57  ;;  %v2328_v57 = vand.u32 4294901760, %v5893_v10  ;;  %v2352_v9 = vand.u32 4294901760, %v5901_v54  ;;  %v2355_v63 = vand.u32 4294901760, %v5902_v14 }
  0xdb   : > { %8759 = vmatprep.subr.bf16.mxu0 %v13181_v18  ;;  %8755 = vmatpush3.bf16.msra.mxu1 %v13234_v40  ;;  %v2331_v40 = vand.u32 4294901760, %v5894_v11 }
  0xdc   : > { %8756 = vmatprep.subr.bf16.mxu1 %v13181_v18  ;;  %v10765_v12 = vsub.f32 %v5893_v10, %v2328_v57 }
  0xdd   : > { %6999 = vmatmul.mubr.f32.vlgmr.msra.gmra.mrb[0].mxu0 %v10169_v3  ;;  %v10664_v3 = vpack.c.bf16 %v1642_v43, %v1639_v37  ;;  %v10733_v20 = vpack.c.bf16 %v2331_v40, %v2328_v57  ;;  %v2315_v37 = vsel %vm245_vm5, %v2314_v39, %v2313_v38  ;;  %v10767_v43 = vsub.f32 %v5894_v11, %v2331_v40  ;;  %v10815_v40 = vld [vmem:[%s12975_s1 + $0x160] sm:$0xff] }
  0xde   : > { %8761 = vmatpush3.bf16.msra.mxu0 %v10625_v22  ;;  %7243 = vmatprep.mubr.msk.f32.mxu0 %vm9817_vm0, %v13185_v50  ;;  %v10793_v11 = vsub.f32 %v5895_v23, %v2334_v34  ;;  %v2317_v61 = vsel %vm248_vm6, %v2316_v26, %v2315_v37  ;;  %v10809_v57 = vpack.c.bf16 %v2343_v46, %v2340_v44  ;;  %v13046_v23 = vand.u32 4294901760, %v10690_v32  ;;  %v10883_v37 = vld [vmem:[%s12975_s1 + $0x1e0] sm:$0xff] }
  0xdf   : > { %8762 = vmatprep.subr.bf16.mxu0 %v13181_v18  ;;  %8758 = vmatpush3.bf16.msra.mxu1 %v13236_v15  ;;  %v1651_v15 = vand.u32 4294901760, %v10671_v48  ;;  %13242 = vst [vmem:[#allocation20_spill] sm:$0xff] %v10733_v20  ;;  %v10844_v39 = vsub.f32 %v1630_v36, %v10795_v31  ;;  %v13048_v34 = vand.u32 4294901760, %v10815_v40  ;;  %v1734_v36 = vsub.f32 %v10703_v28, %v13045_v1 }
  0xe0   : > { %8903 = vmatprep.subr.bf16.mxu1 %v13181_v18  ;;  %13246 = vst [vmem:[#allocation24_spill] sm:$0xff] %v10809_v57  ;;  %v10905_v1 = vpack.c.bf16 %v2355_v63, %v2352_v9 }
  0xe1   : > { %v10754_v35 = vpack.c.bf16 %v1654_v60, %v1651_v15  ;;  %v10804_v47 = vsub.f32 %v10671_v48, %v1651_v15  ;;  %v10823_v48 = vsub.f32 %v5897_v17, %v2340_v44  ;;  %v10835_v60 = vsub.f32 %v5898_v45, %v2343_v46  ;;  %v10859_v45 = vld [vmem:[%s12975_s1 + $0x170] sm:$0xff]  ;;  %v10888_v44 = vld [vmem:[%s12975_s1 + $0x1e8] sm:$0xff] }
  0xe2   : > { %8764 = vmatpush3.bf16.msra.mxu0 %v10664_v3  ;;  %7209 = vmatmul.mubr.f32.vlgmr.msra.gmra.mrb[0].mxu1 %v10213_v13  ;;  %v10731_v13 = vsub.f32 %v10620_v21, %v2325_v53  ;;  %v2280_v21 = vld [vmem:[%s10058_s25 + $0x3b] sm:$0x1]  ;;  %v5885_v53 = vld [vmem:[%s12975_s1 + $0x150] sm:$0xff]  ;;  %v10853_v17 = vsub.f32 %v5899_v4, %v2346_v25  ;;  %v1727_v4 = vsub.f32 %v10690_v32, %v13046_v23  ;;  %v13049_v46 = vand.u32 4294901760, %v10844_v39 }
  0xe3   : > { %8765 = vmatprep.subr.bf16.mxu0 %v13181_v18  ;;  %8905 = vmatpush3.bf16.msra.mxu1 %v10680_v56  ;;  %13243 = vst [vmem:[#allocation23_spill] sm:$0xff] %v10754_v35  ;;  %v2318_v10 = vrot.slane %v2280_v21, 1  ;;  %v1663_v52 = vand.u32 4294901760, %v5885_v53  ;;  %v10864_v21 = vld [vmem:[%s12975_s1 + $0x178] sm:$0xff]  ;;  %v10895_v25 = vsub.f32 %v5886_v2, %v1666_v59  ;;  %13250 = vst [vmem:[#allocation11_spill] sm:$0xff] %v10905_v1  ;;  %v1735_v41 = vand.u32 4294901760, %v1734_v36 }
  0xe4   : > { %7453 = vmatprep.mubr.msk.f32.mxu1 %vm9817_vm0, %v13185_v50  ;;  %8906 = vmatprep.subr.bf16.mxu1 %v13181_v18  ;;  %v10907_v23 = vsub.f32 %v5901_v54, %v2352_v9  ;;  %v10921_v54 = vld [vmem:[%s12975_s1 + $0x1f0] sm:$0xff]  ;;  %v1716_v9 = vsub.f32 %v10844_v39, %v13049_v46  ;;  %v10940_v2 = vsub.f32 %v5902_v14, %v2355_v63  ;;  %v13253_v46 = vand.u32 4294901760, %v10864_v21 }
  0xe5   : > { %v2319_v15 = vsel %vm251_vm7, %v2318_v10, %v2317_v61  ;;  %v10849_v38 = vpack.c.bf16 %v1666_v59, %v1663_v52  ;;  %v10871_v30 = vsub.f32 %v5885_v53, %v1663_v52  ;;  %v13055_v53 = vand.u32 4294901760, %v10747_v19 }
  0xe6   : > { %8767 = vmatpush3.bf16.msra.mxu0 %v10710_v6  ;;  %v10866_v26 = vand.u32 4294901760, %v2319_v15  ;;  %v10901_v61 = vpack.c.bf16 %v13047_v33, %v13048_v34  ;;  %v1728_v34 = vand.u32 4294901760, %v1727_v4  ;;  %v2416_v4 = vsub.f32 %v10714_v51, %v13052_v49 }
  0xe7   : > { %8768 = vmatprep.subr.bf16.mxu0 %v13181_v18  ;;  %8908 = vmatpush3.bf16.msra.mxu1 %v10733_v20  ;;  %13248 = vst [vmem:[#allocation9_spill] sm:$0xff] %v10849_v38  ;;  %v1741_v36 = vsub.f32 %v10747_v19, %v13055_v53  ;;  %v13251_v33 = vand.u32 4294901760, %v10752_v29  ;;  %v13252_v52 = vand.u32 4294901760, %v10859_v45  ;;  %v13270_v20 = vand.u32 4294901760, %v10807_v55 }
  0xe8   : > { %8909 = vmatprep.subr.bf16.mxu1 %v13181_v18  ;;  %13249 = vst [vmem:[#allocation8_spill] sm:$0xff] %v10901_v61  ;;  %v10911_v10 = vsub.f32 %v2319_v15, %v10866_v26  ;;  %v10926_v15 = vld [vmem:[%s12975_s1 + $0x1f8] sm:$0xff]  ;;  %v13275_v6 = vand.u32 4294901760, %v10859_v45 }
  0xe9   : > { %v1748_v59 = vsub.f32 %v10752_v29, %v13251_v33  ;;  %v13255_v33 = vand.u32 4294901760, %v10731_v13  ;;  %v1742_v63 = vand.u32 4294901760, %v1741_v36 }
  0xea   : > { %8770 = vmatpush3.bf16.msra.mxu0 %v10754_v35  ;;  %v13268_v35 = vand.u32 4294901760, %v10820_v0 }
  0xeb   : > { %8771 = vmatprep.subr.bf16.mxu0 %v13181_v18  ;;  %8911 = vmatpush3.bf16.msra.mxu1 %v10790_v16  ;;  %v2423_v14 = vsub.f32 %v10731_v13, %v13255_v33  ;;  %v1717_v33 = vand.u32 4294901760, %v1716_v9  ;;  %v1749_v16 = vand.u32 4294901760, %v1748_v59 }
  0xec   : > { %8912 = vmatprep.subr.bf16.mxu1 %v13181_v18 }
  0xed   : > { %v2424_v9 = vand.u32 4294901760, %v2423_v14 }
  0xee   : > { %8773 = vmatpush3.bf16.msra.mxu0 %v10799_v58  ;;  %v2417_v58 = vand.u32 4294901760, %v2416_v4  ;;  %v13262_v4 = vand.u32 4294901760, %v10765_v12 }
  0xef   : > { %8774 = vmatprep.subr.bf16.mxu0 %v13181_v18  ;;  %8914 = vmatpush3.bf16.msra.mxu1 %v10809_v57  ;;  %v8784_v57 = vpack.c.bf16 %v1735_v41, %v1728_v34  ;;  %v13261_v41 = vand.u32 4294901760, %v10911_v10  ;;  %v13265_v34 = vand.u32 4294901760, %v10921_v54 }
  0xf0   : > { %8915 = vmatprep.subr.bf16.mxu1 %v13181_v18  ;;  %v2430_v36 = vsub.f32 %v10765_v12, %v13262_v4 }
  0xf1   : > { %v2405_v59 = vsub.f32 %v10911_v10, %v13261_v41  ;;  %v13266_v41 = vand.u32 4294901760, %v10926_v15 }
  0xf2   : > { %8776 = vmatpush3.bf16.msra.mxu0 %v10849_v38 }
  0xf3   : > { %8777 = vmatprep.subr.bf16.mxu0 %v13181_v18  ;;  %8917 = vmatpush3.bf16.msra.mxu1 %v10847_v7  ;;  %v10947_v7 = vpack.c.bf16 %v13253_v46, %v13252_v52  ;;  %v13256_v46 = vand.u32 4294901760, %v10883_v37  ;;  %v13257_v52 = vand.u32 4294901760, %v10888_v44  ;;  %v10997_v14 = vpack.c.bf16 %v13266_v41, %v13265_v34 }
  0xf4   : > { %8918 = vmatprep.subr.bf16.mxu1 %v13181_v18 }
  0xf5   : > { %13254 = vst [vmem:[#allocation10_spill] sm:$0xff] %v10947_v7  ;;  %v10963_v49 = vpack.c.bf16 %v13257_v52, %v13256_v46  ;;  %v13260_v46 = vand.u32 4294901760, %v10788_v8  ;;  %13267 = vst [vmem:[#allocation12_spill] sm:$0xff] %v10997_v14 }
  0xf6   : > { %8779 = vmatpush3.bf16.msra.mxu0 %v10901_v61  ;;  %v13259_v61 = vand.u32 4294901760, %v10783_v5 }
  0xf7   : > { %8780 = vmatprep.subr.bf16.mxu0 %v13181_v18  ;;  %8920 = vmatpush3.bf16.msra.mxu1 %v10905_v1  ;;  %13258 = vst [vmem:[#allocation13_spill] sm:$0xff] %v10963_v49  ;;  %v1762_v52 = vsub.f32 %v10788_v8, %v13260_v46  ;;  %v13264_v46 = vand.u32 4294901760, %v10815_v40 }
  0xf8   : > { %8921 = vmatprep.subr.bf16.mxu1 %v13181_v18  ;;  %v1755_v1 = vsub.f32 %v10783_v5, %v13259_v61  ;;  %v13263_v61 = vand.u32 4294901760, %v10767_v43 }
  0xf9   : > { %v10990_v38 = vsub.f32 %v10815_v40, %v13264_v46  ;;  %v8787_v40 = vpack.c.bf16 %v1749_v16, %v1742_v63  ;;  %v13078_v46 = vand.u32 4294901760, %v10838_v62  ;;  %v1763_v41 = vand.u32 4294901760, %v1762_v52 }
  0xfa   : > { %8782 = vmatpush3.bf16.msra.mxu0 %v10947_v7  ;;  %v2437_v53 = vsub.f32 %v10767_v43, %v13263_v61  ;;  %v11004_v61 = vsub.f32 %v10820_v0, %v13268_v35  ;;  %v1756_v34 = vand.u32 4294901760, %v1755_v1  ;;  %v13269_v7 = vand.u32 4294901760, %v10804_v47 }
  0xfb   : > { %8783 = vmatprep.subr.bf16.mxu0 %v13181_v18  ;;  %8923 = vmatpush3.bf16.msra.mxu1 %v10963_v49  ;;  %v1776_v35 = vsub.f32 %v10807_v55, %v13270_v20  ;;  %v2406_v0 = vand.u32 4294901760, %v2405_v59  ;;  %v8928_v16 = vpack.c.bf16 %v2424_v9, %v2417_v58  ;;  %v2431_v63 = vand.u32 4294901760, %v2430_v36 }
  0xfc   : > { %8924 = vmatprep.subr.bf16.mxu1 %v13181_v18  ;;  %v1769_v4 = vsub.f32 %v10804_v47, %v13269_v7  ;;  %v13272_v7 = vand.u32 4294901760, %v10801_v42  ;;  %v1783_v58 = vsub.f32 %v10838_v62, %v13078_v46  ;;  %v8790_v49 = vpack.c.bf16 %v1763_v41, %v1756_v34 }
  0xfd   : > { %7244 = vmatmul.mubr.f32.vlgmr.msra.gmra.mrb[2].mxu0 %v1717_v33  ;;  %v2438_v33 = vand.u32 4294901760, %v2437_v53  ;;  %v13273_v53 = vand.u32 4294901760, %v10841_v27  ;;  %v11044_v46 = vsub.f32 %v10859_v45, %v13275_v6  ;;  %v13079_v36 = vand.u32 4294901760, %v10853_v17 }
  0xfe   : > { %8785 = vmatpush3.bf16.msra.mxu0 %v8784_v57  ;;  %7278 = vmatprep.mubr.msk.f32.mxu0 %vm9817_vm0, %v13185_v50  ;;  %v13271_v57 = vand.u32 4294901760, %v10793_v11  ;;  %v2451_v52 = vsub.f32 %v10801_v42, %v13272_v7  ;;  %v1770_v20 = vand.u32 4294901760, %v1769_v4  ;;  %v13080_v9 = vand.u32 4294901760, %v10869_v24 }
  0xff   : > { %8786 = vmatprep.subr.bf16.mxu0 %v13181_v18  ;;  %8926 = vmatpush3.bf16.msra.mxu1 %v10997_v14  ;;  %v1790_v59 = vsub.f32 %v10841_v27, %v13273_v53  ;;  %v1777_v14 = vand.u32 4294901760, %v1776_v35  ;;  %v8931_v53 = vpack.c.bf16 %v2438_v33, %v2431_v63  ;;  %v13277_v34 = vand.u32 4294901760, %v10835_v60 }
 0x100   : > { %v2444_v1 = vsub.f32 %v10793_v11, %v13271_v57  ;;  %8927 = vmatprep.subr.bf16.mxu1 %v13181_v18  ;;  %v13274_v57 = vand.u32 4294901760, %v10883_v37  ;;  %v1784_v45 = vand.u32 4294901760, %v1783_v58  ;;  %v13278_v35 = vand.u32 4294901760, %v10871_v30 }
 0x101   : > { %v2465_v6 = vsub.f32 %v10835_v60, %v13277_v34  ;;  %v1791_v41 = vand.u32 4294901760, %v1790_v59  ;;  %v13280_v33 = vand.u32 4294901760, %v10864_v21  ;;  %v2472_v59 = vsub.f32 %v10853_v17, %v13079_v36 }
 0x102   : > { %v11039_v7 = vsub.f32 %v10883_v37, %v13274_v57  ;;  %8788 = vmatpush3.bf16.msra.mxu0 %v8787_v40  ;;  %7454 = vmatmul.mubr.f32.vlgmr.msra.gmra.mrb[2].mxu1 %v2406_v0  ;;  %v2445_v37 = vand.u32 4294901760, %v2444_v1  ;;  %v2452_v57 = vand.u32 4294901760, %v2451_v52  ;;  %v13276_v40 = vand.u32 4294901760, %v10823_v48 }
 0x103   : > { %8789 = vmatprep.subr.bf16.mxu0 %v13181_v18  ;;  %8929 = vmatpush3.bf16.msra.mxu1 %v8928_v16  ;;  %v1797_v0 = vsub.f32 %v10871_v30, %v13278_v35  ;;  %v13279_v16 = vand.u32 4294901760, %v10895_v25  ;;  %v11067_v1 = vsub.f32 %v10864_v21, %v13280_v33  ;;  %v8793_v52 = vpack.c.bf16 %v1777_v14, %v1770_v20 }
 0x104   : > { %v2458_v4 = vsub.f32 %v10823_v48, %v13276_v40  ;;  %7488 = vmatprep.mubr.msk.f32.mxu1 %vm9817_vm0, %v13185_v50  ;;  %8930 = vmatprep.subr.bf16.mxu1 %v13181_v18  ;;  %v2479_v34 = vsub.f32 %v10869_v24, %v13080_v9  ;;  %v8934_v20 = vpack.c.bf16 %v2452_v57, %v2445_v37  ;;  %v2466_v33 = vand.u32 4294901760, %v2465_v6 }
 0x105   : > { %v1804_v63 = vsub.f32 %v10895_v25, %v13279_v16  ;;  %v13282_v58 = vand.u32 4294901760, %v10921_v54  ;;  %v8796_v9 = vpack.c.bf16 %v1791_v41, %v1784_v45  ;;  %v1798_v35 = vand.u32 4294901760, %v1797_v0 }
 0x106   : > { %8791 = vmatpush3.bf16.msra.mxu0 %v8790_v49  ;;  %v13281_v49 = vand.u32 4294901760, %v10888_v44  ;;  %v2459_v16 = vand.u32 4294901760, %v2458_v4  ;;  %v13283_v21 = vand.u32 4294901760, %v10990_v38  ;;  %v1824_v57 = vand.u32 4294901760, %v11044_v46 }
 0x107   : > { %8792 = vmatprep.subr.bf16.mxu0 %v13181_v18  ;;  %8932 = vmatpush3.bf16.msra.mxu1 %v8931_v53  ;;  %v11088_v36 = vsub.f32 %v10921_v54, %v13282_v58  ;;  %v1805_v40 = vand.u32 4294901760, %v1804_v63  ;;  %v13284_v53 = vand.u32 4294901760, %v11004_v61  ;;  %v1831_v4 = vand.u32 4294901760, %v11067_v1 }
 0x108   : > { %v11083_v14 = vsub.f32 %v10888_v44, %v13281_v49  ;;  %8933 = vmatprep.subr.bf16.mxu1 %v13181_v18  ;;  %v1811_v44 = vsub.f32 %v10990_v38, %v13283_v21  ;;  %v2473_v54 = vand.u32 4294901760, %v2472_v59  ;;  %v2480_v6 = vand.u32 4294901760, %v2479_v34 }
 0x109   : > { %v1818_v37 = vsub.f32 %v11004_v61, %v13284_v53  ;;  %v13285_v45 = vand.u32 4294901760, %v10907_v23  ;;  %v13286_v0 = vand.u32 4294901760, %v10940_v2  ;;  %v8937_v21 = vpack.c.bf16 %v2466_v33, %v2459_v16 }
 0x10a   : > { %8794 = vmatpush3.bf16.msra.mxu0 %v8793_v52  ;;  %v13287_v52 = vand.u32 4294901760, %v10926_v15  ;;  %v2499_v49 = vand.u32 4294901760, %v11039_v7  ;;  %v13081_v59 = vand.u32 4294901760, %v11083_v14  ;;  %v8799_v34 = vpack.c.bf16 %v1805_v40, %v1798_v35 }
 0x10b   : > { %8795 = vmatprep.subr.bf16.mxu0 %v13181_v18  ;;  %v2486_v41 = vsub.f32 %v10907_v23, %v13285_v45  ;;  %v2493_v63 = vsub.f32 %v10940_v2, %v13286_v0  ;;  %8935 = vmatpush3.bf16.msra.mxu1 %v8934_v20  ;;  %v1812_v53 = vand.u32 4294901760, %v1811_v44  ;;  %v1819_v45 = vand.u32 4294901760, %v1818_v37 }
 0x10c   : > { %v11109_v58 = vsub.f32 %v10926_v15, %v13287_v52  ;;  %8936 = vmatprep.subr.bf16.mxu1 %v13181_v18  ;;  %v1825_v0 = vsub.f32 %v11044_v46, %v1824_v57  ;;  %v1832_v15 = vsub.f32 %v11067_v1, %v1831_v4  ;;  %v8940_v20 = vpack.c.bf16 %v2480_v6, %v2473_v54 }
 0x10d   : > { %v2487_v16 = vand.u32 4294901760, %v2486_v41  ;;  %v2494_v33 = vand.u32 4294901760, %v2493_v63  ;;  %v2507_v40 = vsub.f32 %v11083_v14, %v13081_v59  ;;  %v2513_v35 = vand.u32 4294901760, %v11088_v36 }
 0x10e   : > { %8797 = vmatpush3.bf16.msra.mxu0 %v8796_v9  ;;  %v2500_v9 = vsub.f32 %v11039_v7, %v2499_v49  ;;  %v13082_v44 = vand.u32 4294901760, %v11109_v58  ;;  %v8802_v37 = vpack.c.bf16 %v1819_v45, %v1812_v53  ;;  %v1826_v54 = vand.u32 4294901760, %v1825_v0 }
 0x10f   : > { %8798 = vmatprep.subr.bf16.mxu0 %v13181_v18  ;;  %8938 = vmatpush3.bf16.msra.mxu1 %v8937_v21  ;;  %v1833_v6 = vand.u32 4294901760, %v1832_v15  ;;  %v8943_v41 = vpack.c.bf16 %v2494_v33, %v2487_v16  ;;  %v2508_v52 = vand.u32 4294901760, %v2507_v40  ;;  %v2514_v21 = vsub.f32 %v11088_v36, %v2513_v35 }
 0x110   : > { %8939 = vmatprep.subr.bf16.mxu1 %v13181_v18  ;;  %v2501_v63 = vand.u32 4294901760, %v2500_v9  ;;  %v2521_v59 = vsub.f32 %v11109_v58, %v13082_v44  ;;  %v8808_v15 = vpack.c.bf16 %v10703_v28, %v10690_v32  ;;  %v8811_v16 = vpack.c.bf16 %v10752_v29, %v10747_v19 }
 0x111   : > { %v2515_v45 = vand.u32 4294901760, %v2514_v21  ;;  %v8814_v33 = vpack.c.bf16 %v10788_v8, %v10783_v5  ;;  %v8955_v9 = vpack.c.bf16 %v10767_v43, %v10765_v12  ;;  %v8817_v40 = vpack.c.bf16 %v10807_v55, %v10804_v47 }
 0x112   : > { %8800 = vmatpush3.bf16.msra.mxu0 %v8799_v34  ;;  %v8805_v34 = vpack.c.bf16 %v1833_v6, %v1826_v54  ;;  %v8946_v53 = vpack.c.bf16 %v2508_v52, %v2501_v63  ;;  %v2522_v0 = vand.u32 4294901760, %v2521_v59  ;;  %v8952_v59 = vpack.c.bf16 %v10731_v13, %v10714_v51 }
 0x113   : > { %8801 = vmatprep.subr.bf16.mxu0 %v13181_v18  ;;  %8941 = vmatpush3.bf16.msra.mxu1 %v8940_v20  ;;  %v8820_v54 = vpack.c.bf16 %v10841_v27, %v10838_v62  ;;  %v8961_v6 = vpack.c.bf16 %v10835_v60, %v10823_v48  ;;  %v8964_v63 = vpack.c.bf16 %v10869_v24, %v10853_v17 }
 0x114   : > { %8942 = vmatprep.subr.bf16.mxu1 %v13181_v18  ;;  %v8949_v20 = vpack.c.bf16 %v2522_v0, %v2515_v45  ;;  %v8826_v52 = vpack.c.bf16 %v11004_v61, %v10990_v38  ;;  %v8967_v21 = vpack.c.bf16 %v10940_v2, %v10907_v23  ;;  %v8973_v45 = vpack.c.bf16 %v11109_v58, %v11088_v36  ;;  %v13288_v0 = vld [vmem:[#allocation19_spill] sm:$0xff]  ;;  %v11359_v36 = vld [vmem:[%s12975_s1 + $0x208] sm:$0xff] }
 0x116   : > { %8803 = vmatpush3.bf16.msra.mxu0 %v8802_v37  ;;  %v8958_v37 = vpack.c.bf16 %v10801_v42, %v10793_v11 }
 0x117   : > { %8804 = vmatprep.subr.bf16.mxu0 %v13181_v18  ;;  %8944 = vmatpush3.bf16.msra.mxu1 %v8943_v41  ;;  %v8823_v41 = vpack.c.bf16 %v10895_v25, %v10871_v30 }
 0x118   : > { %8945 = vmatprep.subr.bf16.mxu1 %v13181_v18 }
 0x11a   : > { %8806 = vmatpush3.bf16.msra.mxu0 %v8805_v34  ;;  %v8829_v34 = vpack.c.bf16 %v11067_v1, %v11044_v46  ;;  %v11354_v46 = vld [vmem:[%s12975_s1 + $0x200] sm:$0xff] }
 0x11b   : > { %8807 = vmatprep.subr.bf16.mxu0 %v13181_v18  ;;  %8947 = vmatpush3.bf16.msra.mxu1 %v8946_v53  ;;  %v8970_v53 = vpack.c.bf16 %v11083_v14, %v11039_v7  ;;  %v2965_v7 = vld [vmem:[%s10058_s25 + $0x1c] sm:$0x1] }
 0x11c   : > { %8948 = vmatprep.subr.bf16.mxu1 %v13181_v18 }
 0x11d   : > { %7279 = vmatmul.mubr.f32.vlgmr.msra.gmra.mrb[2].mxu0 %v10795_v31 }
 0x11e   : > { %8809 = vmatpush3.bf16.msra.mxu0 %v8808_v15  ;;  %7313 = vmatprep.mubr.msk.f32.mxu0 %vm9817_vm0, %v13185_v50  ;;  %v13289_v15 = vld [vmem:[#allocation20_spill] sm:$0xff] }
 0x11f   : > { %8810 = vmatprep.subr.bf16.mxu0 %v13181_v18  ;;  %8950 = vmatpush3.bf16.msra.mxu1 %v8949_v20  ;;  %v13290_v20 = vld [vmem:[#allocation23_spill] sm:$0xff] }
 0x120   : > { %8951 = vmatprep.subr.bf16.mxu1 %v13181_v18 }
 0x122   : > { %8812 = vmatpush3.bf16.msra.mxu0 %v8811_v16  ;;  %7489 = vmatmul.mubr.f32.vlgmr.msra.gmra.mrb[2].mxu1 %v10866_v26  ;;  %v13291_v16 = vld [vmem:[#allocation5_spill] sm:$0xff] }
 0x123   : > { %8813 = vmatprep.subr.bf16.mxu0 %v13181_v18  ;;  %8953 = vmatpush3.bf16.msra.mxu1 %v8952_v59  ;;  %v13292_v59 = vld [vmem:[#allocation7_spill] sm:$0xff] }
 0x124   : > { %7523 = vmatprep.mubr.msk.f32.mxu1 %vm9817_vm0, %v13185_v50  ;;  %8954 = vmatprep.subr.bf16.mxu1 %v13181_v18 }
 0x126   : > { %8815 = vmatpush3.bf16.msra.mxu0 %v8814_v33  ;;  %v13293_v33 = vld [vmem:[#allocation24_spill] sm:$0xff] }
 0x127   : > { %8816 = vmatprep.subr.bf16.mxu0 %v13181_v18  ;;  %8956 = vmatpush3.bf16.msra.mxu1 %v8955_v9  ;;  %v13294_v9 = vld [vmem:[#allocation9_spill] sm:$0xff] }
 0x128   : > { %8957 = vmatprep.subr.bf16.mxu1 %v13181_v18 }
 0x12a   : > { %8818 = vmatpush3.bf16.msra.mxu0 %v8817_v40  ;;  %v13295_v40 = vld [vmem:[#allocation6_spill] sm:$0xff] }
 0x12b   : > { %8819 = vmatprep.subr.bf16.mxu0 %v13181_v18  ;;  %8959 = vmatpush3.bf16.msra.mxu1 %v8958_v37  ;;  %v13296_v37 = vld [vmem:[#allocation8_spill] sm:$0xff] }
 0x12c   : > { %8960 = vmatprep.subr.bf16.mxu1 %v13181_v18 }
 0x12e   : > { %8821 = vmatpush3.bf16.msra.mxu0 %v8820_v54  ;;  %v13297_v54 = vld [vmem:[#allocation11_spill] sm:$0xff] }
 0x12f   : > { %8822 = vmatprep.subr.bf16.mxu0 %v13181_v18  ;;  %8962 = vmatpush3.bf16.msra.mxu1 %v8961_v6  ;;  %v13298_v6 = vld [vmem:[#allocation10_spill] sm:$0xff] }
 0x130   : > { %8963 = vmatprep.subr.bf16.mxu1 %v13181_v18 }
 0x132   : > { %8824 = vmatpush3.bf16.msra.mxu0 %v8823_v41  ;;  %v13299_v41 = vand.u32 4294901760, %v10690_v32  ;;  %v13305_v32 = vld [vmem:[#allocation12_spill] sm:$0xff] }
 0x133   : > { %8825 = vmatprep.subr.bf16.mxu0 %v13181_v18  ;;  %8965 = vmatpush3.bf16.msra.mxu1 %v8964_v63  ;;  %v13300_v63 = vand.u32 4294901760, %v10703_v28  ;;  %v13306_v28 = vand.u32 4294901760, %v10714_v51  ;;  %v13312_v51 = vand.u32 4294901760, %v10767_v43 }
 0x134   : > { %8966 = vmatprep.subr.bf16.mxu1 %v13181_v18 }
 0x136   : > { %8827 = vmatpush3.bf16.msra.mxu0 %v8826_v52  ;;  %v8856_v52 = vpack.c.bf16 %v13300_v63, %v13299_v41  ;;  %v13307_v41 = vand.u32 4294901760, %v10731_v13 }
 0x137   : > { %8828 = vmatprep.subr.bf16.mxu0 %v13181_v18  ;;  %8968 = vmatpush3.bf16.msra.mxu1 %v8967_v21  ;;  %v13301_v21 = vld [vmem:[#allocation13_spill] sm:$0xff] }
 0x138   : > { %8969 = vmatprep.subr.bf16.mxu1 %v13181_v18  ;;  %v9000_v63 = vpack.c.bf16 %v13307_v41, %v13306_v28 }
 0x13a   : > { %8830 = vmatpush3.bf16.msra.mxu0 %v8829_v34  ;;  %v13302_v34 = vand.u32 4294901760, %v10844_v39 }
 0x13b   : > { %8831 = vmatprep.subr.bf16.mxu0 %v13181_v18  ;;  %8971 = vmatpush3.bf16.msra.mxu1 %v8970_v53  ;;  %v13303_v53 = vand.u32 4294901760, %v10747_v19  ;;  %v13308_v19 = vand.u32 4294901760, %v10783_v5  ;;  %v13313_v5 = vand.u32 4294901760, %v10804_v47  ;;  %v13319_v47 = vand.u32 4294901760, %v10823_v48 }
 0x13c   : > { %8972 = vmatprep.subr.bf16.mxu1 %v13181_v18  ;;  %v13325_v48 = vand.u32 4294901760, %v10990_v38  ;;  %v13329_v38 = vand.u32 4294901760, %v11083_v14  ;;  %v3652_v14 = vld [vmem:[%s10058_s25 + $0xd] sm:$0x1] }
 0x13d   : > { %7314 = vmatmul.mubr.f32.vlgmr.msra.gmra.mrb[2].mxu0 %v10844_v39 }
 0x13e   : > { %8833 = vmatpush3.bf16.msra.mxu0 %v10625_v22  ;;  %7348 = vmatprep.mubr.msk.f32.mxu0 %vm9817_vm0, %v13185_v50 }
 0x13f   : > { %8834 = vmatprep.subr.bf16.mxu0 %v13181_v18  ;;  %8974 = vmatpush3.bf16.msra.mxu1 %v8973_v45  ;;  %v13304_v45 = vand.u32 4294901760, %v10752_v29  ;;  %v13309_v29 = vand.u32 4294901760, %v10788_v8  ;;  %v13314_v8 = vand.u32 4294901760, %v10807_v55  ;;  %v13320_v55 = vand.u32 4294901760, %v10835_v60 }
 0x140   : > { %8975 = vmatprep.subr.bf16.mxu1 %v13181_v18  ;;  %v13326_v60 = vand.u32 4294901760, %v11004_v61  ;;  %v2962_v61 = vld [vmem:[%s10058_s25 + $0x4] sm:$0x1] }
 0x141   : > { %v8859_v44 = vpack.c.bf16 %v13304_v45, %v13303_v53  ;;  %v8862_v39 = vpack.c.bf16 %v13309_v29, %v13308_v19  ;;  %v13317_v53 = vand.u32 4294901760, %v10838_v62  ;;  %v13318_v45 = vand.u32 4294901760, %v10841_v27 }
 0x142   : > { %8836 = vmatpush3.bf16.msra.mxu0 %v10664_v3  ;;  %7524 = vmatmul.mubr.f32.vlgmr.msra.gmra.mrb[2].mxu1 %v10911_v10  ;;  %v9009_v41 = vpack.c.bf16 %v13320_v55, %v13319_v47  ;;  %v13323_v62 = vand.u32 4294901760, %v10853_v17  ;;  %v13324_v27 = vand.u32 4294901760, %v10869_v24  ;;  %v8874_v29 = vpack.c.bf16 %v13326_v60, %v13325_v48  ;;  %v5925_v55 = vld [vmem:[%s12975_s1 + $0x290] sm:$0xff]  ;;  %v2969_v48 = vld [vmem:[%s10058_s25 + $0x3c] sm:$0x1] }
 0x143   : > { %8837 = vmatprep.subr.bf16.mxu0 %v13181_v18  ;;  %8977 = vmatpush3.bf16.msra.mxu1 %v10680_v56  ;;  %v8868_v28 = vpack.c.bf16 %v13318_v45, %v13317_v53  ;;  %v8877_v17 = vpack.c.bf16 %v1831_v4, %v1824_v57  ;;  %v9018_v24 = vpack.c.bf16 %v13329_v38, %v2499_v49  ;;  %v3011_v4 = vand.u32 4294901760, %v11354_v46  ;;  %v2966_v49 = vld [vmem:[%s10058_s25 + $0x24] sm:$0x1]  ;;  %v2968_v53 = vld [vmem:[%s10058_s25 + $0x34] sm:$0x1] }
 0x144   : > { %7558 = vmatprep.mubr.msk.f32.mxu1 %vm9817_vm0, %v13185_v50  ;;  %8978 = vmatprep.subr.bf16.mxu1 %v13181_v18  ;;  %v9012_v19 = vpack.c.bf16 %v13324_v27, %v13323_v62  ;;  %v11443_v62 = vld [vmem:[%s12975_s1 + $0x230] sm:$0xff]  ;;  %v11448_v27 = vld [vmem:[%s12975_s1 + $0x238] sm:$0xff]  ;;  %v3005_v60 = vrot.slane %v2968_v53, 2 }
 0x145   : > { %v5918_v53 = vld [vmem:[%s12975_s1 + $0x258] sm:$0xff] }
 0x146   : > { %8839 = vmatpush3.bf16.msra.mxu0 %v13288_v0 }
 0x147   : > { %8840 = vmatprep.subr.bf16.mxu0 %v13181_v18  ;;  %8980 = vmatpush3.bf16.msra.mxu1 %v13289_v15 }
 0x148   : > { %8981 = vmatprep.subr.bf16.mxu1 %v13181_v18 }
 0x14a   : > { %8842 = vmatpush3.bf16.msra.mxu0 %v13290_v20 }
 0x14b   : > { %8843 = vmatprep.subr.bf16.mxu0 %v13181_v18  ;;  %8983 = vmatpush3.bf16.msra.mxu1 %v13291_v16 }
 0x14c   : > { %8984 = vmatprep.subr.bf16.mxu1 %v13181_v18 }
 0x14e   : > { %8845 = vmatpush3.bf16.msra.mxu0 %v13292_v59 }
 0x14f   : > { %8846 = vmatprep.subr.bf16.mxu0 %v13181_v18  ;;  %8986 = vmatpush3.bf16.msra.mxu1 %v13293_v33 }
 0x150   : > { %8987 = vmatprep.subr.bf16.mxu1 %v13181_v18 }
 0x152   : > { %8848 = vmatpush3.bf16.msra.mxu0 %v13294_v9 }
 0x153   : > { %8849 = vmatprep.subr.bf16.mxu0 %v13181_v18  ;;  %8989 = vmatpush3.bf16.msra.mxu1 %v13295_v40 }
 0x154   : > { %8990 = vmatprep.subr.bf16.mxu1 %v13181_v18 }
 0x156   : > { %8851 = vmatpush3.bf16.msra.mxu0 %v13296_v37 }
 0x157   : > { %8852 = vmatprep.subr.bf16.mxu0 %v13181_v18  ;;  %8992 = vmatpush3.bf16.msra.mxu1 %v13297_v54 }
 0x158   : > { %8993 = vmatprep.subr.bf16.mxu1 %v13181_v18 }
 0x15a   : > { %8854 = vmatpush3.bf16.msra.mxu0 %v13298_v6 }
 0x15b   : > { %8855 = vmatprep.subr.bf16.mxu0 %v13181_v18  ;;  %8995 = vmatpush3.bf16.msra.mxu1 %v13301_v21 }
 0x15c   : > { %8996 = vmatprep.subr.bf16.mxu1 %v13181_v18 }
 0x15d   : > { %7349 = vmatmul.mubr.f32.vlgmr.msra.gmra.mrb[2].mxu0 %v13302_v34  ;;  %v13311_v34 = vand.u32 4294901760, %v10765_v12  ;;  %v13316_v12 = vand.u32 4294901760, %v10801_v42  ;;  %v13322_v42 = vand.u32 4294901760, %v10895_v25  ;;  %v13328_v25 = vand.u32 4294901760, %v10940_v2 }
 0x15e   : > { %8857 = vmatpush3.bf16.msra.mxu0 %v8856_v52  ;;  %7383 = vmatprep.mubr.msk.f32.mxu0 %vm9817_vm0, %v13185_v50  ;;  %v13310_v52 = vand.u32 4294901760, %v10911_v10  ;;  %v8865_v10 = vpack.c.bf16 %v13314_v8, %v13313_v5 }
 0x15f   : > { %8858 = vmatprep.subr.bf16.mxu0 %v13181_v18  ;;  %8998 = vmatpush3.bf16.msra.mxu1 %v13305_v32  ;;  %v9003_v13 = vpack.c.bf16 %v13312_v51, %v13311_v34  ;;  %v3001_v34 = vrot.slane %v2966_v49, 4 }
 0x160   : > { %8999 = vmatprep.subr.bf16.mxu1 %v13181_v18 }
 0x162   : > { %8860 = vmatpush3.bf16.msra.mxu0 %v8859_v44  ;;  %7559 = vmatmul.mubr.f32.vlgmr.msra.gmra.mrb[2].mxu1 %v13310_v52  ;;  %v13315_v44 = vand.u32 4294901760, %v10793_v11  ;;  %v13321_v11 = vand.u32 4294901760, %v10871_v30  ;;  %v13327_v30 = vand.u32 4294901760, %v10907_v23  ;;  %v13330_v23 = vand.u32 4294901760, %v11109_v58  ;;  %v2967_v52 = vld [vmem:[%s10058_s25 + $0x2c] sm:$0x1] }
 0x163   : > { %8861 = vmatprep.subr.bf16.mxu0 %v13181_v18  ;;  %9001 = vmatpush3.bf16.msra.mxu1 %v9000_v63  ;;  %v3014_v58 = vand.u32 4294901760, %v11359_v36  ;;  %v3003_v45 = vrot.slane %v2967_v52, 3 }
 0x164   : > { %7593 = vmatprep.mubr.msk.f32.mxu1 %vm9817_vm0, %v13185_v50  ;;  %9002 = vmatprep.subr.bf16.mxu1 %v13181_v18  ;;  %v9006_v43 = vpack.c.bf16 %v13316_v12, %v13315_v44  ;;  %v8871_v63 = vpack.c.bf16 %v13322_v42, %v13321_v11  ;;  %v9021_v2 = vpack.c.bf16 %v13330_v23, %v2513_v35  ;;  %v2999_v35 = vrot.slane %v2965_v7, 5  ;;  %v5927_v23 = vld [vmem:[%s12975_s1 + $0x2a0] sm:$0xff] }
 0x165   : > { %v3712_v49 = vand.u32 4294901760, %v5927_v23 }
 0x166   : > { %8863 = vmatpush3.bf16.msra.mxu0 %v8862_v39  ;;  %v9015_v39 = vpack.c.bf16 %v13328_v25, %v13327_v30  ;;  %v3706_v25 = vand.u32 4294901760, %v5925_v55 }
 0x167   : > { %8864 = vmatprep.subr.bf16.mxu0 %v13181_v18  ;;  %9004 = vmatpush3.bf16.msra.mxu1 %v9003_v13 }
 0x168   : > { %9005 = vmatprep.subr.bf16.mxu1 %v13181_v18 }
 0x16a   : > { %8866 = vmatpush3.bf16.msra.mxu0 %v8865_v10 }
 0x16b   : > { %8867 = vmatprep.subr.bf16.mxu0 %v13181_v18  ;;  %9007 = vmatpush3.bf16.msra.mxu1 %v9006_v43  ;;  %v11411_v43 = vld [vmem:[%s12975_s1 + $0x220] sm:$0xff] }
 0x16c   : > { %9008 = vmatprep.subr.bf16.mxu1 %v13181_v18  ;;  %v3023_v42 = vand.u32 4294901760, %v11411_v43 }
 0x16e   : > { %8869 = vmatpush3.bf16.msra.mxu0 %v8868_v28  ;;  %v3655_v28 = vld [vmem:[%s10058_s25 + $0x25] sm:$0x1] }
 0x16f   : > { %8870 = vmatprep.subr.bf16.mxu0 %v13181_v18  ;;  %9010 = vmatpush3.bf16.msra.mxu1 %v9009_v41  ;;  %v5926_v41 = vld [vmem:[%s12975_s1 + $0x298] sm:$0xff]  ;;  %v3690_v30 = vrot.slane %v3655_v28, 4 }
 0x170   : > { %9011 = vmatprep.subr.bf16.mxu1 %v13181_v18 }
 0x172   : > { %8872 = vmatpush3.bf16.msra.mxu0 %v8871_v63 }
 0x173   : > { %8873 = vmatprep.subr.bf16.mxu0 %v13181_v18  ;;  %9013 = vmatpush3.bf16.msra.mxu1 %v9012_v19 }
 0x174   : > { %9014 = vmatprep.subr.bf16.mxu1 %v13181_v18 }
 0x176   : > { %8875 = vmatpush3.bf16.msra.mxu0 %v8874_v29  ;;  %v3656_v29 = vld [vmem:[%s10058_s25 + $0x2d] sm:$0x1] }
 0x177   : > { %8876 = vmatprep.subr.bf16.mxu0 %v13181_v18  ;;  %9016 = vmatpush3.bf16.msra.mxu1 %v9015_v39  ;;  %v3709_v39 = vand.u32 4294901760, %v5926_v41  ;;  %v3692_v7 = vrot.slane %v3656_v29, 3 }
 0x178   : > { %9017 = vmatprep.subr.bf16.mxu1 %v13181_v18 }
 0x17a   : > { %8878 = vmatpush3.bf16.msra.mxu0 %v8877_v17 }
 0x17b   : > { %8879 = vmatprep.subr.bf16.mxu0 %v13181_v18  ;;  %9019 = vmatpush3.bf16.msra.mxu1 %v9018_v24  ;;  %v11462_v24 = vsub.f32 %v11354_v46, %v3011_v4  ;;  %v3657_v46 = vld [vmem:[%s10058_s25 + $0x35] sm:$0x1] }
 0x17c   : > { %9020 = vmatprep.subr.bf16.mxu1 %v13181_v18  ;;  %v3694_v52 = vrot.slane %v3657_v46, 2 }
 0x17d   : > { %7384 = vmatmul.mubr.f32.vlgmr.msra.gmra.mrb[2].mxu0 %v10795_v31 }
 0x17e   : > { %8881 = vmatpush3.bf16.msra.mxu0 %v10625_v22  ;;  %7418 = vmatprep.mubr.msk.f32.mxu0 %vm9817_vm0, %v13185_v50  ;;  %v2963_v22 = vld [vmem:[%s10058_s25 + $0xc] sm:$0x1] }
 0x17f   : > { %8882 = vmatprep.subr.bf16.mxu0 %v13181_v18  ;;  %9022 = vmatpush3.bf16.msra.mxu1 %v9021_v2  ;;  %v5928_v2 = vld [vmem:[%s12975_s1 + $0x2a8] sm:$0xff] }
 0x180   : > { %9023 = vmatprep.subr.bf16.mxu1 %v13181_v18 }
 0x182   : > { %8884 = vmatpush3.bf16.msra.mxu0 %v10664_v3  ;;  %7594 = vmatmul.mubr.f32.vlgmr.msra.gmra.mrb[2].mxu1 %v10866_v26  ;;  %v2964_v3 = vld [vmem:[%s10058_s25 + $0x14] sm:$0x1] }
 0x183   : > { %8885 = vmatprep.subr.bf16.mxu0 %v13181_v18  ;;  %9025 = vmatpush3.bf16.msra.mxu1 %v10680_v56  ;;  %v2995_v56 = vrot.slane %v2963_v22, 7  ;;  %v2997_v1 = vrot.slane %v2964_v3, 6  ;;  %v3032_v22 = vand.u32 4294901760, %v11448_v27  ;;  %v11475_v3 = vsub.f32 %v11359_v36, %v3014_v58  ;;  %v11492_v36 = vld [vmem:[%s12975_s1 + $0x240] sm:$0xff] }
 0x184   : > { %7628 = vmatprep.mubr.msk.f32.mxu1 %vm9817_vm0, %v13185_v50  ;;  %9026 = vmatprep.subr.bf16.mxu1 %v13181_v18 }
 0x185   : > { %v2996_v57 = vsel %vm233_vm1, %v2995_v56, %v2962_v61  ;;  %v3007_v61 = vrot.slane %v2969_v48, 1 }
 0x186   : > { %8887 = vmatpush3.bf16.msra.mxu0 %v13288_v0  ;;  %v3653_v0 = vld [vmem:[%s10058_s25 + $0x15] sm:$0x1] }
 0x187   : > { %8888 = vmatprep.subr.bf16.mxu0 %v13181_v18  ;;  %9028 = vmatpush3.bf16.msra.mxu1 %v13289_v15  ;;  %v3684_v15 = vrot.slane %v3652_v14, 7  ;;  %v3686_v51 = vrot.slane %v3653_v0, 6  ;;  %v11497_v14 = vld [vmem:[%s12975_s1 + $0x248] sm:$0xff]  ;;  %v5929_v0 = vld [vmem:[%s12975_s1 + $0x2b0] sm:$0xff] }
 0x188   : > { %9029 = vmatprep.subr.bf16.mxu1 %v13181_v18 }
 0x18a   : > { %8890 = vmatpush3.bf16.msra.mxu0 %v13290_v20  ;;  %v11376_v20 = vld [vmem:[%s12975_s1 + $0x210] sm:$0xff] }
 0x18b   : > { %8891 = vmatprep.subr.bf16.mxu0 %v13181_v18  ;;  %9031 = vmatpush3.bf16.msra.mxu1 %v13291_v16  ;;  %v11381_v16 = vld [vmem:[%s12975_s1 + $0x218] sm:$0xff]  ;;  %v3017_v13 = vand.u32 4294901760, %v11376_v20 }
 0x18c   : > { %9032 = vmatprep.subr.bf16.mxu1 %v13181_v18  ;;  %v3020_v5 = vand.u32 4294901760, %v11381_v16 }
 0x18e   : > { %8893 = vmatpush3.bf16.msra.mxu0 %v13292_v59  ;;  %v2998_v59 = vsel %vm236_vm2, %v2997_v1, %v2996_v57 }
 0x18f   : > { %8894 = vmatprep.subr.bf16.mxu0 %v13181_v18  ;;  %9034 = vmatpush3.bf16.msra.mxu1 %v13293_v33  ;;  %v3651_v33 = vld [vmem:[%s10058_s25 + $0x5] sm:$0x1]  ;;  %v3000_v8 = vsel %vm239_vm3, %v2999_v35, %v2998_v59  ;;  %v3715_v35 = vand.u32 4294901760, %v5928_v2  ;;  %v11519_v59 = vsub.f32 %v11376_v20, %v3017_v13 }
 0x190   : > { %9035 = vmatprep.subr.bf16.mxu1 %v13181_v18  ;;  %v3685_v10 = vsel %vm233_vm1, %v3684_v15, %v3651_v33  ;;  %v5930_v15 = vld [vmem:[%s12975_s1 + $0x2b8] sm:$0xff]  ;;  %v11524_v33 = vsub.f32 %v11381_v16, %v3020_v5  ;;  %v5931_v20 = vld [vmem:[%s12975_s1 + $0x2c0] sm:$0xff]  ;;  %v11537_v16 = vsub.f32 %v5925_v55, %v3706_v25 }
 0x191   : > { %v3687_v11 = vsel %vm236_vm2, %v3686_v51, %v3685_v10  ;;  %v3721_v10 = vand.u32 4294901760, %v5930_v15 }
 0x192   : > { %8896 = vmatpush3.bf16.msra.mxu0 %v13294_v9  ;;  %v5923_v9 = vld [vmem:[%s12975_s1 + $0x280] sm:$0xff] }
 0x193   : > { %8897 = vmatprep.subr.bf16.mxu0 %v13181_v18  ;;  %9037 = vmatpush3.bf16.msra.mxu1 %v13295_v40  ;;  %v11392_v40 = vld [vmem:[%s12975_s1 + $0x288] sm:$0xff]  ;;  %v3700_v44 = vand.u32 4294901760, %v5923_v9 }
 0x194   : > { %9038 = vmatprep.subr.bf16.mxu1 %v13181_v18  ;;  %v3703_v12 = vand.u32 4294901760, %v11392_v40 }
 0x195   : > { %v11486_v1 = vsub.f32 %v5923_v9, %v3700_v44 }
 0x196   : > { %8899 = vmatpush3.bf16.msra.mxu0 %v13296_v37  ;;  %v11397_v37 = vpack.c.bf16 %v3014_v58, %v3011_v4  ;;  %v11452_v19 = vpack.c.bf16 %v3703_v12, %v3700_v44  ;;  %v11505_v58 = vpack.c.bf16 %v3709_v39, %v3706_v25  ;;  %v5932_v44 = vld [vmem:[%s12975_s1 + $0x2c8] sm:$0xff] }
 0x197   : > { %8900 = vmatprep.subr.bf16.mxu0 %v13181_v18  ;;  %9040 = vmatpush3.bf16.msra.mxu1 %v13297_v54  ;;  %v3654_v54 = vld [vmem:[%s10058_s25 + $0x1d] sm:$0x1] }
 0x198   : > { %9041 = vmatprep.subr.bf16.mxu1 %v13181_v18  ;;  %v3688_v47 = vrot.slane %v3654_v54, 5  ;;  %13332 = vst [vmem:[#allocation14_spill] sm:$0xff] %v11505_v58  ;;  %v3038_v54 = vand.u32 4294901760, %v11497_v14 }
 0x19a   : > { %8902 = vmatpush3.bf16.msra.mxu0 %v13298_v6  ;;  %v11416_v6 = vld [vmem:[%s12975_s1 + $0x228] sm:$0xff]  ;;  %v3689_v38 = vsel %vm239_vm3, %v3688_v47, %v3687_v11  ;;  %v11562_v47 = vpack.c.bf16 %v3715_v35, %v3712_v49  ;;  %v11613_v46 = vsub.f32 %v11497_v14, %v3038_v54 }
 0x19b   : > { %9047 = vmatprep.subr.bf16.mxu0 %v13181_v18  ;;  %9043 = vmatpush3.bf16.msra.mxu1 %v13301_v21  ;;  %v3002_v21 = vsel %vm242_vm4, %v3001_v34, %v3000_v8  ;;  %v3026_v63 = vand.u32 4294901760, %v11416_v6  ;;  %v3691_v4 = vsel %vm242_vm4, %v3690_v30, %v3689_v38  ;;  %v3035_v34 = vand.u32 4294901760, %v11492_v36  ;;  %v5934_v38 = vld [vmem:[%s12975_s1 + $0x2d8] sm:$0xff] }
 0x19c   : > { %9044 = vmatprep.subr.bf16.mxu1 %v13181_v18  ;;  %v3004_v17 = vsel %vm245_vm5, %v3003_v45, %v3002_v21  ;;  %v3718_v8 = vand.u32 4294901760, %v5929_v0  ;;  %v11555_v45 = vsub.f32 %v11411_v43, %v3023_v42  ;;  %13334 = vst [vmem:[#allocation16_spill] sm:$0xff] %v11562_v47  ;;  %v3724_v21 = vand.u32 4294901760, %v5931_v20 }
 0x19d   : > { %7419 = vmatmul.mubr.f32.vlgmr.msra.gmra.mrb[2].mxu0 %v10795_v31  ;;  %v11436_v31 = vpack.c.bf16 %v3020_v5, %v3017_v13  ;;  %v11482_v56 = vpack.c.bf16 %v3026_v63, %v3023_v42  ;;  %v3006_v57 = vsel %vm248_vm6, %v3005_v60, %v3004_v17  ;;  %v3693_v13 = vsel %vm245_vm5, %v3692_v7, %v3691_v4  ;;  %v11592_v17 = vld [vmem:[%s12975_s1 + $0x268] sm:$0xff] }
 0x19e   : > { %9049 = vmatpush3.bf16.msra.mxu0 %v11397_v37  ;;  %7663 = vmatprep.mubr.msk.f32.mxu0 %vm9817_vm0, %v13185_v50  ;;  %v3008_v51 = vsel %vm251_vm7, %v3007_v61, %v3006_v57  ;;  %v11539_v5 = vsub.f32 %v5926_v41, %v3709_v39  ;;  %v11560_v28 = vsub.f32 %v11416_v6, %v3026_v63  ;;  %v3727_v42 = vand.u32 4294901760, %v5932_v44  ;;  %v11587_v39 = vld [vmem:[%s12975_s1 + $0x260] sm:$0xff] }
 0x19f   : > { %9050 = vmatprep.subr.bf16.mxu0 %v13181_v18  ;;  %9046 = vmatpush3.bf16.msra.mxu1 %v13305_v32  ;;  %v3029_v32 = vand.u32 4294901760, %v11443_v62  ;;  %13331 = vst [vmem:[#allocation15_spill] sm:$0xff] %v11482_v56  ;;  %v11565_v41 = vsub.f32 %v5927_v23, %v3712_v49  ;;  %v11567_v11 = vand.u32 4294901760, %v3008_v51  ;;  %v3695_v48 = vsel %vm248_vm6, %v3694_v52, %v3693_v13 }
 0x1a0   : > { %9191 = vmatprep.subr.bf16.mxu1 %v13181_v18  ;;  %v11571_v43 = vpack.c.bf16 %v3038_v54, %v3035_v34  ;;  %v3044_v6 = vand.u32 4294901760, %v5918_v53  ;;  %v11573_v63 = vsub.f32 %v5928_v2, %v3715_v35  ;;  %v11579_v30 = vsub.f32 %v11448_v27, %v3032_v22  ;;  %v5933_v27 = vld [vmem:[%s12975_s1 + $0x2d0] sm:$0xff] }
 0x1a1   : > { %v11526_v9 = vpack.c.bf16 %v3032_v22, %v3029_v32  ;;  %v11576_v29 = vsub.f32 %v11443_v62, %v3029_v32  ;;  %v11581_v25 = vpack.c.bf16 %v3721_v10, %v3718_v8  ;;  %v11595_v62 = vsub.f32 %v5929_v0, %v3718_v8 }
 0x1a2   : > { %9052 = vmatpush3.bf16.msra.mxu0 %v11436_v31  ;;  %7629 = vmatmul.mubr.f32.vlgmr.msra.gmra.mrb[2].mxu1 %v10866_v26  ;;  %v11503_v26 = vsub.f32 %v11392_v40, %v3703_v12  ;;  %v3658_v40 = vld [vmem:[%s10058_s25 + $0x3d] sm:$0x1]  ;;  %v5917_v12 = vld [vmem:[%s12975_s1 + $0x250] sm:$0xff]  ;;  %13335 = vst [vmem:[#allocation21_spill] sm:$0xff] %v11571_v43  ;;  %v13084_v23 = vand.u32 4294901760, %v11462_v24  ;;  %v13083_v2 = vand.u32 4294901760, %v11475_v3  ;;  %v11607_v22 = vsub.f32 %v5930_v15, %v3721_v10 }
 0x1a3   : > { %9053 = vmatprep.subr.bf16.mxu0 %v13181_v18  ;;  %9193 = vmatpush3.bf16.msra.mxu1 %v11452_v19  ;;  %13333 = vst [vmem:[#allocation17_spill] sm:$0xff] %v11526_v9  ;;  %v3696_v55 = vrot.slane %v3658_v40, 1  ;;  %v3041_v60 = vand.u32 4294901760, %v5917_v12  ;;  %13336 = vst [vmem:[#allocation18_spill] sm:$0xff] %v11581_v25  ;;  %v11610_v61 = vsub.f32 %v11492_v36, %v3035_v34  ;;  %v13086_v49 = vand.u32 4294901760, %v11587_v39  ;;  %v11631_v15 = vld [vmem:[%s12975_s1 + $0x270] sm:$0xff] }
 0x1a4   : > { %7873 = vmatprep.mubr.msk.f32.mxu1 %vm9817_vm0, %v13185_v50  ;;  %9194 = vmatprep.subr.bf16.mxu1 %v13181_v18  ;;  %v11616_v7 = vsub.f32 %v3008_v51, %v11567_v11  ;;  %v11619_v57 = vpack.c.bf16 %v3727_v42, %v3724_v21  ;;  %v13085_v35 = vand.u32 4294901760, %v11592_v17  ;;  %v11625_v0 = vsub.f32 %v5931_v20, %v3724_v21  ;;  %v11636_v40 = vld [vmem:[%s12975_s1 + $0x278] sm:$0xff]  ;;  %v11650_v51 = vld [vmem:[%s12975_s1 + $0x2e0] sm:$0xff] }
 0x1a5   : > { %v3697_v32 = vsel %vm251_vm7, %v3696_v55, %v3695_v48  ;;  %v11621_v4 = vpack.c.bf16 %v3044_v6, %v3041_v60  ;;  %v3730_v36 = vand.u32 4294901760, %v5933_v27  ;;  %v3733_v14 = vand.u32 4294901760, %v5934_v38 }
 0x1a6   : > { %9055 = vmatpush3.bf16.msra.mxu0 %v11482_v56  ;;  %13337 = vst [vmem:[#allocation22_spill] sm:$0xff] %v11619_v57  ;;  %v11638_v52 = vand.u32 4294901760, %v3697_v32  ;;  %v11641_v34 = vsub.f32 %v5932_v44, %v3727_v42  ;;  %v11645_v20 = vsub.f32 %v5917_v12, %v3041_v60  ;;  %v3105_v13 = vsub.f32 %v11462_v24, %v13084_v23  ;;  %v11662_v44 = vld [vmem:[%s12975_s1 + $0x2e8] sm:$0xff] }
 0x1a7   : > { %9056 = vmatprep.subr.bf16.mxu0 %v13181_v18  ;;  %9196 = vmatpush3.bf16.msra.mxu1 %v11505_v58  ;;  %13338 = vst [vmem:[#allocation26_spill] sm:$0xff] %v11621_v4  ;;  %v3112_v8 = vsub.f32 %v11475_v3, %v13083_v2  ;;  %v13089_v12 = vand.u32 4294901760, %v11616_v7  ;;  %v13094_v21 = vand.u32 4294901760, %v11519_v59  ;;  %v11669_v42 = vsub.f32 %v5918_v53, %v3044_v6 }
 0x1a8   : > { %9197 = vmatprep.subr.bf16.mxu1 %v13181_v18  ;;  %v11675_v60 = vpack.c.bf16 %v13085_v35, %v13086_v49  ;;  %v11679_v23 = vpack.c.bf16 %v3733_v14, %v3730_v36  ;;  %v11681_v55 = vsub.f32 %v5933_v27, %v3730_v36  ;;  %v11685_v48 = vsub.f32 %v3697_v32, %v11638_v52  ;;  %v11695_v27 = vld [vmem:[%s12975_s1 + $0x2f0] sm:$0xff]  ;;  %v11700_v32 = vld [vmem:[%s12975_s1 + $0x2f8] sm:$0xff] }
 0x1a9   : > { %v3106_v49 = vand.u32 4294901760, %v3105_v13  ;;  %v3094_v36 = vsub.f32 %v11616_v7, %v13089_v12  ;;  %v13342_v35 = vand.u32 4294901760, %v11486_v1  ;;  %v13343_v6 = vand.u32 4294901760, %v11524_v33 }
 0x1aa   : > { %9058 = vmatpush3.bf16.msra.mxu0 %v11526_v9  ;;  %13340 = vst [vmem:[#allocation27_spill] sm:$0xff] %v11675_v60  ;;  %13341 = vst [vmem:[#allocation19_spill] sm:$0xff] %v11679_v23  ;;  %v13345_v12 = vand.u32 4294901760, %v11636_v40  ;;  %v13360_v9 = vand.u32 4294901760, %v11592_v17  ;;  %v13362_v58 = vand.u32 4294901760, %v11579_v30  ;;  %v13367_v56 = vand.u32 4294901760, %v11631_v15 }
 0x1ab   : > { %9059 = vmatprep.subr.bf16.mxu0 %v13181_v18  ;;  %9199 = vmatpush3.bf16.msra.mxu1 %v11562_v47  ;;  %v3794_v13 = vsub.f32 %v11486_v1, %v13342_v35  ;;  %v3126_v53 = vsub.f32 %v11524_v33, %v13343_v6 }
 0x1ac   : > { %9200 = vmatprep.subr.bf16.mxu1 %v13181_v18 }
 0x1ad   : > { %v3127_v47 = vand.u32 4294901760, %v3126_v53 }
 0x1ae   : > { %9061 = vmatpush3.bf16.msra.mxu0 %v11571_v43  ;;  %v3795_v43 = vand.u32 4294901760, %v3794_v13  ;;  %v13354_v13 = vand.u32 4294901760, %v11537_v16 }
 0x1af   : > { %9062 = vmatprep.subr.bf16.mxu0 %v13181_v18  ;;  %9202 = vmatpush3.bf16.msra.mxu1 %v11581_v25  ;;  %v13349_v25 = vand.u32 4294901760, %v11662_v44 }
 0x1b0   : > { %v11643_v54 = vpop.f32.mrb[0].mxu0  ;;  %9203 = vmatprep.subr.bf16.mxu1 %v13181_v18 }
 0x1b1   : > { %13339 = vst [vmem:[#allocation25_spill] sm:$0xff] %v11643_v54  ;;  %v7000_v10 = vpop.f32.mrb[1].mxu0  ;;  %v11714_v54 = vsub.f32 %v5934_v38, %v3733_v14  ;;  %v13347_v14 = vand.u32 4294901760, %v11503_v26 }
 0x1b2   : > { %9064 = vmatpush3.bf16.msra.mxu0 %v11621_v4  ;;  %v3113_v10 = vand.u32 4294901760, %v3112_v8  ;;  %v3119_v8 = vsub.f32 %v11519_v59, %v13094_v21 }
 0x1b3   : > { %9065 = vmatprep.subr.bf16.mxu0 %v13181_v18  ;;  %9205 = vmatpush3.bf16.msra.mxu1 %v11619_v57  ;;  %v13344_v57 = vand.u32 4294901760, %v11631_v15  ;;  %v3801_v6 = vsub.f32 %v11503_v26, %v13347_v14  ;;  %v3095_v14 = vand.u32 4294901760, %v3094_v36 }
 0x1b4   : > { %9206 = vmatprep.subr.bf16.mxu1 %v13181_v18  ;;  %v9072_v35 = vpack.c.bf16 %v3113_v10, %v3106_v49  ;;  %v13353_v10 = vand.u32 4294901760, %v11685_v48  ;;  %v13357_v49 = vand.u32 4294901760, %v11695_v27 }
 0x1b5   : > { %v1580_v2 = vpop.f32.mrb[0].mxu1  ;;  %v11721_v4 = vpack.c.bf16 %v13345_v12, %v13344_v57  ;;  %v13348_v12 = vand.u32 4294901760, %v11650_v51  ;;  %v13351_v57 = vand.u32 4294901760, %v11555_v45  ;;  %v3802_v36 = vand.u32 4294901760, %v3801_v6 }
 0x1b6   : > { %9067 = vmatpush3.bf16.msra.mxu0 %v11675_v60  ;;  %5719 = vrot.lane.b32.xlu0 %v1580_v2, %s9819_s14  ;;  %v7210_v21 = vpop.f32.mrb[1].mxu1  ;;  %v3120_v60 = vand.u32 4294901760, %v3119_v8  ;;  %v3783_v53 = vsub.f32 %v11685_v48, %v13353_v10  ;;  %v3808_v8 = vsub.f32 %v11537_v16, %v13354_v13  ;;  %v13358_v10 = vand.u32 4294901760, %v11700_v32  ;;  %s5972_s14 = sshll.u32 %s9863_s13, 7  ;;  %s9826_s13 = smov [#allocation2]  }
 0x1b7   : > { %13346 = vst [vmem:[#allocation20_spill] sm:$0xff] %v11721_v4  ;;  %9068 = vmatprep.subr.bf16.mxu0 %v13181_v18  ;;  %9208 = vmatpush3.bf16.msra.mxu1 %v11679_v23  ;;  %v11737_v2 = vpack.c.bf16 %v13349_v25, %v13348_v12  ;;  %v3133_v23 = vsub.f32 %v11555_v45, %v13351_v57  ;;  %v13352_v25 = vand.u32 4294901760, %v11560_v28  ;;  %v13355_v57 = vand.u32 4294901760, %v11539_v5  ;;  %s9756_s27 = sshll.u32 %s9826_s13, 4  ;;  %s9757_s27 = int_to_ptr.vmem [resolvable:$false] %s9756_s27 }
 0x1b8   : > { %9209 = vmatprep.subr.bf16.mxu1 %v13181_v18  ;;  %v11771_v6 = vpack.c.bf16 %v13358_v10, %v13357_v49  ;;  %s9758_s28 = scalar_lea.vmem %s9757_s27, 256 }
 0x1b9   : > { %13350 = vst [vmem:[#allocation23_spill] sm:$0xff] %v11737_v2  ;;  %v3140_v12 = vsub.f32 %v11560_v28, %v13352_v25  ;;  %v3815_v38 = vsub.f32 %v11539_v5, %v13355_v57  ;;  %v13356_v25 = vand.u32 4294901760, %v11587_v39  ;;  %v11778_v57 = vsub.f32 %v11592_v17, %v13360_v9 }
 0x1ba   : > { %9070 = vmatpush3.bf16.msra.mxu0 %v11721_v4  ;;  %13359 = vst [vmem:[#allocation5_spill] sm:$0xff] %v11771_v6  ;;  %v3134_v49 = vand.u32 4294901760, %v3133_v23  ;;  %v13361_v4 = vand.u32 4294901760, %v11576_v29  ;;  %v3154_v9 = vsub.f32 %v11579_v30, %v13362_v58  ;;  %v3784_v17 = vand.u32 4294901760, %v3783_v53 }
 0x1bb   : > { %9071 = vmatprep.subr.bf16.mxu0 %v13181_v18  ;;  %v11764_v21 = vsub.f32 %v11587_v39, %v13356_v25  ;;  %9211 = vmatpush3.bf16.msra.mxu1 %v11737_v2  ;;  %v9075_v39 = vpack.c.bf16 %v3127_v47, %v3120_v60  ;;  %v13115_v25 = vand.u32 4294901760, %v11610_v61  ;;  %v3141_v10 = vand.u32 4294901760, %v3140_v12 }
 0x1bc   : > { %9212 = vmatprep.subr.bf16.mxu1 %v13181_v18  ;;  %v3147_v13 = vsub.f32 %v11576_v29, %v13361_v4  ;;  %v9216_v47 = vpack.c.bf16 %v3802_v36, %v3795_v43  ;;  %v3809_v60 = vand.u32 4294901760, %v3808_v8  ;;  %v13363_v23 = vand.u32 4294901760, %v11565_v41 }
 0x1bd   : > { %7664 = vmatmul.mubr.f32.vlgmr.msra.gmra.mrb[4].mxu0 %v3095_v14  ;;  %v3816_v14 = vand.u32 4294901760, %v3815_v38  ;;  %v13364_v4 = vand.u32 4294901760, %v11573_v63  ;;  %v3161_v43 = vsub.f32 %v11610_v61, %v13115_v25  ;;  %v13365_v38 = vand.u32 4294901760, %v11613_v46 }
 0x1be   : > { %9073 = vmatpush3.bf16.msra.mxu0 %v9072_v35  ;;  %7698 = vmatprep.mubr.msk.f32.mxu0 %vm9817_vm0, %v13185_v50  ;;  %v3822_v35 = vsub.f32 %v11565_v41, %v13363_v23  ;;  %v13366_v23 = vand.u32 4294901760, %v11650_v51  ;;  %v9078_v2 = vpack.c.bf16 %v3141_v10, %v3134_v49  ;;  %v3148_v58 = vand.u32 4294901760, %v3147_v13 }
 0x1bf   : > { %9074 = vmatprep.subr.bf16.mxu0 %v13181_v18  ;;  %9214 = vmatpush3.bf16.msra.mxu1 %v11771_v6  ;;  %v3829_v12 = vsub.f32 %v11573_v63, %v13364_v4  ;;  %v3168_v53 = vsub.f32 %v11613_v46, %v13365_v38  ;;  %v3155_v6 = vand.u32 4294901760, %v3154_v9  ;;  %v11818_v25 = vsub.f32 %v11631_v15, %v13367_v56 }
 0x1c0   : > { %9215 = vmatprep.subr.bf16.mxu1 %v13181_v18  ;;  %v11813_v4 = vsub.f32 %v11650_v51, %v13366_v23  ;;  %v9219_v38 = vpack.c.bf16 %v3816_v14, %v3809_v60  ;;  %v13116_v8 = vand.u32 4294901760, %v11625_v0  ;;  %v13117_v36 = vand.u32 4294901760, %v11641_v34 }
 0x1c1   : > { %v3823_v51 = vand.u32 4294901760, %v3822_v35  ;;  %v3830_v23 = vand.u32 4294901760, %v3829_v12  ;;  %v13369_v49 = vand.u32 4294901760, %v11607_v22  ;;  %v3162_v15 = vand.u32 4294901760, %v3161_v43 }
 0x1c2   : > { %9076 = vmatpush3.bf16.msra.mxu0 %v9075_v39  ;;  %7874 = vmatmul.mubr.f32.vlgmr.msra.gmra.mrb[4].mxu1 %v3784_v17  ;;  %v13368_v39 = vand.u32 4294901760, %v11595_v62  ;;  %v3169_v10 = vand.u32 4294901760, %v3168_v53  ;;  %v13370_v9 = vand.u32 4294901760, %v11645_v20  ;;  %v13372_v14 = vand.u32 4294901760, %v11636_v40 }
 0x1c3   : > { %9077 = vmatprep.subr.bf16.mxu0 %v13181_v18  ;;  %9217 = vmatpush3.bf16.msra.mxu1 %v9216_v47  ;;  %v3843_v56 = vsub.f32 %v11607_v22, %v13369_v49  ;;  %v13371_v47 = vand.u32 4294901760, %v11669_v42  ;;  %v9081_v12 = vpack.c.bf16 %v3155_v6, %v3148_v58  ;;  %v3850_v53 = vsub.f32 %v11625_v0, %v13116_v8 }
 0x1c4   : > { %v3836_v13 = vsub.f32 %v11595_v62, %v13368_v39  ;;  %7908 = vmatprep.mubr.msk.f32.mxu1 %vm9817_vm0, %v13185_v50  ;;  %9218 = vmatprep.subr.bf16.mxu1 %v13181_v18  ;;  %v3175_v17 = vsub.f32 %v11645_v20, %v13370_v9  ;;  %v11841_v35 = vsub.f32 %v11636_v40, %v13372_v14  ;;  %v13374_v43 = vand.u32 4294901760, %v11695_v27 }
 0x1c5   : > { %v3182_v60 = vsub.f32 %v11669_v42, %v13371_v47  ;;  %v3857_v49 = vsub.f32 %v11641_v34, %v13117_v36  ;;  %v9222_v58 = vpack.c.bf16 %v3830_v23, %v3823_v51  ;;  %v3844_v14 = vand.u32 4294901760, %v3843_v56 }
 0x1c6   : > { %9079 = vmatpush3.bf16.msra.mxu0 %v9078_v2  ;;  %v13373_v2 = vand.u32 4294901760, %v11662_v44  ;;  %v3837_v47 = vand.u32 4294901760, %v3836_v13  ;;  %v11862_v8 = vsub.f32 %v11695_v27, %v13374_v43  ;;  %v9084_v36 = vpack.c.bf16 %v3169_v10, %v3162_v15 }
 0x1c7   : > { %9080 = vmatprep.subr.bf16.mxu0 %v13181_v18  ;;  %9220 = vmatpush3.bf16.msra.mxu1 %v9219_v38  ;;  %v3176_v9 = vand.u32 4294901760, %v3175_v17  ;;  %v3183_v39 = vand.u32 4294901760, %v3182_v60  ;;  %v13375_v40 = vand.u32 4294901760, %v11764_v21  ;;  %v13376_v38 = vand.u32 4294901760, %v11778_v57 }
 0x1c8   : > { %v11857_v6 = vsub.f32 %v11662_v44, %v13373_v2  ;;  %9221 = vmatprep.subr.bf16.mxu1 %v13181_v18  ;;  %v3202_v23 = vand.u32 4294901760, %v11818_v25  ;;  %v3209_v13 = vand.u32 4294901760, %v11841_v35  ;;  %v3851_v27 = vand.u32 4294901760, %v3850_v53 }
 0x1c9   : > { %v3189_v44 = vsub.f32 %v11764_v21, %v13375_v40  ;;  %v3196_v51 = vsub.f32 %v11778_v57, %v13376_v38  ;;  %v3858_v56 = vand.u32 4294901760, %v3857_v49  ;;  %v13377_v15 = vand.u32 4294901760, %v11681_v55 }
 0x1ca   : > { %9082 = vmatpush3.bf16.msra.mxu0 %v9081_v12  ;;  %v13378_v17 = vand.u32 4294901760, %v11714_v54  ;;  %v13379_v12 = vand.u32 4294901760, %v11700_v32  ;;  %v9225_v40 = vpack.c.bf16 %v3844_v14, %v3837_v47  ;;  %v3877_v2 = vand.u32 4294901760, %v11813_v4 }
 0x1cb   : > { %9083 = vmatprep.subr.bf16.mxu0 %v13181_v18  ;;  %v3864_v10 = vsub.f32 %v11681_v55, %v13377_v15  ;;  %9223 = vmatpush3.bf16.msra.mxu1 %v9222_v58  ;;  %v13118_v53 = vand.u32 4294901760, %v11857_v6  ;;  %v9087_v49 = vpack.c.bf16 %v3183_v39, %v3176_v9  ;;  %v3190_v38 = vand.u32 4294901760, %v3189_v44 }
 0x1cc   : > { %v3871_v60 = vsub.f32 %v11714_v54, %v13378_v17  ;;  %v11883_v43 = vsub.f32 %v11700_v32, %v13379_v12  ;;  %9224 = vmatprep.subr.bf16.mxu1 %v13181_v18  ;;  %v3197_v15 = vand.u32 4294901760, %v3196_v51  ;;  %v3203_v17 = vsub.f32 %v11818_v25, %v3202_v23 }
 0x1cd   : > { %v3210_v32 = vsub.f32 %v11841_v35, %v3209_v13  ;;  %v9228_v58 = vpack.c.bf16 %v3858_v56, %v3851_v27  ;;  %v3865_v47 = vand.u32 4294901760, %v3864_v10  ;;  %v3885_v39 = vsub.f32 %v11857_v6, %v13118_v53 }
 0x1ce   : > { %9085 = vmatpush3.bf16.msra.mxu0 %v9084_v36  ;;  %v3872_v14 = vand.u32 4294901760, %v3871_v60  ;;  %v3878_v36 = vsub.f32 %v11813_v4, %v3877_v2  ;;  %v3891_v9 = vand.u32 4294901760, %v11862_v8  ;;  %v13119_v44 = vand.u32 4294901760, %v11883_v43 }
 0x1cf   : > { %9086 = vmatprep.subr.bf16.mxu0 %v13181_v18  ;;  %9226 = vmatpush3.bf16.msra.mxu1 %v9225_v40  ;;  %v9090_v51 = vpack.c.bf16 %v3197_v15, %v3190_v38  ;;  %v3204_v27 = vand.u32 4294901760, %v3203_v17  ;;  %v3211_v56 = vand.u32 4294901760, %v3210_v32  ;;  %v3886_v12 = vand.u32 4294901760, %v3885_v39 }
 0x1d0   : > { %9227 = vmatprep.subr.bf16.mxu1 %v13181_v18  ;;  %v9231_v10 = vpack.c.bf16 %v3872_v14, %v3865_v47  ;;  %v3879_v60 = vand.u32 4294901760, %v3878_v36  ;;  %v3892_v40 = vsub.f32 %v11862_v8, %v3891_v9  ;;  %v3899_v53 = vsub.f32 %v11883_v43, %v13119_v44 }
 0x1d1   : > { %v9096_v32 = vpack.c.bf16 %v11475_v3, %v11462_v24  ;;  %v9099_v47 = vpack.c.bf16 %v11524_v33, %v11519_v59  ;;  %v9102_v14 = vpack.c.bf16 %v11560_v28, %v11555_v45  ;;  %v9243_v36 = vpack.c.bf16 %v11539_v5, %v11537_v16 }
 0x1d2   : > { %9088 = vmatpush3.bf16.msra.mxu0 %v9087_v49  ;;  %v9093_v49 = vpack.c.bf16 %v3211_v56, %v3204_v27  ;;  %v9234_v38 = vpack.c.bf16 %v3886_v12, %v3879_v60  ;;  %v3893_v15 = vand.u32 4294901760, %v3892_v40  ;;  %v3900_v17 = vand.u32 4294901760, %v3899_v53 }
 0x1d3   : > { %9089 = vmatprep.subr.bf16.mxu0 %v13181_v18  ;;  %9229 = vmatpush3.bf16.msra.mxu1 %v9228_v58  ;;  %v9240_v53 = vpack.c.bf16 %v11503_v26, %v11486_v1  ;;  %v9105_v39 = vpack.c.bf16 %v11579_v30, %v11576_v29  ;;  %v9108_v27 = vpack.c.bf16 %v11613_v46, %v11610_v61 }
 0x1d4   : > { %9230 = vmatprep.subr.bf16.mxu1 %v13181_v18  ;;  %v9237_v58 = vpack.c.bf16 %v3900_v17, %v3893_v15  ;;  %v9249_v56 = vpack.c.bf16 %v11607_v22, %v11595_v62  ;;  %v9252_v60 = vpack.c.bf16 %v11641_v34, %v11625_v0  ;;  %v9114_v12 = vpack.c.bf16 %v11778_v57, %v11764_v21  ;;  %v13380_v17 = vld [vmem:[#allocation15_spill] sm:$0xff] }
 0x1d5   : > { %v9255_v40 = vpack.c.bf16 %v11714_v54, %v11681_v55  ;;  %v9261_v15 = vpack.c.bf16 %v11883_v43, %v11862_v8  ;;  %v12133_v8 = vld [vmem:[%s12975_s1 + $0x308] sm:$0xff] }
 0x1d6   : > { %9091 = vmatpush3.bf16.msra.mxu0 %v9090_v51  ;;  %v9246_v51 = vpack.c.bf16 %v11573_v63, %v11565_v41 }
 0x1d7   : > { %9092 = vmatprep.subr.bf16.mxu0 %v13181_v18  ;;  %9232 = vmatpush3.bf16.msra.mxu1 %v9231_v10  ;;  %v9111_v10 = vpack.c.bf16 %v11669_v42, %v11645_v20 }
 0x1d8   : > { %9233 = vmatprep.subr.bf16.mxu1 %v13181_v18 }
 0x1da   : > { %9094 = vmatpush3.bf16.msra.mxu0 %v9093_v49  ;;  %v9117_v49 = vpack.c.bf16 %v11841_v35, %v11818_v25  ;;  %v12128_v25 = vld [vmem:[%s12975_s1 + $0x300] sm:$0xff] }
 0x1db   : > { %9095 = vmatprep.subr.bf16.mxu0 %v13181_v18  ;;  %9235 = vmatpush3.bf16.msra.mxu1 %v9234_v38  ;;  %v9258_v38 = vpack.c.bf16 %v11857_v6, %v11813_v4  ;;  %v4343_v4 = vld [vmem:[%s10058_s25 + $0x1e] sm:$0x1] }
 0x1dc   : > { %9236 = vmatprep.subr.bf16.mxu1 %v13181_v18 }
 0x1dd   : > { %7699 = vmatmul.mubr.f32.vlgmr.msra.gmra.mrb[4].mxu0 %v11567_v11 }
 0x1de   : > { %9097 = vmatpush3.bf16.msra.mxu0 %v9096_v32  ;;  %7733 = vmatprep.mubr.msk.f32.mxu0 %vm9817_vm0, %v13185_v50  ;;  %v13381_v32 = vld [vmem:[#allocation14_spill] sm:$0xff] }
 0x1df   : > { %9098 = vmatprep.subr.bf16.mxu0 %v13181_v18  ;;  %9238 = vmatpush3.bf16.msra.mxu1 %v9237_v58  ;;  %v13382_v58 = vld [vmem:[#allocation17_spill] sm:$0xff] }
 0x1e0   : > { %9239 = vmatprep.subr.bf16.mxu1 %v13181_v18 }
 0x1e2   : > { %9100 = vmatpush3.bf16.msra.mxu0 %v9099_v47  ;;  %7909 = vmatmul.mubr.f32.vlgmr.msra.gmra.mrb[4].mxu1 %v11638_v52  ;;  %v13383_v47 = vld [vmem:[#allocation16_spill] sm:$0xff] }
 0x1e3   : > { %9101 = vmatprep.subr.bf16.mxu0 %v13181_v18  ;;  %9241 = vmatpush3.bf16.msra.mxu1 %v9240_v53  ;;  %v13384_v53 = vld [vmem:[#allocation21_spill] sm:$0xff] }
 0x1e4   : > { %7943 = vmatprep.mubr.msk.f32.mxu1 %vm9817_vm0, %v13185_v50  ;;  %9242 = vmatprep.subr.bf16.mxu1 %v13181_v18 }
 0x1e6   : > { %9103 = vmatpush3.bf16.msra.mxu0 %v9102_v14  ;;  %v13385_v14 = vld [vmem:[#allocation18_spill] sm:$0xff] }
 0x1e7   : > { %9104 = vmatprep.subr.bf16.mxu0 %v13181_v18  ;;  %9244 = vmatpush3.bf16.msra.mxu1 %v9243_v36  ;;  %v13386_v36 = vld [vmem:[#allocation26_spill] sm:$0xff] }
 0x1e8   : > { %9245 = vmatprep.subr.bf16.mxu1 %v13181_v18 }
 0x1ea   : > { %9106 = vmatpush3.bf16.msra.mxu0 %v9105_v39  ;;  %v13387_v39 = vld [vmem:[#allocation22_spill] sm:$0xff] }
 0x1eb   : > { %9107 = vmatprep.subr.bf16.mxu0 %v13181_v18  ;;  %9247 = vmatpush3.bf16.msra.mxu1 %v9246_v51  ;;  %v13388_v51 = vld [vmem:[#allocation27_spill] sm:$0xff] }
 0x1ec   : > { %9248 = vmatprep.subr.bf16.mxu1 %v13181_v18 }
 0x1ee   : > { %9109 = vmatpush3.bf16.msra.mxu0 %v9108_v27  ;;  %v13389_v27 = vld [vmem:[#allocation19_spill] sm:$0xff] }
 0x1ef   : > { %9110 = vmatprep.subr.bf16.mxu0 %v13181_v18  ;;  %9250 = vmatpush3.bf16.msra.mxu1 %v9249_v56  ;;  %v13390_v56 = vld [vmem:[#allocation20_spill] sm:$0xff] }
 0x1f0   : > { %9251 = vmatprep.subr.bf16.mxu1 %v13181_v18 }
 0x1f2   : > { %9112 = vmatpush3.bf16.msra.mxu0 %v9111_v10  ;;  %v13391_v10 = vand.u32 4294901760, %v11462_v24  ;;  %v13397_v24 = vld [vmem:[#allocation5_spill] sm:$0xff] }
 0x1f3   : > { %9113 = vmatprep.subr.bf16.mxu0 %v13181_v18  ;;  %9253 = vmatpush3.bf16.msra.mxu1 %v9252_v60  ;;  %v13392_v60 = vand.u32 4294901760, %v11475_v3  ;;  %v13398_v3 = vand.u32 4294901760, %v11486_v1  ;;  %v13404_v1 = vand.u32 4294901760, %v11539_v5 }
 0x1f4   : > { %9254 = vmatprep.subr.bf16.mxu1 %v13181_v18 }
 0x1f6   : > { %9115 = vmatpush3.bf16.msra.mxu0 %v9114_v12  ;;  %v9144_v12 = vpack.c.bf16 %v13392_v60, %v13391_v10  ;;  %v13399_v10 = vand.u32 4294901760, %v11503_v26 }
 0x1f7   : > { %9116 = vmatprep.subr.bf16.mxu0 %v13181_v18  ;;  %9256 = vmatpush3.bf16.msra.mxu1 %v9255_v40  ;;  %v13393_v40 = vld [vmem:[#allocation23_spill] sm:$0xff] }
 0x1f8   : > { %9257 = vmatprep.subr.bf16.mxu1 %v13181_v18  ;;  %v9288_v60 = vpack.c.bf16 %v13399_v10, %v13398_v3 }
 0x1fa   : > { %9118 = vmatpush3.bf16.msra.mxu0 %v9117_v49  ;;  %v13394_v49 = vand.u32 4294901760, %v11616_v7 }
 0x1fb   : > { %9119 = vmatprep.subr.bf16.mxu0 %v13181_v18  ;;  %9259 = vmatpush3.bf16.msra.mxu1 %v9258_v38  ;;  %v13395_v38 = vand.u32 4294901760, %v11519_v59  ;;  %v13400_v59 = vand.u32 4294901760, %v11555_v45  ;;  %v13405_v45 = vand.u32 4294901760, %v11576_v29  ;;  %v13411_v29 = vand.u32 4294901760, %v11595_v62 }
 0x1fc   : > { %9260 = vmatprep.subr.bf16.mxu1 %v13181_v18  ;;  %v13417_v62 = vand.u32 4294901760, %v11764_v21 }
 0x1fd   : > { %7734 = vmatmul.mubr.f32.vlgmr.msra.gmra.mrb[4].mxu0 %v11616_v7 }
 0x1fe   : > { %9121 = vmatpush3.bf16.msra.mxu0 %v11397_v37  ;;  %7768 = vmatprep.mubr.msk.f32.mxu0 %vm9817_vm0, %v13185_v50 }
 0x1ff   : > { %9122 = vmatprep.subr.bf16.mxu0 %v13181_v18  ;;  %9262 = vmatpush3.bf16.msra.mxu1 %v9261_v15  ;;  %v13396_v15 = vand.u32 4294901760, %v11524_v33  ;;  %v13401_v33 = vand.u32 4294901760, %v11560_v28  ;;  %v13406_v28 = vand.u32 4294901760, %v11579_v30  ;;  %v13412_v30 = vand.u32 4294901760, %v11607_v22 }
 0x200   : > { %9263 = vmatprep.subr.bf16.mxu1 %v13181_v18  ;;  %v13418_v22 = vand.u32 4294901760, %v11778_v57  ;;  %v4340_v57 = vld [vmem:[%s10058_s25 + $0x6] sm:$0x1] }
 0x201   : > { %v9147_v44 = vpack.c.bf16 %v13396_v15, %v13395_v38  ;;  %v9150_v7 = vpack.c.bf16 %v13401_v33, %v13400_v59  ;;  %v13409_v38 = vand.u32 4294901760, %v11610_v61  ;;  %v13410_v15 = vand.u32 4294901760, %v11613_v46 }
 0x202   : > { %9124 = vmatpush3.bf16.msra.mxu0 %v11436_v31  ;;  %7944 = vmatmul.mubr.f32.vlgmr.msra.gmra.mrb[4].mxu1 %v11685_v48  ;;  %v9297_v10 = vpack.c.bf16 %v13412_v30, %v13411_v29  ;;  %v13415_v61 = vand.u32 4294901760, %v11625_v0  ;;  %v13416_v46 = vand.u32 4294901760, %v11641_v34  ;;  %v9162_v33 = vpack.c.bf16 %v13418_v22, %v13417_v62  ;;  %v5957_v30 = vld [vmem:[%s12975_s1 + $0x390] sm:$0xff]  ;;  %v4347_v62 = vld [vmem:[%s10058_s25 + $0x3e] sm:$0x1] }
 0x203   : > { %9125 = vmatprep.subr.bf16.mxu0 %v13181_v18  ;;  %9265 = vmatpush3.bf16.msra.mxu1 %v11452_v19  ;;  %v9156_v3 = vpack.c.bf16 %v13410_v15, %v13409_v38  ;;  %v9165_v0 = vpack.c.bf16 %v3209_v13, %v3202_v23  ;;  %v13421_v34 = vand.u32 4294901760, %v11857_v6  ;;  %v5030_v6 = vld [vmem:[%s10058_s25 + $0xf] sm:$0x1]  ;;  %v4389_v13 = vand.u32 4294901760, %v12128_v25  ;;  %v4346_v38 = vld [vmem:[%s10058_s25 + $0x36] sm:$0x1] }
 0x204   : > { %7978 = vmatprep.mubr.msk.f32.mxu1 %vm9817_vm0, %v13185_v50  ;;  %9266 = vmatprep.subr.bf16.mxu1 %v13181_v18  ;;  %v9300_v59 = vpack.c.bf16 %v13416_v46, %v13415_v61  ;;  %v12217_v61 = vld [vmem:[%s12975_s1 + $0x330] sm:$0xff]  ;;  %v12222_v46 = vld [vmem:[%s12975_s1 + $0x338] sm:$0xff]  ;;  %v4383_v22 = vrot.slane %v4346_v38, 2 }
 0x205   : > { %v9306_v21 = vpack.c.bf16 %v13421_v34, %v3877_v2  ;;  %v4344_v2 = vld [vmem:[%s10058_s25 + $0x26] sm:$0x1]  ;;  %v12325_v38 = vld [vmem:[%s12975_s1 + $0x358] sm:$0xff] }
 0x206   : > { %9127 = vmatpush3.bf16.msra.mxu0 %v13380_v17 }
 0x207   : > { %9128 = vmatprep.subr.bf16.mxu0 %v13181_v18  ;;  %9268 = vmatpush3.bf16.msra.mxu1 %v13381_v32 }
 0x208   : > { %9269 = vmatprep.subr.bf16.mxu1 %v13181_v18 }
 0x20a   : > { %9130 = vmatpush3.bf16.msra.mxu0 %v13382_v58 }
 0x20b   : > { %9131 = vmatprep.subr.bf16.mxu0 %v13181_v18  ;;  %9271 = vmatpush3.bf16.msra.mxu1 %v13383_v47 }
 0x20c   : > { %9272 = vmatprep.subr.bf16.mxu1 %v13181_v18 }
 0x20e   : > { %9133 = vmatpush3.bf16.msra.mxu0 %v13384_v53 }
 0x20f   : > { %9134 = vmatprep.subr.bf16.mxu0 %v13181_v18  ;;  %9274 = vmatpush3.bf16.msra.mxu1 %v13385_v14 }
 0x210   : > { %9275 = vmatprep.subr.bf16.mxu1 %v13181_v18 }
 0x212   : > { %9136 = vmatpush3.bf16.msra.mxu0 %v13386_v36 }
 0x213   : > { %9137 = vmatprep.subr.bf16.mxu0 %v13181_v18  ;;  %9277 = vmatpush3.bf16.msra.mxu1 %v13387_v39 }
 0x214   : > { %9278 = vmatprep.subr.bf16.mxu1 %v13181_v18 }
 0x216   : > { %9139 = vmatpush3.bf16.msra.mxu0 %v13388_v51 }
 0x217   : > { %9140 = vmatprep.subr.bf16.mxu0 %v13181_v18  ;;  %9280 = vmatpush3.bf16.msra.mxu1 %v13389_v27 }
 0x218   : > { %9281 = vmatprep.subr.bf16.mxu1 %v13181_v18 }
 0x21a   : > { %9142 = vmatpush3.bf16.msra.mxu0 %v13390_v56 }
 0x21b   : > { %9143 = vmatprep.subr.bf16.mxu0 %v13181_v18  ;;  %9283 = vmatpush3.bf16.msra.mxu1 %v13393_v40 }
 0x21c   : > { %9284 = vmatprep.subr.bf16.mxu1 %v13181_v18 }
 0x21d   : > { %7769 = vmatmul.mubr.f32.vlgmr.msra.gmra.mrb[4].mxu0 %v13394_v49  ;;  %v13403_v49 = vand.u32 4294901760, %v11537_v16  ;;  %v13408_v16 = vand.u32 4294901760, %v11573_v63  ;;  %v13414_v63 = vand.u32 4294901760, %v11669_v42  ;;  %v13420_v42 = vand.u32 4294901760, %v11714_v54 }
 0x21e   : > { %9145 = vmatpush3.bf16.msra.mxu0 %v9144_v12  ;;  %7803 = vmatprep.mubr.msk.f32.mxu0 %vm9817_vm0, %v13185_v50  ;;  %v13402_v12 = vand.u32 4294901760, %v11685_v48  ;;  %v9153_v48 = vpack.c.bf16 %v13406_v28, %v13405_v45  ;;  %v13422_v54 = vand.u32 4294901760, %v11883_v43  ;;  %v4392_v43 = vand.u32 4294901760, %v12133_v8 }
 0x21f   : > { %9146 = vmatprep.subr.bf16.mxu0 %v13181_v18  ;;  %9286 = vmatpush3.bf16.msra.mxu1 %v13397_v24  ;;  %v9291_v26 = vpack.c.bf16 %v13404_v1, %v13403_v49  ;;  %v4379_v49 = vrot.slane %v4344_v2, 4 }
 0x220   : > { %9287 = vmatprep.subr.bf16.mxu1 %v13181_v18 }
 0x222   : > { %9148 = vmatpush3.bf16.msra.mxu0 %v9147_v44  ;;  %7979 = vmatmul.mubr.f32.vlgmr.msra.gmra.mrb[4].mxu1 %v13402_v12  ;;  %v13407_v44 = vand.u32 4294901760, %v11565_v41  ;;  %v13413_v41 = vand.u32 4294901760, %v11645_v20  ;;  %v13419_v20 = vand.u32 4294901760, %v11681_v55  ;;  %v9309_v55 = vpack.c.bf16 %v13422_v54, %v3891_v9  ;;  %v4345_v12 = vld [vmem:[%s10058_s25 + $0x2e] sm:$0x1]  ;;  %v5959_v54 = vld [vmem:[%s12975_s1 + $0x3a0] sm:$0xff] }
 0x223   : > { %9149 = vmatprep.subr.bf16.mxu0 %v13181_v18  ;;  %9289 = vmatpush3.bf16.msra.mxu1 %v9288_v60  ;;  %v4377_v9 = vrot.slane %v4343_v4, 5  ;;  %v4381_v15 = vrot.slane %v4345_v12, 3  ;;  %v5090_v2 = vand.u32 4294901760, %v5959_v54 }
 0x224   : > { %8013 = vmatprep.mubr.msk.f32.mxu1 %vm9817_vm0, %v13185_v50  ;;  %9290 = vmatprep.subr.bf16.mxu1 %v13181_v18  ;;  %v9294_v5 = vpack.c.bf16 %v13408_v16, %v13407_v44  ;;  %v9159_v60 = vpack.c.bf16 %v13414_v63, %v13413_v41 }
 0x226   : > { %9151 = vmatpush3.bf16.msra.mxu0 %v9150_v7  ;;  %v9303_v7 = vpack.c.bf16 %v13420_v42, %v13419_v20  ;;  %v5084_v42 = vand.u32 4294901760, %v5957_v30 }
 0x227   : > { %9152 = vmatprep.subr.bf16.mxu0 %v13181_v18  ;;  %9292 = vmatpush3.bf16.msra.mxu1 %v9291_v26 }
 0x228   : > { %9293 = vmatprep.subr.bf16.mxu1 %v13181_v18 }
 0x22a   : > { %9154 = vmatpush3.bf16.msra.mxu0 %v9153_v48 }
 0x22b   : > { %9155 = vmatprep.subr.bf16.mxu0 %v13181_v18  ;;  %9295 = vmatpush3.bf16.msra.mxu1 %v9294_v5  ;;  %v12185_v5 = vld [vmem:[%s12975_s1 + $0x320] sm:$0xff] }
 0x22c   : > { %9296 = vmatprep.subr.bf16.mxu1 %v13181_v18  ;;  %v4401_v63 = vand.u32 4294901760, %v12185_v5 }
 0x22e   : > { %9157 = vmatpush3.bf16.msra.mxu0 %v9156_v3  ;;  %v5033_v3 = vld [vmem:[%s10058_s25 + $0x27] sm:$0x1] }
 0x22f   : > { %9158 = vmatprep.subr.bf16.mxu0 %v13181_v18  ;;  %9298 = vmatpush3.bf16.msra.mxu1 %v9297_v10  ;;  %v5958_v10 = vld [vmem:[%s12975_s1 + $0x398] sm:$0xff]  ;;  %v5068_v20 = vrot.slane %v5033_v3, 4 }
 0x230   : > { %9299 = vmatprep.subr.bf16.mxu1 %v13181_v18 }
 0x232   : > { %9160 = vmatpush3.bf16.msra.mxu0 %v9159_v60 }
 0x233   : > { %9161 = vmatprep.subr.bf16.mxu0 %v13181_v18  ;;  %9301 = vmatpush3.bf16.msra.mxu1 %v9300_v59 }
 0x234   : > { %9302 = vmatprep.subr.bf16.mxu1 %v13181_v18 }
 0x236   : > { %9163 = vmatpush3.bf16.msra.mxu0 %v9162_v33  ;;  %v5034_v33 = vld [vmem:[%s10058_s25 + $0x2f] sm:$0x1] }
 0x237   : > { %9164 = vmatprep.subr.bf16.mxu0 %v13181_v18  ;;  %9304 = vmatpush3.bf16.msra.mxu1 %v9303_v7  ;;  %v5087_v7 = vand.u32 4294901760, %v5958_v10  ;;  %v5070_v4 = vrot.slane %v5034_v33, 3 }
 0x238   : > { %9305 = vmatprep.subr.bf16.mxu1 %v13181_v18 }
 0x23a   : > { %9166 = vmatpush3.bf16.msra.mxu0 %v9165_v0 }
 0x23b   : > { %9167 = vmatprep.subr.bf16.mxu0 %v13181_v18  ;;  %9307 = vmatpush3.bf16.msra.mxu1 %v9306_v21  ;;  %v12236_v21 = vsub.f32 %v12128_v25, %v4389_v13  ;;  %v5035_v25 = vld [vmem:[%s10058_s25 + $0x37] sm:$0x1] }
 0x23c   : > { %9308 = vmatprep.subr.bf16.mxu1 %v13181_v18  ;;  %v5072_v12 = vrot.slane %v5035_v25, 2 }
 0x23d   : > { %7804 = vmatmul.mubr.f32.vlgmr.msra.gmra.mrb[4].mxu0 %v11567_v11 }
 0x23e   : > { %9169 = vmatpush3.bf16.msra.mxu0 %v11397_v37  ;;  %7838 = vmatprep.mubr.msk.f32.mxu0 %vm9817_vm0, %v13185_v50  ;;  %v4341_v37 = vld [vmem:[%s10058_s25 + $0xe] sm:$0x1] }
 0x23f   : > { %9170 = vmatprep.subr.bf16.mxu0 %v13181_v18  ;;  %9310 = vmatpush3.bf16.msra.mxu1 %v9309_v55  ;;  %v5960_v55 = vld [vmem:[%s12975_s1 + $0x3a8] sm:$0xff] }
 0x240   : > { %9311 = vmatprep.subr.bf16.mxu1 %v13181_v18 }
 0x242   : > { %9172 = vmatpush3.bf16.msra.mxu0 %v11436_v31  ;;  %8014 = vmatmul.mubr.f32.vlgmr.msra.gmra.mrb[4].mxu1 %v11638_v52  ;;  %v4342_v31 = vld [vmem:[%s10058_s25 + $0x16] sm:$0x1] }
 0x243   : > { %9173 = vmatprep.subr.bf16.mxu0 %v13181_v18  ;;  %9313 = vmatpush3.bf16.msra.mxu1 %v11452_v19  ;;  %v4373_v19 = vrot.slane %v4341_v37, 7  ;;  %v4375_v35 = vrot.slane %v4342_v31, 6  ;;  %v4410_v37 = vand.u32 4294901760, %v12222_v46  ;;  %v12249_v31 = vsub.f32 %v12133_v8, %v4392_v43  ;;  %v12266_v8 = vld [vmem:[%s12975_s1 + $0x340] sm:$0xff] }
 0x244   : > { %8048 = vmatprep.mubr.msk.f32.mxu1 %vm9817_vm0, %v13185_v50  ;;  %9314 = vmatprep.subr.bf16.mxu1 %v13181_v18 }
 0x245   : > { %v4374_v23 = vsel %vm233_vm1, %v4373_v19, %v4340_v57  ;;  %v4385_v57 = vrot.slane %v4347_v62, 1 }
 0x246   : > { %9175 = vmatpush3.bf16.msra.mxu0 %v13380_v17  ;;  %v5031_v17 = vld [vmem:[%s10058_s25 + $0x17] sm:$0x1] }
 0x247   : > { %9176 = vmatprep.subr.bf16.mxu0 %v13181_v18  ;;  %9316 = vmatpush3.bf16.msra.mxu1 %v13381_v32  ;;  %v5062_v32 = vrot.slane %v5030_v6, 7  ;;  %v5064_v1 = vrot.slane %v5031_v17, 6  ;;  %v12271_v6 = vld [vmem:[%s12975_s1 + $0x348] sm:$0xff]  ;;  %v5961_v17 = vld [vmem:[%s12975_s1 + $0x3b0] sm:$0xff] }
 0x248   : > { %9317 = vmatprep.subr.bf16.mxu1 %v13181_v18 }
 0x24a   : > { %9178 = vmatpush3.bf16.msra.mxu0 %v13382_v58  ;;  %v12150_v58 = vld [vmem:[%s12975_s1 + $0x310] sm:$0xff] }
 0x24b   : > { %9179 = vmatprep.subr.bf16.mxu0 %v13181_v18  ;;  %9319 = vmatpush3.bf16.msra.mxu1 %v13383_v47  ;;  %v12155_v47 = vld [vmem:[%s12975_s1 + $0x318] sm:$0xff]  ;;  %v4395_v26 = vand.u32 4294901760, %v12150_v58 }
 0x24c   : > { %9320 = vmatprep.subr.bf16.mxu1 %v13181_v18  ;;  %v4398_v45 = vand.u32 4294901760, %v12155_v47 }
 0x24e   : > { %9181 = vmatpush3.bf16.msra.mxu0 %v13384_v53  ;;  %v4376_v53 = vsel %vm236_vm2, %v4375_v35, %v4374_v23 }
 0x24f   : > { %9182 = vmatprep.subr.bf16.mxu0 %v13181_v18  ;;  %9322 = vmatpush3.bf16.msra.mxu1 %v13385_v14  ;;  %v5029_v14 = vld [vmem:[%s10058_s25 + $0x7] sm:$0x1]  ;;  %v4378_v28 = vsel %vm239_vm3, %v4377_v9, %v4376_v53  ;;  %v5093_v9 = vand.u32 4294901760, %v5960_v55  ;;  %v12293_v53 = vsub.f32 %v12150_v58, %v4395_v26 }
 0x250   : > { %9323 = vmatprep.subr.bf16.mxu1 %v13181_v18  ;;  %v5063_v48 = vsel %vm233_vm1, %v5062_v32, %v5029_v14  ;;  %v5962_v32 = vld [vmem:[%s12975_s1 + $0x3b8] sm:$0xff]  ;;  %v12298_v14 = vsub.f32 %v12155_v47, %v4398_v45  ;;  %v5963_v58 = vld [vmem:[%s12975_s1 + $0x3c0] sm:$0xff]  ;;  %v12311_v47 = vsub.f32 %v5957_v30, %v5084_v42 }
 0x251   : > { %v5065_v41 = vsel %vm236_vm2, %v5064_v1, %v5063_v48  ;;  %v5099_v48 = vand.u32 4294901760, %v5962_v32 }
 0x252   : > { %9184 = vmatpush3.bf16.msra.mxu0 %v13386_v36  ;;  %v5955_v36 = vld [vmem:[%s12975_s1 + $0x380] sm:$0xff] }
 0x253   : > { %9185 = vmatprep.subr.bf16.mxu0 %v13181_v18  ;;  %9325 = vmatpush3.bf16.msra.mxu1 %v13387_v39  ;;  %v12166_v39 = vld [vmem:[%s12975_s1 + $0x388] sm:$0xff]  ;;  %v5078_v44 = vand.u32 4294901760, %v5955_v36 }
 0x254   : > { %9326 = vmatprep.subr.bf16.mxu1 %v13181_v18  ;;  %v5081_v16 = vand.u32 4294901760, %v12166_v39 }
 0x255   : > { %v12260_v35 = vsub.f32 %v5955_v36, %v5078_v44 }
 0x256   : > { %9187 = vmatpush3.bf16.msra.mxu0 %v13388_v51  ;;  %v12171_v51 = vpack.c.bf16 %v4392_v43, %v4389_v13  ;;  %v12226_v59 = vpack.c.bf16 %v5081_v16, %v5078_v44  ;;  %v12279_v43 = vpack.c.bf16 %v5087_v7, %v5084_v42  ;;  %v5964_v44 = vld [vmem:[%s12975_s1 + $0x3c8] sm:$0xff] }
 0x257   : > { %9188 = vmatprep.subr.bf16.mxu0 %v13181_v18  ;;  %9328 = vmatpush3.bf16.msra.mxu1 %v13389_v27  ;;  %v5032_v27 = vld [vmem:[%s10058_s25 + $0x1f] sm:$0x1] }
 0x258   : > { %9329 = vmatprep.subr.bf16.mxu1 %v13181_v18  ;;  %v5066_v29 = vrot.slane %v5032_v27, 5  ;;  %13424 = vst [vmem:[#allocation24_spill] sm:$0xff] %v12279_v43  ;;  %v4416_v27 = vand.u32 4294901760, %v12271_v6 }
 0x25a   : > { %9190 = vmatpush3.bf16.msra.mxu0 %v13390_v56  ;;  %v12190_v56 = vld [vmem:[%s12975_s1 + $0x328] sm:$0xff]  ;;  %v5067_v34 = vsel %vm239_vm3, %v5066_v29, %v5065_v41  ;;  %v12338_v29 = vpack.c.bf16 %v5093_v9, %v5090_v2  ;;  %v12390_v25 = vsub.f32 %v12271_v6, %v4416_v27 }
 0x25b   : > { %9335 = vmatprep.subr.bf16.mxu0 %v13181_v18  ;;  %9331 = vmatpush3.bf16.msra.mxu1 %v13393_v40  ;;  %v4380_v40 = vsel %vm242_vm4, %v4379_v49, %v4378_v28  ;;  %v4404_v60 = vand.u32 4294901760, %v12190_v56  ;;  %v5069_v13 = vsel %vm242_vm4, %v5068_v20, %v5067_v34  ;;  %v4413_v49 = vand.u32 4294901760, %v12266_v8  ;;  %v5966_v34 = vld [vmem:[%s12975_s1 + $0x3d8] sm:$0xff] }
 0x25c   : > { %9332 = vmatprep.subr.bf16.mxu1 %v13181_v18  ;;  %v4382_v0 = vsel %vm245_vm5, %v4381_v15, %v4380_v40  ;;  %v5096_v28 = vand.u32 4294901760, %v5961_v17  ;;  %v12331_v15 = vsub.f32 %v12185_v5, %v4401_v63  ;;  %13426 = vst [vmem:[#allocation6_spill] sm:$0xff] %v12338_v29  ;;  %v5102_v40 = vand.u32 4294901760, %v5963_v58 }
 0x25d   : > { %7839 = vmatmul.mubr.f32.vlgmr.msra.gmra.mrb[4].mxu0 %v11567_v11  ;;  %v12210_v11 = vpack.c.bf16 %v4398_v45, %v4395_v26  ;;  %v12256_v19 = vpack.c.bf16 %v4404_v60, %v4401_v63  ;;  %v4384_v23 = vsel %vm248_vm6, %v4383_v22, %v4382_v0  ;;  %v5071_v26 = vsel %vm245_vm5, %v5070_v4, %v5069_v13  ;;  %v12369_v0 = vld [vmem:[%s12975_s1 + $0x368] sm:$0xff] }
 0x25e   : > { %9337 = vmatpush3.bf16.msra.mxu0 %v12171_v51  ;;  %8083 = vmatprep.mubr.msk.f32.mxu0 %vm9817_vm0, %v13185_v50  ;;  %v4386_v1 = vsel %vm251_vm7, %v4385_v57, %v4384_v23  ;;  %v12313_v45 = vsub.f32 %v5958_v10, %v5087_v7  ;;  %v12336_v3 = vsub.f32 %v12190_v56, %v4404_v60  ;;  %v5105_v63 = vand.u32 4294901760, %v5964_v44  ;;  %v12364_v7 = vld [vmem:[%s12975_s1 + $0x360] sm:$0xff] }
 0x25f   : > { %9338 = vmatprep.subr.bf16.mxu0 %v13181_v18  ;;  %9334 = vmatpush3.bf16.msra.mxu1 %v13397_v24  ;;  %v4407_v24 = vand.u32 4294901760, %v12217_v61  ;;  %13423 = vst [vmem:[#allocation7_spill] sm:$0xff] %v12256_v19  ;;  %v12341_v10 = vsub.f32 %v5959_v54, %v5090_v2  ;;  %v12343_v41 = vand.u32 4294901760, %v4386_v1  ;;  %v5073_v62 = vsel %vm248_vm6, %v5072_v12, %v5071_v26 }
 0x260   : > { %9479 = vmatprep.subr.bf16.mxu1 %v13181_v18  ;;  %v12347_v5 = vpack.c.bf16 %v4416_v27, %v4413_v49  ;;  %v4422_v56 = vand.u32 4294901760, %v12325_v38  ;;  %v12350_v60 = vsub.f32 %v5960_v55, %v5093_v9  ;;  %v12356_v20 = vsub.f32 %v12222_v46, %v4410_v37  ;;  %v5965_v46 = vld [vmem:[%s12975_s1 + $0x3d0] sm:$0xff] }
 0x261   : > { %v12300_v36 = vpack.c.bf16 %v4410_v37, %v4407_v24  ;;  %v12353_v33 = vsub.f32 %v12217_v61, %v4407_v24  ;;  %v12358_v42 = vpack.c.bf16 %v5099_v48, %v5096_v28  ;;  %v12372_v61 = vsub.f32 %v5961_v17, %v5096_v28 }
 0x262   : > { %9340 = vmatpush3.bf16.msra.mxu0 %v12210_v11  ;;  %8049 = vmatmul.mubr.f32.vlgmr.msra.gmra.mrb[4].mxu1 %v11638_v52  ;;  %v12277_v52 = vsub.f32 %v12166_v39, %v5081_v16  ;;  %v5036_v39 = vld [vmem:[%s10058_s25 + $0x3f] sm:$0x1]  ;;  %v5949_v16 = vld [vmem:[%s12975_s1 + $0x350] sm:$0xff]  ;;  %13427 = vst [vmem:[#allocation8_spill] sm:$0xff] %v12347_v5  ;;  %v13121_v54 = vand.u32 4294901760, %v12236_v21  ;;  %v13120_v55 = vand.u32 4294901760, %v12249_v31  ;;  %v12384_v37 = vsub.f32 %v5962_v32, %v5099_v48 }
 0x263   : > { %9341 = vmatprep.subr.bf16.mxu0 %v13181_v18  ;;  %9481 = vmatpush3.bf16.msra.mxu1 %v12226_v59  ;;  %13425 = vst [vmem:[#allocation9_spill] sm:$0xff] %v12300_v36  ;;  %v5074_v30 = vrot.slane %v5036_v39, 1  ;;  %v4419_v22 = vand.u32 4294901760, %v5949_v16  ;;  %13428 = vst [vmem:[#allocation11_spill] sm:$0xff] %v12358_v42  ;;  %v12387_v57 = vsub.f32 %v12266_v8, %v4413_v49  ;;  %v13123_v2 = vand.u32 4294901760, %v12364_v7  ;;  %v12408_v32 = vld [vmem:[%s12975_s1 + $0x370] sm:$0xff] }
 0x264   : > { %8293 = vmatprep.mubr.msk.f32.mxu1 %vm9817_vm0, %v13185_v50  ;;  %9482 = vmatprep.subr.bf16.mxu1 %v13181_v18  ;;  %v12393_v4 = vsub.f32 %v4386_v1, %v12343_v41  ;;  %v12396_v23 = vpack.c.bf16 %v5105_v63, %v5102_v40  ;;  %v13122_v9 = vand.u32 4294901760, %v12369_v0  ;;  %v12402_v17 = vsub.f32 %v5963_v58, %v5102_v40  ;;  %v12413_v39 = vld [vmem:[%s12975_s1 + $0x378] sm:$0xff]  ;;  %v12425_v1 = vld [vmem:[%s12975_s1 + $0x3e0] sm:$0xff] }
 0x265   : > { %v5075_v24 = vsel %vm251_vm7, %v5074_v30, %v5073_v62  ;;  %v12398_v13 = vpack.c.bf16 %v4422_v56, %v4419_v22  ;;  %v5108_v8 = vand.u32 4294901760, %v5965_v46  ;;  %v5111_v6 = vand.u32 4294901760, %v5966_v34 }
 0x266   : > { %9343 = vmatpush3.bf16.msra.mxu0 %v12256_v19  ;;  %13429 = vst [vmem:[#allocation10_spill] sm:$0xff] %v12396_v23  ;;  %v12415_v12 = vand.u32 4294901760, %v5075_v24  ;;  %v12418_v49 = vsub.f32 %v5964_v44, %v5105_v63  ;;  %v12420_v58 = vsub.f32 %v5949_v16, %v4419_v22  ;;  %v4483_v26 = vsub.f32 %v12236_v21, %v13121_v54  ;;  %v12437_v44 = vld [vmem:[%s12975_s1 + $0x3e8] sm:$0xff] }
 0x267   : > { %9344 = vmatprep.subr.bf16.mxu0 %v13181_v18  ;;  %9484 = vmatpush3.bf16.msra.mxu1 %v12279_v43  ;;  %13430 = vst [vmem:[#allocation13_spill] sm:$0xff] %v12398_v13  ;;  %v4490_v28 = vsub.f32 %v12249_v31, %v13120_v55  ;;  %v13126_v16 = vand.u32 4294901760, %v12393_v4  ;;  %v13129_v30 = vand.u32 4294901760, %v12260_v35  ;;  %v13132_v40 = vand.u32 4294901760, %v12293_v53 }
 0x268   : > { %9485 = vmatprep.subr.bf16.mxu1 %v13181_v18  ;;  %v12445_v63 = vsub.f32 %v12325_v38, %v4422_v56  ;;  %v12451_v22 = vpack.c.bf16 %v13122_v9, %v13123_v2  ;;  %v12455_v55 = vpack.c.bf16 %v5111_v6, %v5108_v8  ;;  %v12457_v54 = vsub.f32 %v5965_v46, %v5108_v8  ;;  %v12471_v46 = vld [vmem:[%s12975_s1 + $0x3f0] sm:$0xff] }
 0x269   : > { %v12461_v62 = vsub.f32 %v5075_v24, %v12415_v12  ;;  %v4484_v2 = vand.u32 4294901760, %v4483_v26  ;;  %v12476_v24 = vld [vmem:[%s12975_s1 + $0x3f8] sm:$0xff]  ;;  %v4472_v8 = vsub.f32 %v12393_v4, %v13126_v16  ;;  %v5172_v26 = vsub.f32 %v12260_v35, %v13129_v30 }
 0x26a   : > { %9346 = vmatpush3.bf16.msra.mxu0 %v12300_v36  ;;  %13431 = vst [vmem:[#allocation12_spill] sm:$0xff] %v12451_v22  ;;  %13432 = vst [vmem:[#allocation15_spill] sm:$0xff] %v12455_v55  ;;  %v13433_v9 = vand.u32 4294901760, %v12298_v14  ;;  %v13435_v16 = vand.u32 4294901760, %v12413_v39  ;;  %v13450_v36 = vand.u32 4294901760, %v12369_v0  ;;  %v13452_v43 = vand.u32 4294901760, %v12356_v20 }
 0x26b   : > { %9347 = vmatprep.subr.bf16.mxu0 %v13181_v18  ;;  %9487 = vmatpush3.bf16.msra.mxu1 %v12338_v29  ;;  %v13457_v19 = vand.u32 4294901760, %v12408_v32 }
 0x26c   : > { %9488 = vmatprep.subr.bf16.mxu1 %v13181_v18  ;;  %v4504_v56 = vsub.f32 %v12298_v14, %v13433_v9  ;;  %v13437_v9 = vand.u32 4294901760, %v12277_v52 }
 0x26e   : > { %9349 = vmatpush3.bf16.msra.mxu0 %v12347_v5  ;;  %v5173_v5 = vand.u32 4294901760, %v5172_v26  ;;  %v4505_v29 = vand.u32 4294901760, %v4504_v56  ;;  %v13444_v26 = vand.u32 4294901760, %v12311_v47 }
 0x26f   : > { %9350 = vmatprep.subr.bf16.mxu0 %v13181_v18  ;;  %9490 = vmatpush3.bf16.msra.mxu1 %v12358_v42  ;;  %v13439_v42 = vand.u32 4294901760, %v12437_v44 }
 0x270   : > { %v2269_v27 = vpop.f32.mrb[2].mxu0  ;;  %9491 = vmatprep.subr.bf16.mxu1 %v13181_v18 }
 0x271   : > { %5723 = vrot.lane.b32.xlu0 %v2269_v27, %s9820_s22  ;;  %v7420_v48 = vpop.f32.mrb[3].mxu0  ;;  %v4491_v27 = vand.u32 4294901760, %v4490_v28  ;;  %v4497_v28 = vsub.f32 %v12293_v53, %v13132_v40  ;;  %s12932_s22 = scalar_lea.hbm %s12976_s2, %s5972_s14 }
 0x272   : > { %9352 = vmatpush3.bf16.msra.mxu0 %v12398_v13  ;;  %v12490_v48 = vsub.f32 %v5966_v34, %v5111_v6  ;;  %v5179_v6 = vsub.f32 %v12277_v52, %v13437_v9  ;;  %v4473_v9 = vand.u32 4294901760, %v4472_v8 }
 0x273   : > { %9353 = vmatprep.subr.bf16.mxu0 %v13181_v18  ;;  %9493 = vmatpush3.bf16.msra.mxu1 %v12396_v23  ;;  %v13434_v23 = vand.u32 4294901760, %v12408_v32  ;;  %v9360_v30 = vpack.c.bf16 %v4491_v27, %v4484_v2  ;;  %v13443_v27 = vand.u32 4294901760, %v12461_v62  ;;  %v13447_v2 = vand.u32 4294901760, %v12471_v46 }
 0x274   : > { %9494 = vmatprep.subr.bf16.mxu1 %v13181_v18  ;;  %v5180_v8 = vand.u32 4294901760, %v5179_v6 }
 0x275   : > { %v2958_v38 = vpop.f32.mrb[2].mxu1  ;;  %v12497_v13 = vpack.c.bf16 %v13435_v16, %v13434_v23  ;;  %v13438_v16 = vand.u32 4294901760, %v12425_v1  ;;  %v13441_v23 = vand.u32 4294901760, %v12331_v15  ;;  %v5161_v56 = vsub.f32 %v12461_v62, %v13443_v27 }
 0x276   : > { %9355 = vmatpush3.bf16.msra.mxu0 %v12451_v22  ;;  %5727 = vrot.lane.b32.xlu1 %v2958_v38, %s9821_s3  ;;  %v7630_v40 = vpop.f32.mrb[3].mxu1  ;;  %v4498_v22 = vand.u32 4294901760, %v4497_v28  ;;  %v5186_v28 = vsub.f32 %v12311_v47, %v13444_v26  ;;  %v13448_v27 = vand.u32 4294901760, %v12476_v24 }
 0x277   : > { %13436 = vst [vmem:[#allocation14_spill] sm:$0xff] %v12497_v13  ;;  %9356 = vmatprep.subr.bf16.mxu0 %v13181_v18  ;;  %9496 = vmatpush3.bf16.msra.mxu1 %v12455_v55  ;;  %v12513_v38 = vpack.c.bf16 %v13439_v42, %v13438_v16  ;;  %v4511_v55 = vsub.f32 %v12331_v15, %v13441_v23  ;;  %v13442_v42 = vand.u32 4294901760, %v12336_v3  ;;  %v13445_v23 = vand.u32 4294901760, %v12313_v45 }
 0x278   : > { %9497 = vmatprep.subr.bf16.mxu1 %v13181_v18  ;;  %v12547_v6 = vpack.c.bf16 %v13448_v27, %v13447_v2 }
 0x279   : > { %13440 = vst [vmem:[#allocation17_spill] sm:$0xff] %v12513_v38  ;;  %v4518_v16 = vsub.f32 %v12336_v3, %v13442_v42  ;;  %v5193_v34 = vsub.f32 %v12313_v45, %v13445_v23  ;;  %v13446_v42 = vand.u32 4294901760, %v12364_v7  ;;  %v12554_v23 = vsub.f32 %v12369_v0, %v13450_v36 }
 0x27a   : > { %9358 = vmatpush3.bf16.msra.mxu0 %v12497_v13  ;;  %13449 = vst [vmem:[#allocation16_spill] sm:$0xff] %v12547_v6  ;;  %v4512_v2 = vand.u32 4294901760, %v4511_v55  ;;  %v13451_v13 = vand.u32 4294901760, %v12353_v33  ;;  %v4532_v36 = vsub.f32 %v12356_v20, %v13452_v43  ;;  %v5162_v0 = vand.u32 4294901760, %v5161_v56 }
 0x27b   : > { %9359 = vmatprep.subr.bf16.mxu0 %v13181_v18  ;;  %v12540_v40 = vsub.f32 %v12364_v7, %v13446_v42  ;;  %9499 = vmatpush3.bf16.msra.mxu1 %v12513_v38  ;;  %v9363_v7 = vpack.c.bf16 %v4505_v29, %v4498_v22  ;;  %v13153_v42 = vand.u32 4294901760, %v12387_v57  ;;  %v4519_v27 = vand.u32 4294901760, %v4518_v16 }
 0x27c   : > { %9500 = vmatprep.subr.bf16.mxu1 %v13181_v18  ;;  %v4525_v26 = vsub.f32 %v12353_v33, %v13451_v13  ;;  %v9504_v29 = vpack.c.bf16 %v5180_v8, %v5173_v5  ;;  %v5187_v22 = vand.u32 4294901760, %v5186_v28  ;;  %v13453_v55 = vand.u32 4294901760, %v12341_v10 }
 0x27d   : > { %8084 = vmatmul.mubr.f32.vlgmr.msra.gmra.mrb[6].mxu0 %v4473_v9  ;;  %v5194_v9 = vand.u32 4294901760, %v5193_v34  ;;  %v13454_v13 = vand.u32 4294901760, %v12350_v60  ;;  %v4539_v5 = vsub.f32 %v12387_v57, %v13153_v42  ;;  %v13455_v34 = vand.u32 4294901760, %v12390_v25 }
 0x27e   : > { %9361 = vmatpush3.bf16.msra.mxu0 %v9360_v30  ;;  %8118 = vmatprep.mubr.msk.f32.mxu0 %vm9817_vm0, %v13185_v50  ;;  %v5200_v30 = vsub.f32 %v12341_v10, %v13453_v55  ;;  %v13456_v55 = vand.u32 4294901760, %v12425_v1  ;;  %v9366_v38 = vpack.c.bf16 %v4519_v27, %v4512_v2  ;;  %v4526_v43 = vand.u32 4294901760, %v4525_v26 }
 0x27f   : > { %9362 = vmatprep.subr.bf16.mxu0 %v13181_v18  ;;  %9502 = vmatpush3.bf16.msra.mxu1 %v12547_v6  ;;  %v5207_v16 = vsub.f32 %v12350_v60, %v13454_v13  ;;  %v4546_v56 = vsub.f32 %v12390_v25, %v13455_v34  ;;  %v4533_v6 = vand.u32 4294901760, %v4532_v36  ;;  %v12594_v42 = vsub.f32 %v12408_v32, %v13457_v19 }
 0x280   : > { %9503 = vmatprep.subr.bf16.mxu1 %v13181_v18  ;;  %v12589_v13 = vsub.f32 %v12425_v1, %v13456_v55  ;;  %v9507_v34 = vpack.c.bf16 %v5194_v9, %v5187_v22  ;;  %v13154_v28 = vand.u32 4294901760, %v12402_v17  ;;  %v13155_v8 = vand.u32 4294901760, %v12418_v49 }
 0x281   : > { %v5201_v1 = vand.u32 4294901760, %v5200_v30  ;;  %v5208_v55 = vand.u32 4294901760, %v5207_v16  ;;  %v13459_v2 = vand.u32 4294901760, %v12384_v37  ;;  %v4540_v32 = vand.u32 4294901760, %v4539_v5 }
 0x282   : > { %9364 = vmatpush3.bf16.msra.mxu0 %v9363_v7  ;;  %8294 = vmatmul.mubr.f32.vlgmr.msra.gmra.mrb[6].mxu1 %v5162_v0  ;;  %v13458_v7 = vand.u32 4294901760, %v12372_v61  ;;  %v4547_v27 = vand.u32 4294901760, %v4546_v56  ;;  %v13460_v36 = vand.u32 4294901760, %v12420_v58  ;;  %v13462_v9 = vand.u32 4294901760, %v12413_v39 }
 0x283   : > { %9365 = vmatprep.subr.bf16.mxu0 %v13181_v18  ;;  %9505 = vmatpush3.bf16.msra.mxu1 %v9504_v29  ;;  %v5221_v19 = vsub.f32 %v12384_v37, %v13459_v2  ;;  %v13461_v29 = vand.u32 4294901760, %v12445_v63  ;;  %v9369_v16 = vpack.c.bf16 %v4533_v6, %v4526_v43  ;;  %v5228_v56 = vsub.f32 %v12402_v17, %v13154_v28 }
 0x284   : > { %v5214_v26 = vsub.f32 %v12372_v61, %v13458_v7  ;;  %8328 = vmatprep.mubr.msk.f32.mxu1 %vm9817_vm0, %v13185_v50  ;;  %9506 = vmatprep.subr.bf16.mxu1 %v13181_v18  ;;  %v4553_v0 = vsub.f32 %v12420_v58, %v13460_v36  ;;  %v12617_v30 = vsub.f32 %v12413_v39, %v13462_v9  ;;  %v13464_v5 = vand.u32 4294901760, %v12471_v46 }
 0x285   : > { %v4560_v22 = vsub.f32 %v12445_v63, %v13461_v29  ;;  %v5235_v2 = vsub.f32 %v12418_v49, %v13155_v8  ;;  %v9510_v43 = vpack.c.bf16 %v5208_v55, %v5201_v1  ;;  %v5222_v9 = vand.u32 4294901760, %v5221_v19 }
 0x286   : > { %9367 = vmatpush3.bf16.msra.mxu0 %v9366_v38  ;;  %v13463_v38 = vand.u32 4294901760, %v12437_v44  ;;  %v5215_v29 = vand.u32 4294901760, %v5214_v26  ;;  %v12638_v28 = vsub.f32 %v12471_v46, %v13464_v5  ;;  %v9372_v8 = vpack.c.bf16 %v4547_v27, %v4540_v32 }
 0x287   : > { %9368 = vmatprep.subr.bf16.mxu0 %v13181_v18  ;;  %9508 = vmatpush3.bf16.msra.mxu1 %v9507_v34  ;;  %v4554_v36 = vand.u32 4294901760, %v4553_v0  ;;  %v4561_v7 = vand.u32 4294901760, %v4560_v22  ;;  %v13465_v39 = vand.u32 4294901760, %v12540_v40  ;;  %v13466_v34 = vand.u32 4294901760, %v12554_v23 }
 0x288   : > { %v12633_v6 = vsub.f32 %v12437_v44, %v13463_v38  ;;  %9509 = vmatprep.subr.bf16.mxu1 %v13181_v18  ;;  %v4580_v55 = vand.u32 4294901760, %v12594_v42  ;;  %v4587_v26 = vand.u32 4294901760, %v12617_v30  ;;  %v5229_v46 = vand.u32 4294901760, %v5228_v56 }
 0x289   : > { %v4567_v44 = vsub.f32 %v12540_v40, %v13465_v39  ;;  %v4574_v1 = vsub.f32 %v12554_v23, %v13466_v34  ;;  %v5236_v19 = vand.u32 4294901760, %v5235_v2  ;;  %v13467_v32 = vand.u32 4294901760, %v12457_v54 }
 0x28a   : > { %9370 = vmatpush3.bf16.msra.mxu0 %v9369_v16  ;;  %v13468_v0 = vand.u32 4294901760, %v12490_v48  ;;  %v13469_v16 = vand.u32 4294901760, %v12476_v24  ;;  %v9513_v39 = vpack.c.bf16 %v5222_v9, %v5215_v29  ;;  %v5255_v38 = vand.u32 4294901760, %v12589_v13 }
 0x28b   : > { %9371 = vmatprep.subr.bf16.mxu0 %v13181_v18  ;;  %v5242_v27 = vsub.f32 %v12457_v54, %v13467_v32  ;;  %9511 = vmatpush3.bf16.msra.mxu1 %v9510_v43  ;;  %v13156_v56 = vand.u32 4294901760, %v12633_v6  ;;  %v9375_v2 = vpack.c.bf16 %v4561_v7, %v4554_v36  ;;  %v4568_v34 = vand.u32 4294901760, %v4567_v44 }
 0x28c   : > { %v5249_v22 = vsub.f32 %v12490_v48, %v13468_v0  ;;  %v12659_v5 = vsub.f32 %v12476_v24, %v13469_v16  ;;  %9512 = vmatprep.subr.bf16.mxu1 %v13181_v18  ;;  %v4575_v32 = vand.u32 4294901760, %v4574_v1  ;;  %v4581_v0 = vsub.f32 %v12594_v42, %v4580_v55 }
 0x28d   : > { %v4588_v24 = vsub.f32 %v12617_v30, %v4587_v26  ;;  %v9516_v43 = vpack.c.bf16 %v5236_v19, %v5229_v46  ;;  %v5243_v29 = vand.u32 4294901760, %v5242_v27  ;;  %v5263_v7 = vsub.f32 %v12633_v6, %v13156_v56 }
 0x28e   : > { %9373 = vmatpush3.bf16.msra.mxu0 %v9372_v8  ;;  %v5250_v9 = vand.u32 4294901760, %v5249_v22  ;;  %v5256_v8 = vsub.f32 %v12589_v13, %v5255_v38  ;;  %v5269_v36 = vand.u32 4294901760, %v12638_v28  ;;  %v13157_v44 = vand.u32 4294901760, %v12659_v5 }
 0x28f   : > { %9374 = vmatprep.subr.bf16.mxu0 %v13181_v18  ;;  %9514 = vmatpush3.bf16.msra.mxu1 %v9513_v39  ;;  %v9378_v1 = vpack.c.bf16 %v4575_v32, %v4568_v34  ;;  %v4582_v46 = vand.u32 4294901760, %v4581_v0  ;;  %v4589_v19 = vand.u32 4294901760, %v4588_v24  ;;  %v5264_v16 = vand.u32 4294901760, %v5263_v7 }
 0x290   : > { %9515 = vmatprep.subr.bf16.mxu1 %v13181_v18  ;;  %v9519_v27 = vpack.c.bf16 %v5250_v9, %v5243_v29  ;;  %v5257_v22 = vand.u32 4294901760, %v5256_v8  ;;  %v5270_v39 = vsub.f32 %v12638_v28, %v5269_v36  ;;  %v5277_v56 = vsub.f32 %v12659_v5, %v13157_v44 }
 0x291   : > { %v9384_v24 = vpack.c.bf16 %v12249_v31, %v12236_v21  ;;  %v9387_v29 = vpack.c.bf16 %v12298_v14, %v12293_v53  ;;  %v9390_v9 = vpack.c.bf16 %v12336_v3, %v12331_v15  ;;  %v9531_v8 = vpack.c.bf16 %v12313_v45, %v12311_v47 }
 0x292   : > { %9376 = vmatpush3.bf16.msra.mxu0 %v9375_v2  ;;  %v9381_v2 = vpack.c.bf16 %v4589_v19, %v4582_v46  ;;  %v9522_v34 = vpack.c.bf16 %v5264_v16, %v5257_v22  ;;  %v5271_v32 = vand.u32 4294901760, %v5270_v39  ;;  %v5278_v0 = vand.u32 4294901760, %v5277_v56 }
 0x293   : > { %9377 = vmatprep.subr.bf16.mxu0 %v13181_v18  ;;  %9517 = vmatpush3.bf16.msra.mxu1 %v9516_v43  ;;  %v9528_v56 = vpack.c.bf16 %v12277_v52, %v12260_v35  ;;  %v9393_v7 = vpack.c.bf16 %v12356_v20, %v12353_v33  ;;  %v9396_v46 = vpack.c.bf16 %v12390_v25, %v12387_v57 }
 0x294   : > { %9518 = vmatprep.subr.bf16.mxu1 %v13181_v18  ;;  %v9525_v43 = vpack.c.bf16 %v5278_v0, %v5271_v32  ;;  %v9537_v19 = vpack.c.bf16 %v12384_v37, %v12372_v61  ;;  %v9540_v22 = vpack.c.bf16 %v12418_v49, %v12402_v17  ;;  %v9402_v16 = vpack.c.bf16 %v12554_v23, %v12540_v40  ;;  %v13470_v0 = vld [vmem:[#allocation7_spill] sm:$0xff] }
 0x295   : > { %v9543_v39 = vpack.c.bf16 %v12490_v48, %v12457_v54  ;;  %v9549_v32 = vpack.c.bf16 %v12659_v5, %v12638_v28  ;;  %v145_v28 = vld [vmem:[%s10058_s25 + $0x8] sm:$0xff] }
 0x296   : > { %9379 = vmatpush3.bf16.msra.mxu0 %v9378_v1  ;;  %v9534_v1 = vpack.c.bf16 %v12350_v60, %v12341_v10 }
 0x297   : > { %9380 = vmatprep.subr.bf16.mxu0 %v13181_v18  ;;  %9520 = vmatpush3.bf16.msra.mxu1 %v9519_v27  ;;  %v9399_v27 = vpack.c.bf16 %v12445_v63, %v12420_v58 }
 0x298   : > { %9521 = vmatprep.subr.bf16.mxu1 %v13181_v18 }
 0x29a   : > { %9382 = vmatpush3.bf16.msra.mxu0 %v9381_v2  ;;  %v9405_v2 = vpack.c.bf16 %v12617_v30, %v12594_v42 }
 0x29b   : > { %9383 = vmatprep.subr.bf16.mxu0 %v13181_v18  ;;  %9523 = vmatpush3.bf16.msra.mxu1 %v9522_v34  ;;  %v9546_v34 = vpack.c.bf16 %v12633_v6, %v12589_v13  ;;  %v146_v13 = vld [vmem:[%s10058_s25 + $0x10] sm:$0xff] }
 0x29c   : > { %9524 = vmatprep.subr.bf16.mxu1 %v13181_v18 }
 0x29d   : > { %8119 = vmatmul.mubr.f32.vlgmr.msra.gmra.mrb[6].mxu0 %v12343_v41 }
 0x29e   : > { %9385 = vmatpush3.bf16.msra.mxu0 %v9384_v24  ;;  %8153 = vmatprep.mubr.msk.f32.mxu0 %vm9817_vm0, %v13185_v50  ;;  %v13471_v24 = vld [vmem:[#allocation24_spill] sm:$0xff] }
 0x29f   : > { %9386 = vmatprep.subr.bf16.mxu0 %v13181_v18  ;;  %9526 = vmatpush3.bf16.msra.mxu1 %v9525_v43  ;;  %v13472_v43 = vld [vmem:[#allocation9_spill] sm:$0xff] }
 0x2a0   : > { %9527 = vmatprep.subr.bf16.mxu1 %v13181_v18 }
 0x2a2   : > { %9388 = vmatpush3.bf16.msra.mxu0 %v9387_v29  ;;  %8329 = vmatmul.mubr.f32.vlgmr.msra.gmra.mrb[6].mxu1 %v12415_v12  ;;  %v13473_v29 = vld [vmem:[#allocation6_spill] sm:$0xff] }
 0x2a3   : > { %9389 = vmatprep.subr.bf16.mxu0 %v13181_v18  ;;  %9529 = vmatpush3.bf16.msra.mxu1 %v9528_v56  ;;  %v13474_v56 = vld [vmem:[#allocation8_spill] sm:$0xff] }
 0x2a4   : > { %8363 = vmatprep.mubr.msk.f32.mxu1 %vm9817_vm0, %v13185_v50  ;;  %9530 = vmatprep.subr.bf16.mxu1 %v13181_v18 }
 0x2a6   : > { %9391 = vmatpush3.bf16.msra.mxu0 %v9390_v9  ;;  %v13475_v9 = vld [vmem:[#allocation11_spill] sm:$0xff] }
 0x2a7   : > { %9392 = vmatprep.subr.bf16.mxu0 %v13181_v18  ;;  %9532 = vmatpush3.bf16.msra.mxu1 %v9531_v8  ;;  %v13476_v8 = vld [vmem:[#allocation13_spill] sm:$0xff] }
 0x2a8   : > { %9533 = vmatprep.subr.bf16.mxu1 %v13181_v18 }
 0x2aa   : > { %9394 = vmatpush3.bf16.msra.mxu0 %v9393_v7  ;;  %v13477_v7 = vld [vmem:[#allocation10_spill] sm:$0xff] }
 0x2ab   : > { %9395 = vmatprep.subr.bf16.mxu0 %v13181_v18  ;;  %9535 = vmatpush3.bf16.msra.mxu1 %v9534_v1  ;;  %v13478_v1 = vld [vmem:[#allocation12_spill] sm:$0xff] }
 0x2ac   : > { %9536 = vmatprep.subr.bf16.mxu1 %v13181_v18 }
 0x2ae   : > { %9397 = vmatpush3.bf16.msra.mxu0 %v9396_v46  ;;  %v13479_v46 = vld [vmem:[#allocation15_spill] sm:$0xff] }
 0x2af   : > { %9398 = vmatprep.subr.bf16.mxu0 %v13181_v18  ;;  %9538 = vmatpush3.bf16.msra.mxu1 %v9537_v19  ;;  %v13480_v19 = vld [vmem:[#allocation14_spill] sm:$0xff] }
 0x2b0   : > { %9539 = vmatprep.subr.bf16.mxu1 %v13181_v18 }
 0x2b2   : > { %9400 = vmatpush3.bf16.msra.mxu0 %v9399_v27  ;;  %v13481_v27 = vand.u32 4294901760, %v12236_v21  ;;  %v13487_v21 = vld [vmem:[#allocation16_spill] sm:$0xff] }
 0x2b3   : > { %9401 = vmatprep.subr.bf16.mxu0 %v13181_v18  ;;  %9541 = vmatpush3.bf16.msra.mxu1 %v9540_v22  ;;  %v13482_v22 = vand.u32 4294901760, %v12249_v31  ;;  %v13488_v31 = vand.u32 4294901760, %v12260_v35  ;;  %v13494_v35 = vand.u32 4294901760, %v12313_v45 }
 0x2b4   : > { %9542 = vmatprep.subr.bf16.mxu1 %v13181_v18 }
 0x2b6   : > { %9403 = vmatpush3.bf16.msra.mxu0 %v9402_v16  ;;  %v9432_v16 = vpack.c.bf16 %v13482_v22, %v13481_v27  ;;  %v13489_v27 = vand.u32 4294901760, %v12277_v52 }
 0x2b7   : > { %9404 = vmatprep.subr.bf16.mxu0 %v13181_v18  ;;  %9544 = vmatpush3.bf16.msra.mxu1 %v9543_v39  ;;  %v13483_v39 = vld [vmem:[#allocation17_spill] sm:$0xff] }
 0x2b8   : > { %9545 = vmatprep.subr.bf16.mxu1 %v13181_v18  ;;  %v9576_v22 = vpack.c.bf16 %v13489_v27, %v13488_v31 }
 0x2ba   : > { %9406 = vmatpush3.bf16.msra.mxu0 %v9405_v2  ;;  %v13484_v2 = vand.u32 4294901760, %v12393_v4 }
 0x2bb   : > { %9407 = vmatprep.subr.bf16.mxu0 %v13181_v18  ;;  %9547 = vmatpush3.bf16.msra.mxu1 %v9546_v34  ;;  %v13485_v34 = vand.u32 4294901760, %v12293_v53  ;;  %v13490_v53 = vand.u32 4294901760, %v12331_v15  ;;  %v13495_v15 = vand.u32 4294901760, %v12353_v33  ;;  %v13501_v33 = vand.u32 4294901760, %v12372_v61 }
 0x2bc   : > { %9548 = vmatprep.subr.bf16.mxu1 %v13181_v18  ;;  %v13507_v61 = vand.u32 4294901760, %v12540_v40 }
 0x2bd   : > { %8154 = vmatmul.mubr.f32.vlgmr.msra.gmra.mrb[6].mxu0 %v12393_v4 }
 0x2be   : > { %9409 = vmatpush3.bf16.msra.mxu0 %v12171_v51  ;;  %8188 = vmatprep.mubr.msk.f32.mxu0 %vm9817_vm0, %v13185_v50 }
 0x2bf   : > { %9410 = vmatprep.subr.bf16.mxu0 %v13181_v18  ;;  %9550 = vmatpush3.bf16.msra.mxu1 %v9549_v32  ;;  %v13486_v32 = vand.u32 4294901760, %v12298_v14  ;;  %v13491_v14 = vand.u32 4294901760, %v12336_v3  ;;  %v13496_v3 = vand.u32 4294901760, %v12356_v20  ;;  %v13502_v20 = vand.u32 4294901760, %v12384_v37 }
 0x2c0   : > { %9551 = vmatprep.subr.bf16.mxu1 %v13181_v18  ;;  %v13508_v37 = vand.u32 4294901760, %v12554_v23 }
 0x2c1   : > { %v9435_v44 = vpack.c.bf16 %v13486_v32, %v13485_v34  ;;  %v9438_v4 = vpack.c.bf16 %v13491_v14, %v13490_v53  ;;  %v13499_v34 = vand.u32 4294901760, %v12387_v57  ;;  %v13500_v32 = vand.u32 4294901760, %v12390_v25 }
 0x2c2   : > { %9412 = vmatpush3.bf16.msra.mxu0 %v12210_v11  ;;  %8364 = vmatmul.mubr.f32.vlgmr.msra.gmra.mrb[6].mxu1 %v12461_v62  ;;  %v9585_v27 = vpack.c.bf16 %v13502_v20, %v13501_v33  ;;  %v13505_v57 = vand.u32 4294901760, %v12402_v17  ;;  %v13506_v25 = vand.u32 4294901760, %v12418_v49  ;;  %v9450_v14 = vpack.c.bf16 %v13508_v37, %v13507_v61  ;;  %v5720_v37 = vpop.permute.xlu0 %5719 }
 0x2c3   : > { %9413 = vmatprep.subr.bf16.mxu0 %v13181_v18  ;;  %9553 = vmatpush3.bf16.msra.mxu1 %v12226_v59  ;;  %v9444_v31 = vpack.c.bf16 %v13500_v32, %v13499_v34  ;;  %v9453_v17 = vpack.c.bf16 %v4587_v26, %v4580_v55  ;;  %v13511_v49 = vand.u32 4294901760, %v12633_v6  ;;  %v158_v6 = vrot.slane %v145_v28, 4  ;;  %v147_v55 = vld [vmem:[%s10058_s25 + $0x18] sm:$0xff] }
 0x2c4   : > { %8398 = vmatprep.mubr.msk.f32.mxu1 %vm9817_vm0, %v13185_v50  ;;  %9554 = vmatprep.subr.bf16.mxu1 %v13181_v18  ;;  %v9588_v53 = vpack.c.bf16 %v13506_v25, %v13505_v57  ;;  %v164_v26 = vrot.slane %v146_v13, 4 }
 0x2c5   : > { %v9594_v40 = vpack.c.bf16 %v13511_v49, %v5255_v38  ;;  %v159_v38 = vadd.f32 %v158_v6, %v145_v28 }
 0x2c6   : > { %9415 = vmatpush3.bf16.msra.mxu0 %v13470_v0 }
 0x2c7   : > { %9416 = vmatprep.subr.bf16.mxu0 %v13181_v18  ;;  %9556 = vmatpush3.bf16.msra.mxu1 %v13471_v24 }
 0x2c8   : > { %9557 = vmatprep.subr.bf16.mxu1 %v13181_v18 }
 0x2ca   : > { %9418 = vmatpush3.bf16.msra.mxu0 %v13472_v43 }
 0x2cb   : > { %9419 = vmatprep.subr.bf16.mxu0 %v13181_v18  ;;  %9559 = vmatpush3.bf16.msra.mxu1 %v13473_v29 }
 0x2cc   : > { %9560 = vmatprep.subr.bf16.mxu1 %v13181_v18 }
 0x2ce   : > { %9421 = vmatpush3.bf16.msra.mxu0 %v13474_v56 }
 0x2cf   : > { %9422 = vmatprep.subr.bf16.mxu0 %v13181_v18  ;;  %9562 = vmatpush3.bf16.msra.mxu1 %v13475_v9 }
 0x2d0   : > { %9563 = vmatprep.subr.bf16.mxu1 %v13181_v18 }
 0x2d2   : > { %9424 = vmatpush3.bf16.msra.mxu0 %v13476_v8 }
 0x2d3   : > { %9425 = vmatprep.subr.bf16.mxu0 %v13181_v18  ;;  %9565 = vmatpush3.bf16.msra.mxu1 %v13477_v7 }
 0x2d4   : > { %9566 = vmatprep.subr.bf16.mxu1 %v13181_v18 }
 0x2d6   : > { %9427 = vmatpush3.bf16.msra.mxu0 %v13478_v1 }
 0x2d7   : > { %9428 = vmatprep.subr.bf16.mxu0 %v13181_v18  ;;  %9568 = vmatpush3.bf16.msra.mxu1 %v13479_v46 }
 0x2d8   : > { %9569 = vmatprep.subr.bf16.mxu1 %v13181_v18 }
 0x2da   : > { %9430 = vmatpush3.bf16.msra.mxu0 %v13480_v19 }
 0x2db   : > { %9431 = vmatprep.subr.bf16.mxu0 %v13181_v18  ;;  %9571 = vmatpush3.bf16.msra.mxu1 %v13483_v39 }
 0x2dc   : > { %9572 = vmatprep.subr.bf16.mxu1 %v13181_v18 }
 0x2dd   : > { %8189 = vmatmul.mubr.f32.vlgmr.msra.gmra.mrb[6].mxu0 %v13484_v2  ;;  %v13493_v2 = vand.u32 4294901760, %v12311_v47  ;;  %v13498_v47 = vand.u32 4294901760, %v12350_v60  ;;  %v13504_v60 = vand.u32 4294901760, %v12445_v63  ;;  %v13510_v63 = vand.u32 4294901760, %v12490_v48 }
 0x2de   : > { %9433 = vmatpush3.bf16.msra.mxu0 %v9432_v16  ;;  %8223 = vmatprep.mubr.msk.f32.mxu0 %vm9817_vm0, %v13185_v50  ;;  %v13492_v16 = vand.u32 4294901760, %v12461_v62  ;;  %v9441_v62 = vpack.c.bf16 %v13496_v3, %v13495_v15 }
 0x2df   : > { %9434 = vmatprep.subr.bf16.mxu0 %v13181_v18  ;;  %9574 = vmatpush3.bf16.msra.mxu1 %v13487_v21  ;;  %v9579_v52 = vpack.c.bf16 %v13494_v35, %v13493_v2  ;;  %v151_v2 = vld [vmem:[%s10058_s25 + $0x38] sm:$0xff] }
 0x2e0   : > { %9575 = vmatprep.subr.bf16.mxu1 %v13181_v18 }
 0x2e2   : > { %9436 = vmatpush3.bf16.msra.mxu0 %v9435_v44  ;;  %8399 = vmatmul.mubr.f32.vlgmr.msra.gmra.mrb[6].mxu1 %v13492_v16  ;;  %v13497_v44 = vand.u32 4294901760, %v12341_v10  ;;  %v13503_v10 = vand.u32 4294901760, %v12420_v58  ;;  %v13509_v58 = vand.u32 4294901760, %v12457_v54  ;;  %v13512_v54 = vand.u32 4294901760, %v12659_v5 }
 0x2e3   : > { %9437 = vmatprep.subr.bf16.mxu0 %v13181_v18  ;;  %9577 = vmatpush3.bf16.msra.mxu1 %v9576_v22 }
 0x2e4   : > { %8433 = vmatprep.mubr.msk.f32.mxu1 %vm9817_vm0, %v13185_v50  ;;  %9578 = vmatprep.subr.bf16.mxu1 %v13181_v18  ;;  %v9582_v45 = vpack.c.bf16 %v13498_v47, %v13497_v44  ;;  %v9447_v22 = vpack.c.bf16 %v13504_v60, %v13503_v10  ;;  %v9597_v48 = vpack.c.bf16 %v13512_v54, %v5269_v36  ;;  %v148_v36 = vld [vmem:[%s10058_s25 + $0x20] sm:$0xff]  ;;  %v5724_v54 = vpop.permute.xlu0 %5723 }
 0x2e6   : > { %9439 = vmatpush3.bf16.msra.mxu0 %v9438_v4  ;;  %v9591_v4 = vpack.c.bf16 %v13510_v63, %v13509_v58 }
 0x2e7   : > { %9440 = vmatprep.subr.bf16.mxu0 %v13181_v18  ;;  %9580 = vmatpush3.bf16.msra.mxu1 %v9579_v52 }
 0x2e8   : > { %9581 = vmatprep.subr.bf16.mxu1 %v13181_v18 }
 0x2ea   : > { %9442 = vmatpush3.bf16.msra.mxu0 %v9441_v62 }
 0x2eb   : > { %9443 = vmatprep.subr.bf16.mxu0 %v13181_v18  ;;  %9583 = vmatpush3.bf16.msra.mxu1 %v9582_v45  ;;  %v194_v45 = vrot.slane %v151_v2, 4 }
 0x2ec   : > { %9584 = vmatprep.subr.bf16.mxu1 %v13181_v18 }
 0x2ed   : > { %v195_v60 = vadd.f32 %v194_v45, %v151_v2 }
 0x2ee   : > { %9445 = vmatpush3.bf16.msra.mxu0 %v9444_v31 }
 0x2ef   : > { %9446 = vmatprep.subr.bf16.mxu0 %v13181_v18  ;;  %9586 = vmatpush3.bf16.msra.mxu1 %v9585_v27  ;;  %v196_v58 = vrot.slane %v195_v60, 2 }
 0x2f0   : > { %9587 = vmatprep.subr.bf16.mxu1 %v13181_v18 }
 0x2f2   : > { %9448 = vmatpush3.bf16.msra.mxu0 %v9447_v22 }
 0x2f3   : > { %9449 = vmatprep.subr.bf16.mxu0 %v13181_v18  ;;  %9589 = vmatpush3.bf16.msra.mxu1 %v9588_v53 }
 0x2f4   : > { %9590 = vmatprep.subr.bf16.mxu1 %v13181_v18 }
 0x2f6   : > { %9451 = vmatpush3.bf16.msra.mxu0 %v9450_v14 }
 0x2f7   : > { %9452 = vmatprep.subr.bf16.mxu0 %v13181_v18  ;;  %9592 = vmatpush3.bf16.msra.mxu1 %v9591_v4 }
 0x2f8   : > { %9593 = vmatprep.subr.bf16.mxu1 %v13181_v18 }
 0x2fa   : > { %9454 = vmatpush3.bf16.msra.mxu0 %v9453_v17 }
 0x2fb   : > { %9455 = vmatprep.subr.bf16.mxu0 %v13181_v18  ;;  %9595 = vmatpush3.bf16.msra.mxu1 %v9594_v40  ;;  %v5728_v40 = vpop.permute.xlu1 %5727 }
 0x2fc   : > { %9596 = vmatprep.subr.bf16.mxu1 %v13181_v18 }
 0x2fd   : > { %8224 = vmatmul.mubr.f32.vlgmr.msra.gmra.mrb[6].mxu0 %v12343_v41 }
 0x2fe   : > { %9457 = vmatpush3.bf16.msra.mxu0 %v12171_v51  ;;  %8258 = vmatprep.mubr.msk.f32.mxu0 %vm9817_vm0, %v13185_v50 }
 0x2ff   : > { %9458 = vmatprep.subr.bf16.mxu0 %v13181_v18  ;;  %9598 = vmatpush3.bf16.msra.mxu1 %v9597_v48  ;;  %v197_v48 = vadd.f32 %v196_v58, %v195_v60 }
 0x300   : > { %9599 = vmatprep.subr.bf16.mxu1 %v13181_v18 }
 0x302   : > { %9460 = vmatpush3.bf16.msra.mxu0 %v12210_v11  ;;  %8434 = vmatmul.mubr.f32.vlgmr.msra.gmra.mrb[6].mxu1 %v12415_v12 }
 0x303   : > { %9461 = vmatprep.subr.bf16.mxu0 %v13181_v18  ;;  %9601 = vmatpush3.bf16.msra.mxu1 %v12226_v59 }
 0x304   : > { %8468 = vmatprep.mubr.msk.f32.mxu1 %vm9817_vm0, %v13185_v50  ;;  %9602 = vmatprep.subr.bf16.mxu1 %v13181_v18 }
 0x306   : > { %9463 = vmatpush3.bf16.msra.mxu0 %v13470_v0  ;;  %v170_v0 = vrot.slane %v147_v55, 4 }
 0x307   : > { %9464 = vmatprep.subr.bf16.mxu0 %v13181_v18  ;;  %9604 = vmatpush3.bf16.msra.mxu1 %v13471_v24  ;;  %v165_v24 = vadd.f32 %v164_v26, %v146_v13 }
 0x308   : > { %9605 = vmatprep.subr.bf16.mxu1 %v13181_v18 }
 0x30a   : > { %9466 = vmatpush3.bf16.msra.mxu0 %v13472_v43 }
 0x30b   : > { %9467 = vmatprep.subr.bf16.mxu0 %v13181_v18  ;;  %9607 = vmatpush3.bf16.msra.mxu1 %v13473_v29  ;;  %v160_v29 = vrot.slane %v159_v38, 2 }
 0x30c   : > { %9608 = vmatprep.subr.bf16.mxu1 %v13181_v18 }
 0x30e   : > { %9469 = vmatpush3.bf16.msra.mxu0 %v13474_v56  ;;  %v149_v56 = vld [vmem:[%s10058_s25 + $0x28] sm:$0xff] }
 0x30f   : > { %9470 = vmatprep.subr.bf16.mxu0 %v13181_v18  ;;  %9610 = vmatpush3.bf16.msra.mxu1 %v13475_v9  ;;  %v176_v9 = vrot.slane %v148_v36, 4 }
 0x310   : > { %9611 = vmatprep.subr.bf16.mxu1 %v13181_v18 }
 0x312   : > { %9472 = vmatpush3.bf16.msra.mxu0 %v13476_v8  ;;  %v171_v8 = vadd.f32 %v170_v0, %v147_v55 }
 0x313   : > { %9473 = vmatprep.subr.bf16.mxu0 %v13181_v18  ;;  %9613 = vmatpush3.bf16.msra.mxu1 %v13477_v7  ;;  %v166_v7 = vrot.slane %v165_v24, 2 }
 0x314   : > { %9614 = vmatprep.subr.bf16.mxu1 %v13181_v18  ;;  %v172_v16 = vrot.slane %v171_v8, 2 }
 0x315   : > { %v167_v35 = vadd.f32 %v166_v7, %v165_v24 }
 0x316   : > { %9475 = vmatpush3.bf16.msra.mxu0 %v13478_v1  ;;  %v150_v1 = vld [vmem:[%s10058_s25 + $0x30] sm:$0xff]  ;;  %v173_v47 = vadd.f32 %v172_v16, %v171_v8 }
 0x317   : > { %9476 = vmatprep.subr.bf16.mxu0 %v13181_v18  ;;  %9616 = vmatpush3.bf16.msra.mxu1 %v13479_v46  ;;  %v188_v52 = vrot.slane %v150_v1, 4  ;;  %v168_v34 = vrot.slane %v167_v35, 1 }
 0x318   : > { %9617 = vmatprep.subr.bf16.mxu1 %v13181_v18  ;;  %v174_v10 = vrot.slane %v173_v47, 1 }
 0x319   : > { %v189_v32 = vadd.f32 %v188_v52, %v150_v1  ;;  %v169_v22 = vadd.f32 %v168_v34, %v167_v35 }
 0x31a   : > { %9478 = vmatpush3.bf16.msra.mxu0 %v13480_v19  ;;  %v161_v19 = vadd.f32 %v160_v29, %v159_v38  ;;  %v175_v14 = vadd.f32 %v174_v10, %v173_v47 }
 0x31b   : > { %9619 = vmatpush3.bf16.msra.mxu1 %v13483_v39  ;;  %v182_v39 = vrot.slane %v149_v56, 4  ;;  %v190_v57 = vrot.slane %v189_v32, 2 }
 0x31c   : > { %9620 = vmatprep.subr.bf16.mxu1 %v13181_v18  ;;  %v162_v3 = vrot.slane %v161_v19, 1 }
 0x31d   : > { %8259 = vmatmul.mubr.f32.vlgmr.msra.gmra.mrb[6].mxu0 %v12343_v41  ;;  %v183_v62 = vadd.f32 %v182_v39, %v149_v56  ;;  %v191_v63 = vadd.f32 %v190_v57, %v189_v32 }
 0x31e   : > { %v163_v33 = vadd.f32 %v162_v3, %v161_v19 }
 0x31f   : > { %9622 = vmatpush3.bf16.msra.mxu1 %v13487_v21  ;;  %v177_v21 = vadd.f32 %v176_v9, %v148_v36  ;;  %v184_v20 = vrot.slane %v183_v62, 2 }
 0x321   : > { %v178_v44 = vrot.slane %v177_v21, 2  ;;  %v185_v25 = vadd.f32 %v184_v20, %v183_v62 }
 0x322   : > { %8469 = vmatmul.mubr.f32.vlgmr.msra.gmra.mrb[6].mxu1 %v12415_v12  ;;  %v144_v12 = vld [vmem:[%s10058_s25] sm:$0xff]  ;;  %s135_s25 = sand.u32 1, %s9806_s10  }
 0x323   : > { %v152_v30 = vrot.slane %v144_v12, 4  ;;  %v179_v27 = vadd.f32 %v178_v44, %v177_v21  ;;  %v186_v17 = vrot.slane %v185_v25, 1  ;;  %s5856_s8 = sshll.u32 %s135_s25, 3  ;;  %s5780_s23 = scalar_lea.sflag [#allocation3], %s135_s25 }
 0x324   : > { %s137_s16 = scalar_lea.vmem [#allocation2], %s5856_s8 }
 0x325   : > { %v153_v5 = vadd.f32 %v152_v30, %v144_v12  ;;  %v180_v61 = vrot.slane %v179_v27, 1  ;;  %v198_v12 = vrot.slane %v197_v48, 1  ;;  %s5793_s26 = sshll.u32 %s137_s16, 4  ;;  %s12934_s26 = int_to_ptr.vmem [resolvable:$true] %s5793_s26 }
 0x326   : > { %s9752_s24 = scalar_lea.vmem %s12934_s26, 128  ;;  %p9759_p0 = scmp.lt.s32.totalorder %s12934_s26, %s9757_s27 }
 0x327   : > { %v154_v43 = vrot.slane %v153_v5, 2  ;;  %v181_v49 = vadd.f32 %v180_v61, %v179_v27  ;;  %p9753_p11 = scmp.ne.s32.totalorder %s12934_s26, %s9752_s24  ;;  %p9760_p1 = scmp.lt.s32.totalorder %s9758_s28, %s9752_s24 }
 0x329   : > { %v155_v46 = vadd.f32 %v154_v43, %v153_v5  ;;  %v199_v5 = vadd.f32 %v198_v12, %v197_v48  ;;  %p9754_p12 = pnand %p9753_p11, %p9880_p5  ;;  %p9761_p2 = por %p9760_p1, %p9759_p0 }
 0x32b   : > { %v156_v15 = vrot.slane %v155_v46, 1  ;;  %p9755_p13 = pneg %p9754_p12 }
 0x32d   : > { %v157_v31 = vadd.f32 %v156_v15, %v155_v46  ;;  %p9762_p3 = pnand %p9761_p2, %p9755_p13 }
 0x32f   : > { %v5768_v53 = vsel %vm233_vm1, %v163_v33, %v157_v31 }
 0x330   : > { %v3647_v50 = vpop.f32.mrb[4].mxu0  ;;  %v5769_v4 = vsel %vm236_vm2, %v169_v22, %v5768_v53 }
 0x331   : > { %5731 = vrot.lane.b32.xlu1 %v3647_v50, %s9822_s4  ;;  %v7840_v51 = vpop.f32.mrb[5].mxu0  ;;  %v5770_v50 = vsel %vm239_vm3, %v175_v14, %v5769_v4 }
 0x332   : > { %v192_v51 = vrot.slane %v191_v63, 1 }
 0x334   : > { %v193_v28 = vadd.f32 %v192_v51, %v191_v63 }
 0x335   : > { %v4336_v11 = vpop.f32.mrb[4].mxu1 }
 0x336   : > { %v8050_v59 = vpop.f32.mrb[5].mxu1  ;;  %5735 = vrot.lane.b32.xlu0 %v4336_v11, %s9823_s5  ;;  %v13513_v11 = vld [vmem:[#allocation25_spill] sm:$0xff] }
 0x337   : > { %v5747_v59 = vsel %vm5746_vm8, %v13513_v11, %v5720_v37 }
 0x3a8   : > { %v5736_v6 = vpop.permute.xlu0 %5735 }
 0x3f0   : > { %v5025_v23 = vpop.f32.mrb[6].mxu0 }
 0x3f1   : > { %5739 = vrot.lane.b32.xlu1 %v5025_v23, %s9824_s6  ;;  %v8260_v18 = vpop.f32.mrb[7].mxu0  ;;  %v187_v23 = vadd.f32 %v186_v17, %v185_v25 }
 0x3f2   : > { %v5749_v18 = vsel %vm5748_vm9, %v5747_v59, %v5724_v54 }
 0x3f3   : > { %v5751_v13 = vsel %vm5750_vm10, %v5749_v18, %v5728_v40 }
 0x3f5   : > { %v5714_v41 = vpop.f32.mrb[6].mxu1 }
 0x3f6   : > { %v8470_v42 = vpop.f32.mrb[7].mxu1  ;;  %5743 = vrot.lane.b32.xlu0 %v5714_v41, %s9825_s7  ;;  %v5771_v41 = vsel %vm242_vm4, %v181_v49, %v5770_v50 }
 0x3f7   : > { %v5732_v42 = vpop.permute.xlu1 %5731  ;;  %v5772_v30 = vsel %vm245_vm5, %v187_v23, %v5771_v41 }
 0x3f8   : > { %v5753_v55 = vsel %vm5752_vm11, %v5751_v13, %v5732_v42  ;;  %v5773_v38 = vsel %vm248_vm6, %v193_v28, %v5772_v30 }
 0x3f9   : > { %v5755_v36 = vsel %vm5754_vm12, %v5753_v55, %v5736_v6  ;;  %v5774_v24 = vsel %vm251_vm7, %v199_v5, %v5773_v38 }
 0x463   : > { %v5740_v26 = vpop.permute.xlu1 %5739 }
 0x464   : > { %v5757_v0 = vsel %vm5756_vm13, %v5755_v36, %v5740_v26 }
 0x468   : > { %v5744_v43 = vpop.permute.xlu0 %5743 }
 0x469   : > { %v5759_v29 = vsel %vm5758_vm14, %v5757_v0, %v5744_v43 }
 0x46a   : > { %v5776_v56 = vadd.f32 %v5774_v24, %v5759_v29 }
 0x46c   : > { %v5777_v9 = vmul.f32 0.125, %v5776_v56 }
 0x46e   : > { %5778 = vst [vmem:[%s137_s16] sm:$0xff] %v5777_v9 }
 0x46f   : > { %9765 = shalt.err (!%p9762_p3)
}
 0x470   : > { %s9766_s29 = scalar_lea.hbm %s12932_s22, 128  ;;  %s9770_s4 = scalar_lea.hbm %s12976_s2, 256 }
 0x471   : > { %p9767_p4 = scmp.ne.s32.totalorder %s12932_s22, %s9766_s29  ;;  %p9771_p9 = scmp.lt.u32.totalorder %s12932_s22, %s12976_s2 }
 0x472   : > { %p9772_p10 = scmp.lt.u32.totalorder %s9770_s4, %s9766_s29  ;;  %p9774_p12 = scmp.lt.u32.totalorder %s9766_s29, %s12932_s22 }
 0x473   : > { %p9768_p7 = pnand %p9767_p4, %p9880_p5 }
 0x474   : > { %p9773_p11 = por %p9772_p10, %p9771_p9 }
 0x475   : > { %p9769_p8 = pneg %p9768_p7 }
 0x476   : > { %p9775_p13 = por %p9774_p12, %p9773_p11 }
 0x478   : > { %p9776_p0 = pnand %p9775_p13, %p9769_p8 }
 0x47a   : > { %9779 = shalt.err (!%p9776_p0)
}
 0x47b   : > { %9703 = dma.vmem_to_hbm [thread:$0]  (%p9880_p5), %s12934_s26, 128, %s12932_s22, %s5780_s23  }
 0x47c PF: > { %p9709_p1 = scmp.ge.s32.totalorder %s9814_s12, 2  ;;  %s5805_s7 = sand.u32 1, %s9802_s9  }
 0x47d   : > { %s5806_s25 = scalar_lea.sflag [#allocation3], %s5805_s7 }
 0x47e   : > { %p9706_p2 = pnand %p9709_p1, %p9884_p6 }
 0x480   : > { %9797 = dma.done.wait (!%p9706_p2), %s5806_s25, 128  }
 0x481   : > { %9799 = vsyncadd (!%p9706_p2), %s5806_s25, 4294967168  ;;  %p12_p3 = scmp.ge.s32.totalorder %s9867_s15, 4   ;;  %s13514_s9 = smov %s9806_s10 }
 0x482   : > { %s13515_s10 = smov %s9810_s11  ;;  %s13516_s11 = smov %s9878_s18 }
 0x483   : > { %s13517_s12 = smov %s9867_s15  ;;  %14 = sbr.rel (!%p12_p3) target bundleno = 3 (0x3), region = 70 }
 0x48a   :  { %5811 = vsyncpa [#allocation3], 1 }
 0x48b   :  { %5813 = vsyncpa [#allocation3 + $0x1], 1 }

</bundles_post_ra>
